<compile_context>
chip_gen: v7x
topology: tpu7x:2x2x1
jax: 0.10.0
libtpu: 0.0.40
codegen_flags: <defaults>
</compile_context>

<pallas_src>
import math

import jax
import jax.numpy as jnp
import numpy as np
from jax.experimental import pallas as pl
from jax.experimental.pallas import tpu as pltpu

# ----- module hyper-parameters (defaults of the PyTorch MLP) -----------------
BOTTLENECK_WIDTH = 256
NET_DEPTH_VIEWDIRS = 2          # kernel below is specialized to 2 layers, skip at 0
NET_WIDTH_VIEWDIRS = 256
SKIP_LAYER_DIR = 0
NUM_RGB_CHANNELS = 3
DEG_VIEW = 4
DENSITY_BIAS = -1.0
RGB_PREMULTIPLIER = 1.0
RGB_BIAS = 0.0
RGB_PADDING = 0.001
BBOX_SIZE = 4.0
MLP_PE_FREQS = 8
MLP_NUM_LAYERS = 4
MLP_HIDDEN_DIM = 128

PE_DIM = 3 + 6 * MLP_PE_FREQS        # 51
DIR_DIM = 3 + 6 * DEG_VIEW           # 27
PACKED_DIM = 128                     # [pe | dir | zero-pad] lane-dense input width
OUT_CH = 1 + NUM_RGB_CHANNELS        # [density | r | g | b], channel-major output


# ----- glue: coordinate warp + positional encoding (elementwise) --------------
def _contract(x):
    """mip-NeRF 360 contraction: x if |x|<=1 else (2 - 1/|x|) * x/|x|."""
    norm = jnp.linalg.norm(x, axis=-1, keepdims=True)
    safe = jnp.maximum(norm, 1.0)
    contracted = (2.0 - 1.0 / safe) * (x / safe)
    return jnp.where(norm <= 1.0, x, contracted)


def _warp_coords(coords, no_warp=False):
    if no_warp:
        return coords
    # warp_fn == 'contract': contract then divide by bound=2.0
    return _contract(coords) / 2.0


def _pos_enc(x, min_deg, max_deg, with_identity=True):
    scales = 2.0 ** jnp.arange(min_deg, max_deg, dtype=jnp.float32)         # [D]
    xb = (x[..., None, :] * scales[:, None]).reshape(x.shape[:-1] + (-1,))  # [..., 3*D]
    four = jnp.concatenate([jnp.sin(xb), jnp.cos(xb)], axis=-1)
    return jnp.concatenate([x, four], axis=-1) if with_identity else four


# ----- Pallas kernel: the full MLP hot path -----------------------------------
def _make_kernel(ew_dtype):
    """ew_dtype: dtype for post-matmul bias/ReLU math (bf16 on v6e/v7x, f32 on v5)."""
    f32 = jnp.float32
    bf16 = jnp.bfloat16
    nt_dims = (((1,), (1,)), ((), ()))   # contract last dims of both: A @ B^T

    def kernel(feat_ref,
               w0_ref, wh_ref, b128_ref,
               wd1_ref, bd1_ref, wd2_ref, wd2c0t_ref,
               w0a_ref, w0b_ref, w1a_ref, w1b_ref, w1c_ref, b256_ref,
               wr4t_ref, br4t_ref,
               out_ref):
        feat = feat_ref[...]                                  # [TM, 128] bf16 = [pe | dir | 0]

        # --- encoder MLP: Linear(51,128) then 4 x (ReLU, Linear(128,128)) ---
        # matmuls: bf16 x bf16, f32 accumulation.  bias/ReLU in ew_dtype.
        h = jnp.dot(feat, w0_ref[...], preferred_element_type=f32)
        h = h.astype(ew_dtype) + b128_ref[0:1, :].astype(ew_dtype)
        for i in range(MLP_NUM_LAYERS):
            h = jnp.maximum(h, 0.0).astype(bf16)
            h = jnp.dot(h, wh_ref[i], preferred_element_type=f32)
            h = h.astype(ew_dtype) + b128_ref[i + 1:i + 2, :].astype(ew_dtype)

        # --- density layer: Linear(128,64), ReLU, Linear(64,256) ---
        h64 = jnp.dot(h.astype(bf16), wd1_ref[...], preferred_element_type=f32)
        h64 = h64.astype(ew_dtype) + bd1_ref[...].astype(ew_dtype)
        h64 = jnp.maximum(h64, 0.0).astype(bf16)
        x = jnp.dot(h64, wd2_ref[...], preferred_element_type=f32)
        x = x.astype(ew_dtype) + b256_ref[0:1, :].astype(ew_dtype)   # bottleneck [TM,256]
        xb = x.astype(bf16)

        # density in channel-major layout: raw = h64 @ wd2[:,0] + bd2[0]  -> [1, TM]
        dens_z = (jax.lax.dot_general(wd2c0t_ref[...], h64, nt_dims,
                                      preferred_element_type=f32)
                  + b256_ref[0:1, 0:1] + DENSITY_BIAS)
        # stable softplus (f32, on ~8 fully-used vregs)
        dens = jnp.maximum(dens_z, 0.0) + jnp.log(1.0 + jnp.exp(-jnp.abs(dens_z)))

        # --- view-direction branch (concats expressed as split matmuls) ---
        # layer 0: input = [bottleneck(256), dir_enc(27 inside packed feat)]
        z0 = (jnp.dot(xb, w0a_ref[...], preferred_element_type=f32)
              + jnp.dot(feat, w0b_ref[...], preferred_element_type=f32))
        h0 = jnp.maximum(z0.astype(ew_dtype) + b256_ref[1:2, :].astype(ew_dtype),
                         0.0).astype(bf16)
        # layer 1 (after skip at i==0): input = [h0(256), bottleneck(256), dir(27)]
        z1 = (jnp.dot(h0, w1a_ref[...], preferred_element_type=f32)
              + jnp.dot(xb, w1b_ref[...], preferred_element_type=f32)
              + jnp.dot(feat, w1c_ref[...], preferred_element_type=f32))
        h1 = jnp.maximum(z1.astype(ew_dtype) + b256_ref[2:3, :].astype(ew_dtype),
                         0.0).astype(bf16)

        # rgb head, channel-major [4, TM] (row 0 unused: zero weight row/bias)
        logits = (jax.lax.dot_general(wr4t_ref[...], h1, nt_dims,
                                      preferred_element_type=f32)
                  + br4t_ref[...])
        logits = RGB_PREMULTIPLIER * logits + RGB_BIAS
        sig = 1.0 / (1.0 + jnp.exp(-logits))                       # exact sigmoid
        rgb = sig * (1.0 + 2.0 * RGB_PADDING) - RGB_PADDING        # [4, TM]

        # merge: row 0 = density, rows 1..3 = rgb  (single lane-dense store)
        row = jax.lax.broadcasted_iota(jnp.int32, out_ref.shape, 0)   # [4, TM]
        out_ref[...] = jnp.where(row == 0, dens, rgb)

    return kernel


# ----- deterministic parameter init --------------------------------------------
def _linear(key, fan_in, fan_out, bound_fan_in=None):
    k1, k2 = jax.random.split(key)
    bound = 1.0 / math.sqrt(bound_fan_in if bound_fan_in is not None else fan_in)
    w = jax.random.uniform(k1, (fan_in, fan_out), jnp.float32, -bound, bound)
    b = jax.random.uniform(k2, (1, fan_out), jnp.float32, -bound, bound)
    return w, b


def init_params(key):
    keys = jax.random.split(key, 16)
    # encoder
    w0, b0 = _linear(keys[0], PE_DIM, MLP_HIDDEN_DIM)
    whs, bhs = [], []
    for i in range(MLP_NUM_LAYERS):
        w, b = _linear(keys[1 + i], MLP_HIDDEN_DIM, MLP_HIDDEN_DIM)
        whs.append(w)
        bhs.append(b)
    wh = jnp.stack(whs)                                  # [4, 128, 128]
    b128 = jnp.concatenate([b0] + bhs, axis=0)           # [5, 128] packed biases
    # density layer
    wd1, bd1 = _linear(keys[5], MLP_HIDDEN_DIM, 64)
    wd2, bd2 = _linear(keys[6], 64, BOTTLENECK_WIDTH)
    # viewdir layer 0: full fan_in = 256 + 27 = 283
    fi0 = BOTTLENECK_WIDTH + DIR_DIM
    w0a, bs0 = _linear(keys[7], BOTTLENECK_WIDTH, NET_WIDTH_VIEWDIRS, bound_fan_in=fi0)
    w0b, _ = _linear(keys[8], DIR_DIM, NET_WIDTH_VIEWDIRS, bound_fan_in=fi0)
    # viewdir layer 1: full fan_in = 256 + 283 = 539
    fi1 = NET_WIDTH_VIEWDIRS + fi0
    w1a, bs1 = _linear(keys[9], NET_WIDTH_VIEWDIRS, NET_WIDTH_VIEWDIRS, bound_fan_in=fi1)
    w1b, _ = _linear(keys[10], BOTTLENECK_WIDTH, NET_WIDTH_VIEWDIRS, bound_fan_in=fi1)
    w1c, _ = _linear(keys[11], DIR_DIM, NET_WIDTH_VIEWDIRS, bound_fan_in=fi1)
    # rgb head
    wr, br = _linear(keys[12], NET_WIDTH_VIEWDIRS, NUM_RGB_CHANNELS)

    # ---- repack for the kernel ----
    # lane-dense packed input layout: [pe(0:51) | dir(51:78) | zeros(78:128)]
    def pad_rows(w, row_offset):
        out = jnp.zeros((PACKED_DIM, w.shape[1]), jnp.float32)
        return out.at[row_offset:row_offset + w.shape[0]].set(w)

    w0p = pad_rows(w0, 0)                # [128, 128]
    w0bp = pad_rows(w0b, PE_DIM)         # [128, 256]
    w1cp = pad_rows(w1c, PE_DIM)         # [128, 256]
    wd2c0t = wd2[:, 0:1].T               # [1, 64]  (density column, transposed)
    b256 = jnp.concatenate([bd2, bs0, bs1], axis=0)     # [3, 256] packed biases
    # channel-major rgb head: [4, 256] with row 0 zero; bias [4, 1] with row 0 zero
    wr4t = jnp.concatenate(
        [jnp.zeros((1, NET_WIDTH_VIEWDIRS), jnp.float32), wr.T], axis=0)   # [4, 256]
    br4t = jnp.concatenate([jnp.zeros((1, 1), jnp.float32), br.T], axis=0)  # [4, 1]

    bf = lambda a: a.astype(jnp.bfloat16)
    # weights in bf16 (matmul inputs), biases in f32 (cast in-kernel as needed)
    return [bf(w0p), bf(wh), b128,
            bf(wd1), bd1, bf(wd2), bf(wd2c0t),
            bf(w0a), bf(w0bp), bf(w1a), bf(w1b), bf(w1cp), b256,
            bf(wr4t), br4t]


# ----- wrapper -----------------------------------------------------------------
def _full_spec(shape):
    nd = len(shape)
    return pl.BlockSpec(shape, lambda i, _nd=nd: (0,) * _nd)


def _choose_tm(n):
    """Largest row tile that still leaves >=4 grid steps (both TCs busy on v7x)."""
    for tm in (1024, 512, 256):
        if n >= 4 * tm:
            return tm
    return 256


def _elementwise_dtype():
    """bf16 post-matmul elementwise on chips with a bf16 VALU (v6e/v7x), f32 on v5."""
    try:
        kind = jax.devices()[0].device_kind.lower()
    except Exception:
        kind = ""
    return jnp.float32 if "v5" in kind else jnp.bfloat16


def mlp_forward(params, coords, viewdirs, radius=None, no_warp=False):
    """Pallas equivalent of MLP.forward.  coords: [..., S, 3], viewdirs: [..., 3]."""
    del radius  # unused by the reference forward
    batch_shape = coords.shape[:-1]                     # e.g. (B, S)

    coords_warped = _warp_coords(coords, no_warp=no_warp)
    pe = _pos_enc(coords_warped, 0, MLP_PE_FREQS)       # [..., 51]
    dir_enc = _pos_enc(viewdirs, 0, DEG_VIEW)           # [B, 27]
    dir_b = jnp.broadcast_to(dir_enc[..., None, :],
                             batch_shape + (DIR_DIM,))

    n = int(np.prod(batch_shape))
    # single lane-dense bf16 feature slab: [pe | dir | zero-pad] -> [n, 128]
    feat = jnp.concatenate(
        [pe.reshape(n, PE_DIM), dir_b.reshape(n, DIR_DIM)], axis=-1).astype(jnp.bfloat16)

    tm = _choose_tm(n)
    n_pad = ((n + tm - 1) // tm) * tm
    feat = jnp.pad(feat, ((0, n_pad - n), (0, PACKED_DIM - feat.shape[-1])))

    kernel = _make_kernel(_elementwise_dtype())
    in_specs = [pl.BlockSpec((tm, PACKED_DIM), lambda i: (i, 0))]
    in_specs += [_full_spec(tuple(int(s) for s in p.shape)) for p in params]

    out = pl.pallas_call(
        kernel,
        out_shape=jax.ShapeDtypeStruct((OUT_CH, n_pad), jnp.float32),
        grid_spec=pltpu.PrefetchScalarGridSpec(
            num_scalar_prefetch=0,
            grid=(n_pad // tm,),
            in_specs=in_specs,
            out_specs=pl.BlockSpec((OUT_CH, tm), lambda i: (0, i))),
        compiler_params=pltpu.CompilerParams(
            dimension_semantics=("parallel",),          # shards row tiles across TCs
            vmem_limit_bytes=64 * 1024 * 1024),
    )(feat, *params)

    density = out[0, :n].reshape(batch_shape)
    rgb = out[1:, :n].T.reshape(batch_shape + (NUM_RGB_CHANNELS,))
    return dict(coord=coords_warped, density=density, rgb=rgb,
                normals=None, hash_levelwise_mean=None)


if __name__ == "__main__":
    key = jax.random.PRNGKey(0)
    kc, kd = jax.random.split(key)
    B, S = 2, 8
    coords = jax.random.normal(kc, (B, S, 3), jnp.float32) * 2.0     # [2, 8, 3]
    viewdirs = jax.random.normal(kd, (B, 3), jnp.float32)
    viewdirs = viewdirs / jnp.linalg.norm(viewdirs, axis=-1, keepdims=True)

    params = init_params(jax.random.PRNGKey(1))

    out = mlp_forward(params, coords, viewdirs)
    jax.block_until_ready(out["density"])
    jax.block_until_ready(out["rgb"])

    assert out["density"].shape == (B, S)
    assert out["rgb"].shape == (B, S, 3)
    assert bool(jnp.all(jnp.isfinite(out["density"])))
    assert bool(jnp.all(jnp.isfinite(out["rgb"])))
    print("KERNEL_OK")
</pallas_src>

<mosaic_0001>
module attributes {stable_mosaic.version = 11 : i64} {
  func.func @kernel(%arg0: i32, %arg1: memref<256x128xbf16, #tpu.memory_space<vmem>>, %arg2: memref<128x128xbf16, #tpu.memory_space<vmem>>, %arg3: memref<4x128x128xbf16, #tpu.memory_space<vmem>>, %arg4: memref<5x128xf32, #tpu.memory_space<vmem>>, %arg5: memref<128x64xbf16, #tpu.memory_space<vmem>>, %arg6: memref<1x64xf32, #tpu.memory_space<vmem>>, %arg7: memref<64x256xbf16, #tpu.memory_space<vmem>>, %arg8: memref<1x64xbf16, #tpu.memory_space<vmem>>, %arg9: memref<256x256xbf16, #tpu.memory_space<vmem>>, %arg10: memref<128x256xbf16, #tpu.memory_space<vmem>>, %arg11: memref<256x256xbf16, #tpu.memory_space<vmem>>, %arg12: memref<256x256xbf16, #tpu.memory_space<vmem>>, %arg13: memref<128x256xbf16, #tpu.memory_space<vmem>>, %arg14: memref<3x256xf32, #tpu.memory_space<vmem>>, %arg15: memref<4x256xbf16, #tpu.memory_space<vmem>>, %arg16: memref<4x1xf32, #tpu.memory_space<vmem>>, %arg17: memref<4x256xf32, #tpu.memory_space<vmem>>) attributes {dimension_semantics = [#tpu.dimension_semantics<parallel>], iteration_bounds = array<i64: 1>, scalar_prefetch = 0 : i64, scratch_operands = 0 : i64, tpu.core_type = #tpu.core_type<tc>, window_params = [{transform_indices = @transform_0, window_bounds = array<i64: 256, 128>}, {pipeline_mode = #tpu.pipeline_mode<synchronous>, transform_indices = @transform_1, window_bounds = array<i64: 128, 128>}, {pipeline_mode = #tpu.pipeline_mode<synchronous>, transform_indices = @transform_2, window_bounds = array<i64: 4, 128, 128>}, {pipeline_mode = #tpu.pipeline_mode<synchronous>, transform_indices = @transform_3, window_bounds = array<i64: 5, 128>}, {pipeline_mode = #tpu.pipeline_mode<synchronous>, transform_indices = @transform_4, window_bounds = array<i64: 128, 64>}, {pipeline_mode = #tpu.pipeline_mode<synchronous>, transform_indices = @transform_5, window_bounds = array<i64: 1, 64>}, {pipeline_mode = #tpu.pipeline_mode<synchronous>, transform_indices = @transform_6, window_bounds = array<i64: 64, 256>}, {pipeline_mode = #tpu.pipeline_mode<synchronous>, transform_indices = @transform_7, window_bounds = array<i64: 1, 64>}, {pipeline_mode = #tpu.pipeline_mode<synchronous>, transform_indices = @transform_8, window_bounds = array<i64: 256, 256>}, {pipeline_mode = #tpu.pipeline_mode<synchronous>, transform_indices = @transform_9, window_bounds = array<i64: 128, 256>}, {pipeline_mode = #tpu.pipeline_mode<synchronous>, transform_indices = @transform_10, window_bounds = array<i64: 256, 256>}, {pipeline_mode = #tpu.pipeline_mode<synchronous>, transform_indices = @transform_11, window_bounds = array<i64: 256, 256>}, {pipeline_mode = #tpu.pipeline_mode<synchronous>, transform_indices = @transform_12, window_bounds = array<i64: 128, 256>}, {pipeline_mode = #tpu.pipeline_mode<synchronous>, transform_indices = @transform_13, window_bounds = array<i64: 3, 256>}, {pipeline_mode = #tpu.pipeline_mode<synchronous>, transform_indices = @transform_14, window_bounds = array<i64: 4, 256>}, {pipeline_mode = #tpu.pipeline_mode<synchronous>, transform_indices = @transform_15, window_bounds = array<i64: 4, 1>}, {transform_indices = @transform_16, window_bounds = array<i64: 4, 256>}]} {
    %c0 = arith.constant 0 : index
    %c0_0 = arith.constant 0 : index
    %0 = vector.load %arg1[%c0, %c0_0] : memref<256x128xbf16, #tpu.memory_space<vmem>>, vector<256x128xbf16>
    %c0_1 = arith.constant 0 : index
    %c0_2 = arith.constant 0 : index
    %1 = vector.load %arg2[%c0_1, %c0_2] : memref<128x128xbf16, #tpu.memory_space<vmem>>, vector<128x128xbf16>
    %cst = arith.constant dense<0.000000e+00> : vector<256x128xf32>
    %2 = tpu.matmul %0, %1, %cst {dimension_numbers = #tpu.dot_dimension_numbers<[1], [0], [0], [1], [0, 0, 1, 1], [], []>} : vector<256x128xbf16>, vector<128x128xbf16>, vector<256x128xf32> -> vector<256x128xf32>
    %3 = arith.truncf %2 : vector<256x128xf32> to vector<256x128xbf16>
    %c0_3 = arith.constant 0 : index
    %c0_4 = arith.constant 0 : index
    %4 = vector.load %arg4[%c0_3, %c0_4] : memref<5x128xf32, #tpu.memory_space<vmem>>, vector<1x128xf32>
    %5 = arith.truncf %4 : vector<1x128xf32> to vector<1x128xbf16>
    %6 = vector.broadcast %5 : vector<1x128xbf16> to vector<256x128xbf16>
    %7 = arith.addf %3, %6 : vector<256x128xbf16>
    %cst_5 = arith.constant 0.000000e+00 : bf16
    %8 = vector.broadcast %cst_5 : bf16 to vector<256x128xbf16>
    %9 = arith.maximumf %7, %8 : vector<256x128xbf16>
    %c0_6 = arith.constant 0 : index
    %c0_7 = arith.constant 0 : index
    %c0_8 = arith.constant 0 : index
    %10 = vector.load %arg3[%c0_6, %c0_7, %c0_8] : memref<4x128x128xbf16, #tpu.memory_space<vmem>>, vector<1x128x128xbf16>
    %11 = vector.shape_cast %10 : vector<1x128x128xbf16> to vector<128x128xbf16>
    %cst_9 = arith.constant dense<0.000000e+00> : vector<256x128xf32>
    %12 = tpu.matmul %9, %11, %cst_9 {dimension_numbers = #tpu.dot_dimension_numbers<[1], [0], [0], [1], [0, 0, 1, 1], [], []>} : vector<256x128xbf16>, vector<128x128xbf16>, vector<256x128xf32> -> vector<256x128xf32>
    %13 = arith.truncf %12 : vector<256x128xf32> to vector<256x128xbf16>
    %c1 = arith.constant 1 : index
    %c0_10 = arith.constant 0 : index
    %14 = vector.load %arg4[%c1, %c0_10] : memref<5x128xf32, #tpu.memory_space<vmem>>, vector<1x128xf32>
    %15 = arith.truncf %14 : vector<1x128xf32> to vector<1x128xbf16>
    %16 = vector.broadcast %15 : vector<1x128xbf16> to vector<256x128xbf16>
    %17 = arith.addf %13, %16 : vector<256x128xbf16>
    %cst_11 = arith.constant 0.000000e+00 : bf16
    %18 = vector.broadcast %cst_11 : bf16 to vector<256x128xbf16>
    %19 = arith.maximumf %17, %18 : vector<256x128xbf16>
    %c1_12 = arith.constant 1 : index
    %c0_13 = arith.constant 0 : index
    %c0_14 = arith.constant 0 : index
    %20 = vector.load %arg3[%c1_12, %c0_13, %c0_14] : memref<4x128x128xbf16, #tpu.memory_space<vmem>>, vector<1x128x128xbf16>
    %21 = vector.shape_cast %20 : vector<1x128x128xbf16> to vector<128x128xbf16>
    %cst_15 = arith.constant dense<0.000000e+00> : vector<256x128xf32>
    %22 = tpu.matmul %19, %21, %cst_15 {dimension_numbers = #tpu.dot_dimension_numbers<[1], [0], [0], [1], [0, 0, 1, 1], [], []>} : vector<256x128xbf16>, vector<128x128xbf16>, vector<256x128xf32> -> vector<256x128xf32>
    %23 = arith.truncf %22 : vector<256x128xf32> to vector<256x128xbf16>
    %c2 = arith.constant 2 : index
    %c0_16 = arith.constant 0 : index
    %24 = vector.load %arg4[%c2, %c0_16] : memref<5x128xf32, #tpu.memory_space<vmem>>, vector<1x128xf32>
    %25 = arith.truncf %24 : vector<1x128xf32> to vector<1x128xbf16>
    %26 = vector.broadcast %25 : vector<1x128xbf16> to vector<256x128xbf16>
    %27 = arith.addf %23, %26 : vector<256x128xbf16>
    %cst_17 = arith.constant 0.000000e+00 : bf16
    %28 = vector.broadcast %cst_17 : bf16 to vector<256x128xbf16>
    %29 = arith.maximumf %27, %28 : vector<256x128xbf16>
    %c2_18 = arith.constant 2 : index
    %c0_19 = arith.constant 0 : index
    %c0_20 = arith.constant 0 : index
    %30 = vector.load %arg3[%c2_18, %c0_19, %c0_20] : memref<4x128x128xbf16, #tpu.memory_space<vmem>>, vector<1x128x128xbf16>
    %31 = vector.shape_cast %30 : vector<1x128x128xbf16> to vector<128x128xbf16>
    %cst_21 = arith.constant dense<0.000000e+00> : vector<256x128xf32>
    %32 = tpu.matmul %29, %31, %cst_21 {dimension_numbers = #tpu.dot_dimension_numbers<[1], [0], [0], [1], [0, 0, 1, 1], [], []>} : vector<256x128xbf16>, vector<128x128xbf16>, vector<256x128xf32> -> vector<256x128xf32>
    %33 = arith.truncf %32 : vector<256x128xf32> to vector<256x128xbf16>
    %c3 = arith.constant 3 : index
    %c0_22 = arith.constant 0 : index
    %34 = vector.load %arg4[%c3, %c0_22] : memref<5x128xf32, #tpu.memory_space<vmem>>, vector<1x128xf32>
    %35 = arith.truncf %34 : vector<1x128xf32> to vector<1x128xbf16>
    %36 = vector.broadcast %35 : vector<1x128xbf16> to vector<256x128xbf16>
    %37 = arith.addf %33, %36 : vector<256x128xbf16>
    %cst_23 = arith.constant 0.000000e+00 : bf16
    %38 = vector.broadcast %cst_23 : bf16 to vector<256x128xbf16>
    %39 = arith.maximumf %37, %38 : vector<256x128xbf16>
    %c3_24 = arith.constant 3 : index
    %c0_25 = arith.constant 0 : index
    %c0_26 = arith.constant 0 : index
    %40 = vector.load %arg3[%c3_24, %c0_25, %c0_26] : memref<4x128x128xbf16, #tpu.memory_space<vmem>>, vector<1x128x128xbf16>
    %41 = vector.shape_cast %40 : vector<1x128x128xbf16> to vector<128x128xbf16>
    %cst_27 = arith.constant dense<0.000000e+00> : vector<256x128xf32>
    %42 = tpu.matmul %39, %41, %cst_27 {dimension_numbers = #tpu.dot_dimension_numbers<[1], [0], [0], [1], [0, 0, 1, 1], [], []>} : vector<256x128xbf16>, vector<128x128xbf16>, vector<256x128xf32> -> vector<256x128xf32>
    %43 = arith.truncf %42 : vector<256x128xf32> to vector<256x128xbf16>
    %c4 = arith.constant 4 : index
    %c0_28 = arith.constant 0 : index
    %44 = vector.load %arg4[%c4, %c0_28] : memref<5x128xf32, #tpu.memory_space<vmem>>, vector<1x128xf32>
    %45 = arith.truncf %44 : vector<1x128xf32> to vector<1x128xbf16>
    %46 = vector.broadcast %45 : vector<1x128xbf16> to vector<256x128xbf16>
    %47 = arith.addf %43, %46 : vector<256x128xbf16>
    %c0_29 = arith.constant 0 : index
    %c0_30 = arith.constant 0 : index
    %48 = vector.load %arg5[%c0_29, %c0_30] : memref<128x64xbf16, #tpu.memory_space<vmem>>, vector<128x64xbf16>
    %cst_31 = arith.constant dense<0.000000e+00> : vector<256x64xf32>
    %49 = tpu.matmul %47, %48, %cst_31 {dimension_numbers = #tpu.dot_dimension_numbers<[1], [0], [0], [1], [0, 0, 1, 1], [], []>} : vector<256x128xbf16>, vector<128x64xbf16>, vector<256x64xf32> -> vector<256x64xf32>
    %50 = arith.truncf %49 : vector<256x64xf32> to vector<256x64xbf16>
    %c0_32 = arith.constant 0 : index
    %c0_33 = arith.constant 0 : index
    %51 = vector.load %arg6[%c0_32, %c0_33] : memref<1x64xf32, #tpu.memory_space<vmem>>, vector<1x64xf32>
    %52 = arith.truncf %51 : vector<1x64xf32> to vector<1x64xbf16>
    %53 = vector.broadcast %52 : vector<1x64xbf16> to vector<256x64xbf16>
    %54 = arith.addf %50, %53 : vector<256x64xbf16>
    %cst_34 = arith.constant 0.000000e+00 : bf16
    %55 = vector.broadcast %cst_34 : bf16 to vector<256x64xbf16>
    %56 = arith.maximumf %54, %55 : vector<256x64xbf16>
    %c0_35 = arith.constant 0 : index
    %c0_36 = arith.constant 0 : index
    %57 = vector.load %arg7[%c0_35, %c0_36] : memref<64x256xbf16, #tpu.memory_space<vmem>>, vector<64x256xbf16>
    %cst_37 = arith.constant dense<0.000000e+00> : vector<256x256xf32>
    %58 = tpu.matmul %56, %57, %cst_37 {dimension_numbers = #tpu.dot_dimension_numbers<[1], [0], [0], [1], [0, 0, 1, 1], [], []>} : vector<256x64xbf16>, vector<64x256xbf16>, vector<256x256xf32> -> vector<256x256xf32>
    %59 = arith.truncf %58 : vector<256x256xf32> to vector<256x256xbf16>
    %c0_38 = arith.constant 0 : index
    %c0_39 = arith.constant 0 : index
    %60 = vector.load %arg14[%c0_38, %c0_39] : memref<3x256xf32, #tpu.memory_space<vmem>>, vector<1x256xf32>
    %61 = arith.truncf %60 : vector<1x256xf32> to vector<1x256xbf16>
    %62 = vector.broadcast %61 : vector<1x256xbf16> to vector<256x256xbf16>
    %63 = arith.addf %59, %62 : vector<256x256xbf16>
    %c0_40 = arith.constant 0 : index
    %c0_41 = arith.constant 0 : index
    %64 = vector.load %arg8[%c0_40, %c0_41] : memref<1x64xbf16, #tpu.memory_space<vmem>>, vector<1x64xbf16>
    %cst_42 = arith.constant dense<0.000000e+00> : vector<1x256xf32>
    %65 = tpu.matmul %64, %56, %cst_42 {dimension_numbers = #tpu.dot_dimension_numbers<[1], [1], [0], [0], [0, 0, 1, 0], [], []>} : vector<1x64xbf16>, vector<256x64xbf16>, vector<1x256xf32> -> vector<1x256xf32>
    %c0_43 = arith.constant 0 : index
    %c0_44 = arith.constant 0 : index
    %66 = vector.load %arg14[%c0_43, %c0_44] : memref<3x256xf32, #tpu.memory_space<vmem>>, vector<1x1xf32>
    %67 = vector.broadcast %66 : vector<1x1xf32> to vector<1x256xf32>
    %68 = arith.addf %65, %67 : vector<1x256xf32>
    %cst_45 = arith.constant -1.000000e+00 : f32
    %69 = vector.broadcast %cst_45 : f32 to vector<1x256xf32>
    %70 = arith.addf %68, %69 : vector<1x256xf32>
    %cst_46 = arith.constant 0.000000e+00 : f32
    %71 = vector.broadcast %cst_46 : f32 to vector<1x256xf32>
    %72 = arith.maximumf %70, %71 : vector<1x256xf32>
    %73 = math.absf %70 : vector<1x256xf32>
    %cst_47 = arith.constant 0.000000e+00 : f32
    %74 = vector.broadcast %cst_47 : f32 to vector<1x256xf32>
    %75 = arith.subf %74, %73 : vector<1x256xf32>
    %76 = math.exp %75 : vector<1x256xf32>
    %cst_48 = arith.constant 1.000000e+00 : f32
    %77 = vector.broadcast %cst_48 : f32 to vector<1x256xf32>
    %78 = arith.addf %77, %76 : vector<1x256xf32>
    %79 = math.log %78 : vector<1x256xf32>
    %80 = arith.addf %72, %79 : vector<1x256xf32>
    %c0_49 = arith.constant 0 : index
    %c0_50 = arith.constant 0 : index
    %81 = vector.load %arg9[%c0_49, %c0_50] : memref<256x256xbf16, #tpu.memory_space<vmem>>, vector<256x256xbf16>
    %cst_51 = arith.constant dense<0.000000e+00> : vector<256x256xf32>
    %82 = tpu.matmul %63, %81, %cst_51 {dimension_numbers = #tpu.dot_dimension_numbers<[1], [0], [0], [1], [0, 0, 1, 1], [], []>} : vector<256x256xbf16>, vector<256x256xbf16>, vector<256x256xf32> -> vector<256x256xf32>
    %c0_52 = arith.constant 0 : index
    %c0_53 = arith.constant 0 : index
    %83 = vector.load %arg10[%c0_52, %c0_53] : memref<128x256xbf16, #tpu.memory_space<vmem>>, vector<128x256xbf16>
    %cst_54 = arith.constant dense<0.000000e+00> : vector<256x256xf32>
    %84 = tpu.matmul %0, %83, %cst_54 {dimension_numbers = #tpu.dot_dimension_numbers<[1], [0], [0], [1], [0, 0, 1, 1], [], []>} : vector<256x128xbf16>, vector<128x256xbf16>, vector<256x256xf32> -> vector<256x256xf32>
    %85 = arith.addf %82, %84 : vector<256x256xf32>
    %86 = arith.truncf %85 : vector<256x256xf32> to vector<256x256xbf16>
    %c1_55 = arith.constant 1 : index
    %c0_56 = arith.constant 0 : index
    %87 = vector.load %arg14[%c1_55, %c0_56] : memref<3x256xf32, #tpu.memory_space<vmem>>, vector<1x256xf32>
    %88 = arith.truncf %87 : vector<1x256xf32> to vector<1x256xbf16>
    %89 = vector.broadcast %88 : vector<1x256xbf16> to vector<256x256xbf16>
    %90 = arith.addf %86, %89 : vector<256x256xbf16>
    %cst_57 = arith.constant 0.000000e+00 : bf16
    %91 = vector.broadcast %cst_57 : bf16 to vector<256x256xbf16>
    %92 = arith.maximumf %90, %91 : vector<256x256xbf16>
    %c0_58 = arith.constant 0 : index
    %c0_59 = arith.constant 0 : index
    %93 = vector.load %arg11[%c0_58, %c0_59] : memref<256x256xbf16, #tpu.memory_space<vmem>>, vector<256x256xbf16>
    %cst_60 = arith.constant dense<0.000000e+00> : vector<256x256xf32>
    %94 = tpu.matmul %92, %93, %cst_60 {dimension_numbers = #tpu.dot_dimension_numbers<[1], [0], [0], [1], [0, 0, 1, 1], [], []>} : vector<256x256xbf16>, vector<256x256xbf16>, vector<256x256xf32> -> vector<256x256xf32>
    %c0_61 = arith.constant 0 : index
    %c0_62 = arith.constant 0 : index
    %95 = vector.load %arg12[%c0_61, %c0_62] : memref<256x256xbf16, #tpu.memory_space<vmem>>, vector<256x256xbf16>
    %cst_63 = arith.constant dense<0.000000e+00> : vector<256x256xf32>
    %96 = tpu.matmul %63, %95, %cst_63 {dimension_numbers = #tpu.dot_dimension_numbers<[1], [0], [0], [1], [0, 0, 1, 1], [], []>} : vector<256x256xbf16>, vector<256x256xbf16>, vector<256x256xf32> -> vector<256x256xf32>
    %97 = arith.addf %94, %96 : vector<256x256xf32>
    %c0_64 = arith.constant 0 : index
    %c0_65 = arith.constant 0 : index
    %98 = vector.load %arg13[%c0_64, %c0_65] : memref<128x256xbf16, #tpu.memory_space<vmem>>, vector<128x256xbf16>
    %cst_66 = arith.constant dense<0.000000e+00> : vector<256x256xf32>
    %99 = tpu.matmul %0, %98, %cst_66 {dimension_numbers = #tpu.dot_dimension_numbers<[1], [0], [0], [1], [0, 0, 1, 1], [], []>} : vector<256x128xbf16>, vector<128x256xbf16>, vector<256x256xf32> -> vector<256x256xf32>
    %100 = arith.addf %97, %99 : vector<256x256xf32>
    %101 = arith.truncf %100 : vector<256x256xf32> to vector<256x256xbf16>
    %c2_67 = arith.constant 2 : index
    %c0_68 = arith.constant 0 : index
    %102 = vector.load %arg14[%c2_67, %c0_68] : memref<3x256xf32, #tpu.memory_space<vmem>>, vector<1x256xf32>
    %103 = arith.truncf %102 : vector<1x256xf32> to vector<1x256xbf16>
    %104 = vector.broadcast %103 : vector<1x256xbf16> to vector<256x256xbf16>
    %105 = arith.addf %101, %104 : vector<256x256xbf16>
    %cst_69 = arith.constant 0.000000e+00 : bf16
    %106 = vector.broadcast %cst_69 : bf16 to vector<256x256xbf16>
    %107 = arith.maximumf %105, %106 : vector<256x256xbf16>
    %c0_70 = arith.constant 0 : index
    %c0_71 = arith.constant 0 : index
    %108 = vector.load %arg15[%c0_70, %c0_71] : memref<4x256xbf16, #tpu.memory_space<vmem>>, vector<4x256xbf16>
    %cst_72 = arith.constant dense<0.000000e+00> : vector<4x256xf32>
    %109 = tpu.matmul %108, %107, %cst_72 {dimension_numbers = #tpu.dot_dimension_numbers<[1], [1], [0], [0], [0, 0, 1, 0], [], []>} : vector<4x256xbf16>, vector<256x256xbf16>, vector<4x256xf32> -> vector<4x256xf32>
    %c0_73 = arith.constant 0 : index
    %c0_74 = arith.constant 0 : index
    %110 = vector.load %arg16[%c0_73, %c0_74] : memref<4x1xf32, #tpu.memory_space<vmem>>, vector<4x1xf32>
    %111 = vector.broadcast %110 : vector<4x1xf32> to vector<4x256xf32>
    %112 = arith.addf %109, %111 : vector<4x256xf32>
    %cst_75 = arith.constant 1.000000e+00 : f32
    %113 = vector.broadcast %cst_75 : f32 to vector<4x256xf32>
    %114 = arith.mulf %113, %112 : vector<4x256xf32>
    %cst_76 = arith.constant 0.000000e+00 : f32
    %115 = vector.broadcast %cst_76 : f32 to vector<4x256xf32>
    %116 = arith.addf %114, %115 : vector<4x256xf32>
    %cst_77 = arith.constant 0.000000e+00 : f32
    %117 = vector.broadcast %cst_77 : f32 to vector<4x256xf32>
    %118 = arith.subf %117, %116 : vector<4x256xf32>
    %119 = math.exp %118 : vector<4x256xf32>
    %cst_78 = arith.constant 1.000000e+00 : f32
    %120 = vector.broadcast %cst_78 : f32 to vector<4x256xf32>
    %121 = arith.addf %120, %119 : vector<4x256xf32>
    %cst_79 = arith.constant 1.000000e+00 : f32
    %122 = vector.broadcast %cst_79 : f32 to vector<4x256xf32>
    %123 = arith.divf %122, %121 : vector<4x256xf32>
    %cst_80 = arith.constant 1.002000e+00 : f32
    %124 = vector.broadcast %cst_80 : f32 to vector<4x256xf32>
    %125 = arith.mulf %123, %124 : vector<4x256xf32>
    %cst_81 = arith.constant 1.000000e-03 : f32
    %126 = vector.broadcast %cst_81 : f32 to vector<4x256xf32>
    %127 = arith.subf %125, %126 : vector<4x256xf32>
    %128 = tpu.iota {dimensions = array<i32: 0>} : vector<4x256xi32>
    %c0_i32 = arith.constant 0 : i32
    %129 = vector.broadcast %c0_i32 : i32 to vector<4x256xi32>
    %130 = arith.cmpi eq, %128, %129 : vector<4x256xi32>
    %131 = vector.shape_cast %80 : vector<1x256xf32> to vector<1x256xf32>
    %132 = vector.broadcast %131 : vector<1x256xf32> to vector<4x256xf32>
    %133 = arith.select %130, %132, %127 : vector<4x256xi1>, vector<4x256xf32>
    %c0_82 = arith.constant 0 : index
    %c0_83 = arith.constant 0 : index
    %134 = vector.load %arg17[%c0_82, %c0_83] : memref<4x256xf32, #tpu.memory_space<vmem>>, vector<4x256xf32>
    tpu.vector_store %arg17[%c0_82, %c0_83], %133 {strides = array<i32>} : memref<4x256xf32, #tpu.memory_space<vmem>>, vector<4x256xf32>,
    return
  }
  func.func @transform_0(%arg0: i32) -> (i32, i32) {
    %c0_i32 = arith.constant 0 : i32
    %c0_i32_0 = arith.constant 0 : i32
    return %arg0, %c0_i32 : i32, i32
  }
  func.func @transform_1(%arg0: i32) -> (i32, i32) {
    %c0_i32 = arith.constant 0 : i32
    %c0_i32_0 = arith.constant 0 : i32
    %c0_i32_1 = arith.constant 0 : i32
    return %c0_i32, %c0_i32_0 : i32, i32
  }
  func.func @transform_2(%arg0: i32) -> (i32, i32, i32) {
    %c0_i32 = arith.constant 0 : i32
    %c0_i32_0 = arith.constant 0 : i32
    %c0_i32_1 = arith.constant 0 : i32
    %c0_i32_2 = arith.constant 0 : i32
    return %c0_i32, %c0_i32_0, %c0_i32_1 : i32, i32, i32
  }
  func.func @transform_3(%arg0: i32) -> (i32, i32) {
    %c0_i32 = arith.constant 0 : i32
    %c0_i32_0 = arith.constant 0 : i32
    %c0_i32_1 = arith.constant 0 : i32
    return %c0_i32, %c0_i32_0 : i32, i32
  }
  func.func @transform_4(%arg0: i32) -> (i32, i32) {
    %c0_i32 = arith.constant 0 : i32
    %c0_i32_0 = arith.constant 0 : i32
    %c0_i32_1 = arith.constant 0 : i32
    return %c0_i32, %c0_i32_0 : i32, i32
  }
  func.func @transform_5(%arg0: i32) -> (i32, i32) {
    %c0_i32 = arith.constant 0 : i32
    %c0_i32_0 = arith.constant 0 : i32
    %c0_i32_1 = arith.constant 0 : i32
    return %c0_i32, %c0_i32_0 : i32, i32
  }
  func.func @transform_6(%arg0: i32) -> (i32, i32) {
    %c0_i32 = arith.constant 0 : i32
    %c0_i32_0 = arith.constant 0 : i32
    %c0_i32_1 = arith.constant 0 : i32
    return %c0_i32, %c0_i32_0 : i32, i32
  }
  func.func @transform_7(%arg0: i32) -> (i32, i32) {
    %c0_i32 = arith.constant 0 : i32
    %c0_i32_0 = arith.constant 0 : i32
    %c0_i32_1 = arith.constant 0 : i32
    return %c0_i32, %c0_i32_0 : i32, i32
  }
  func.func @transform_8(%arg0: i32) -> (i32, i32) {
    %c0_i32 = arith.constant 0 : i32
    %c0_i32_0 = arith.constant 0 : i32
    %c0_i32_1 = arith.constant 0 : i32
    return %c0_i32, %c0_i32_0 : i32, i32
  }
  func.func @transform_9(%arg0: i32) -> (i32, i32) {
    %c0_i32 = arith.constant 0 : i32
    %c0_i32_0 = arith.constant 0 : i32
    %c0_i32_1 = arith.constant 0 : i32
    return %c0_i32, %c0_i32_0 : i32, i32
  }
  func.func @transform_10(%arg0: i32) -> (i32, i32) {
    %c0_i32 = arith.constant 0 : i32
    %c0_i32_0 = arith.constant 0 : i32
    %c0_i32_1 = arith.constant 0 : i32
    return %c0_i32, %c0_i32_0 : i32, i32
  }
  func.func @transform_11(%arg0: i32) -> (i32, i32) {
    %c0_i32 = arith.constant 0 : i32
    %c0_i32_0 = arith.constant 0 : i32
    %c0_i32_1 = arith.constant 0 : i32
    return %c0_i32, %c0_i32_0 : i32, i32
  }
  func.func @transform_12(%arg0: i32) -> (i32, i32) {
    %c0_i32 = arith.constant 0 : i32
    %c0_i32_0 = arith.constant 0 : i32
    %c0_i32_1 = arith.constant 0 : i32
    return %c0_i32, %c0_i32_0 : i32, i32
  }
  func.func @transform_13(%arg0: i32) -> (i32, i32) {
    %c0_i32 = arith.constant 0 : i32
    %c0_i32_0 = arith.constant 0 : i32
    %c0_i32_1 = arith.constant 0 : i32
    return %c0_i32, %c0_i32_0 : i32, i32
  }
  func.func @transform_14(%arg0: i32) -> (i32, i32) {
    %c0_i32 = arith.constant 0 : i32
    %c0_i32_0 = arith.constant 0 : i32
    %c0_i32_1 = arith.constant 0 : i32
    return %c0_i32, %c0_i32_0 : i32, i32
  }
  func.func @transform_15(%arg0: i32) -> (i32, i32) {
    %c0_i32 = arith.constant 0 : i32
    %c0_i32_0 = arith.constant 0 : i32
    %c0_i32_1 = arith.constant 0 : i32
    return %c0_i32, %c0_i32_0 : i32, i32
  }
  func.func @transform_16(%arg0: i32) -> (i32, i32) {
    %c0_i32 = arith.constant 0 : i32
    %c0_i32_0 = arith.constant 0 : i32
    return %c0_i32, %arg0 : i32, i32
  }
}

</mosaic_0001>

<bundles_post_ra>
// kernel: tpu_custom_call.1
= control target key start
LH: loop header
LB: loop body
LE: loop exit
PB: predicated region body
PF: predicated region fallthrough
CT: control target
= control target key end

     0   :  { %s7372_s0 = inlined_call_operand.hbm [shape: bf16[256,128], index: 0, kind: input, shape index: {}]   ;;  %s7373_s1 = inlined_call_operand.hbm [shape: bf16[128,128], index: 1, kind: input, shape index: {}]   ;;  %s7374_s2 = inlined_call_operand.hbm [shape: bf16[4,128,128], index: 2, kind: input, shape index: {}]   ;;  %s7375_s3 = inlined_call_operand.hbm [shape: f32[5,128], index: 3, kind: input, shape index: {}]   ;;  %s7376_s4 = inlined_call_operand.hbm [shape: bf16[128,64], index: 4, kind: input, shape index: {}]   ;;  %s7377_s5 = inlined_call_operand.hbm [shape: f32[1,64], index: 5, kind: input, shape index: {}]   ;;  %s7378_s6 = inlined_call_operand.hbm [shape: bf16[64,256], index: 6, kind: input, shape index: {}]   ;;  %s7379_s7 = inlined_call_operand.hbm [shape: bf16[1,64], index: 7, kind: input, shape index: {}]   ;;  %s7380_s8 = inlined_call_operand.hbm [shape: bf16[256,256], index: 8, kind: input, shape index: {}]   ;;  %s7381_s9 = inlined_call_operand.hbm [shape: bf16[128,256], index: 9, kind: input, shape index: {}]   ;;  %s7382_s10 = inlined_call_operand.hbm [shape: bf16[256,256], index: 10, kind: input, shape index: {}]   ;;  %s7383_s11 = inlined_call_operand.hbm [shape: bf16[256,256], index: 11, kind: input, shape index: {}]   ;;  %s7384_s12 = inlined_call_operand.hbm [shape: bf16[128,256], index: 12, kind: input, shape index: {}]   ;;  %s7385_s13 = inlined_call_operand.hbm [shape: f32[3,256], index: 13, kind: input, shape index: {}]   ;;  %s7386_s14 = inlined_call_operand.hbm [shape: bf16[4,256], index: 14, kind: input, shape index: {}]   ;;  %s7387_s15 = inlined_call_operand.hbm [shape: f32[4,1], index: 15, kind: input, shape index: {}]   ;;  %s7388_s16 = inlined_call_operand.hbm [shape: f32[4,256], index: 16, kind: output, shape index: {}]  }
   0x1   :  { %7390 = sst [smem:[#allocation39_spill]] %s7372_s0 }
   0x2   :  { %21 = vsyncpa [#allocation3], 0 }
   0x3   :  { %22 = vsyncpa [#allocation6], 0 }
   0x4   :  { %23 = vsyncpa [#allocation9], 0 }
   0x5   :  { %24 = vsyncpa [#allocation12], 0 }
   0x6   :  { %25 = vsyncpa [#allocation15], 0 }
   0x7   :  { %26 = vsyncpa [#allocation18], 0 }
   0x8   :  { %27 = vsyncpa [#allocation21], 0 }
   0x9   :  { %28 = vsyncpa [#allocation24], 0 }
   0xa   :  { %29 = vsyncpa [#allocation27], 0 }
   0xb   :  { %30 = vsyncpa [#allocation4], 0  ;;  %s6310_s21 = smov [#allocation5]   ;;  %s6311_s23 = smov [#allocation8]  }
   0xc   :  { %s48_s22 = sshll.u32 %s6310_s21, 4  ;;  %s73_s24 = sshll.u32 %s6311_s23, 4  ;;  %s49_s22 = int_to_ptr.vmem [resolvable:$true] %s48_s22  ;;  %s74_s24 = int_to_ptr.vmem [resolvable:$true] %s73_s24 }
   0xd   :  { %s5916_s27 = scalar_lea.hbm %s7373_s1, 1024 }
   0xe   :  { %p5917_p0 = scmp.ne.s32.totalorder %s7373_s1, %s5916_s27  ;;  %p5920_p1 = scmp.lt.u32.totalorder %s5916_s27, %s7373_s1 }
  0x10   :  { %p5922_p2 = pnand %p5920_p1, %p5917_p0 }
  0x12   :  { %5925 = shalt.err (!%p5922_p2)
}
  0x13   :  { %s5926_s17 = scalar_lea.vmem %s49_s22, 1024  ;;  %p5931_p4 = scmp.lt.s32.totalorder %s49_s22, %s49_s22 }
  0x14   :  { %p5927_p3 = scmp.ne.s32.totalorder %s49_s22, %s5926_s17  ;;  %p5932_p5 = scmp.lt.s32.totalorder %s5926_s17, %s5926_s17 }
  0x16   :  { %p5933_p6 = por %p5932_p5, %p5931_p4 }
  0x18   :  { %p5934_p7 = pnand %p5933_p6, %p5927_p3 }
  0x1a   :  { %5937 = shalt.err (!%p5934_p7)
}
  0x1b   :  { %s6312_s18 = smov 64   ;;  %s6313_s19 = smov 4  }
  0x1c   :  { %54 = dma.hbm_to_vmem [thread:$0]  %s7373_s1, 1024, %s49_s22, [#allocation6], %s6312_s18, %s6312_s18, %s6313_s19  }
  0x1d   :  { %s5938_s26 = scalar_lea.hbm %s7375_s3, 128 }
  0x1e   :  { %p5939_p8 = scmp.ne.s32.totalorder %s7375_s3, %s5938_s26  ;;  %p5942_p9 = scmp.lt.u32.totalorder %s5938_s26, %s7375_s3 }
  0x20   :  { %p5944_p10 = pnand %p5942_p9, %p5939_p8 }
  0x22   :  { %5947 = shalt.err (!%p5944_p10)
}
  0x23   :  { %s5948_s0 = scalar_lea.vmem %s74_s24, 128  ;;  %p5953_p12 = scmp.lt.s32.totalorder %s74_s24, %s74_s24 }
  0x24   :  { %p5949_p11 = scmp.ne.s32.totalorder %s74_s24, %s5948_s0  ;;  %p5954_p13 = scmp.lt.s32.totalorder %s5948_s0, %s5948_s0 }
  0x26   :  { %p5955_p0 = por %p5954_p13, %p5953_p12 }
  0x28   :  { %p5956_p1 = pnand %p5955_p0, %p5949_p11 }
  0x2a   :  { %5959 = shalt.err (!%p5956_p1)
}
  0x2b   :  { %76 = dma.hbm_to_vmem [thread:$0]  %s7375_s3, 128, %s74_s24, [#allocation9]  }
  0x2c   :  { %s6314_s17 = smov [#allocation11]   ;;  %s6315_s21 = smov [#allocation14]  }
  0x2d   :  { %s95_s20 = sshll.u32 %s6314_s17, 4  ;;  %s117_s23 = sshll.u32 %s6315_s21, 4  ;;  %s96_s20 = int_to_ptr.vmem [resolvable:$true] %s95_s20  ;;  %s118_s23 = int_to_ptr.vmem [resolvable:$true] %s117_s23 }
  0x2e   :  { %s5960_s27 = scalar_lea.hbm %s7377_s5, 16 }
  0x2f   :  { %p5961_p2 = scmp.ne.s32.totalorder %s7377_s5, %s5960_s27  ;;  %p5964_p3 = scmp.lt.u32.totalorder %s5960_s27, %s7377_s5 }
  0x31   :  { %p5966_p4 = pnand %p5964_p3, %p5961_p2 }
  0x33   :  { %5969 = shalt.err (!%p5966_p4)
}
  0x34   :  { %s5970_s3 = scalar_lea.vmem %s96_s20, 16  ;;  %s5974_s24 = scalar_lea.vmem %s96_s20, 32 }
  0x35   :  { %p5971_p5 = scmp.ne.s32.totalorder %s96_s20, %s5970_s3  ;;  %p5975_p6 = scmp.lt.s32.totalorder %s96_s20, %s96_s20 }
  0x36   :  { %p5976_p7 = scmp.lt.s32.totalorder %s5974_s24, %s5970_s3 }
  0x38   :  { %p5977_p8 = por %p5976_p7, %p5975_p6 }
  0x3a   :  { %p5978_p9 = pnand %p5977_p8, %p5971_p5 }
  0x3c   :  { %5981 = shalt.err (!%p5978_p9)
}
  0x3d   :  { %98 = dma.hbm_to_vmem [thread:$0]  %s7377_s5, 16, %s96_s20, [#allocation12]  }
  0x3e   :  { %s5982_s25 = scalar_lea.hbm %s7379_s7, 16 }
  0x3f   :  { %p5983_p10 = scmp.ne.s32.totalorder %s7379_s7, %s5982_s25  ;;  %p5986_p11 = scmp.lt.u32.totalorder %s5982_s25, %s7379_s7 }
  0x41   :  { %p5988_p12 = pnand %p5986_p11, %p5983_p10 }
  0x43   :  { %5991 = shalt.err (!%p5988_p12)
}
  0x44   :  { %s5992_s30 = scalar_lea.vmem %s118_s23, 16  ;;  %s5996_s0 = scalar_lea.vmem %s118_s23, 32 }
  0x45   :  { %p5993_p13 = scmp.ne.s32.totalorder %s118_s23, %s5992_s30  ;;  %p5997_p0 = scmp.lt.s32.totalorder %s118_s23, %s118_s23 }
  0x46   :  { %p5998_p1 = scmp.lt.s32.totalorder %s5996_s0, %s5992_s30 }
  0x48   :  { %p5999_p2 = por %p5998_p1, %p5997_p0 }
  0x4a   :  { %p6000_p3 = pnand %p5999_p2, %p5993_p13 }
  0x4c   :  { %6003 = shalt.err (!%p6000_p3)
}
  0x4d   :  { %120 = dma.hbm_to_vmem [thread:$0]  %s7379_s7, 16, %s118_s23, [#allocation15]  }
  0x4e   :  { %s6316_s3 = smov [#allocation17]   ;;  %s6317_s1 = smov [#allocation20]  }
  0x4f   :  { %s138_s24 = sshll.u32 %s6316_s3, 4  ;;  %s162_s22 = sshll.u32 %s6317_s1, 4  ;;  %s139_s24 = int_to_ptr.vmem [resolvable:$true] %s138_s24  ;;  %s6469_s22 = int_to_ptr.vmem [resolvable:$true] %s162_s22 }
  0x50   :  { %s6004_s25 = scalar_lea.hbm %s7381_s9, 2048 }
  0x51   :  { %p6005_p4 = scmp.ne.s32.totalorder %s7381_s9, %s6004_s25  ;;  %p6008_p5 = scmp.lt.u32.totalorder %s6004_s25, %s7381_s9 }
  0x53   :  { %p6010_p6 = pnand %p6008_p5, %p6005_p4 }
  0x55   :  { %6013 = shalt.err (!%p6010_p6)
}
  0x56   :  { %s6014_s7 = scalar_lea.vmem %s139_s24, 2048  ;;  %p6019_p8 = scmp.lt.s32.totalorder %s139_s24, %s139_s24 }
  0x57   :  { %p6015_p7 = scmp.ne.s32.totalorder %s139_s24, %s6014_s7  ;;  %p6020_p9 = scmp.lt.s32.totalorder %s6014_s7, %s6014_s7 }
  0x59   :  { %p6021_p10 = por %p6020_p9, %p6019_p8 }
  0x5b   :  { %p6022_p11 = pnand %p6021_p10, %p6015_p7 }
  0x5d   :  { %6025 = shalt.err (!%p6022_p11)
}
  0x5e   :  { %s6318_s23 = smov 128   ;;  %s6319_s30 = smov 8  }
  0x5f   :  { %144 = dma.hbm_to_vmem [thread:$0]  %s7381_s9, 2048, %s139_s24, [#allocation18], %s6318_s23, %s6318_s23, %s6319_s30  }
  0x60   :  { %s6026_s1 = scalar_lea.hbm %s7383_s11, 4096 }
  0x61   :  { %p6027_p12 = scmp.ne.s32.totalorder %s7383_s11, %s6026_s1  ;;  %p6030_p13 = scmp.lt.u32.totalorder %s6026_s1, %s7383_s11 }
  0x63   :  { %p6032_p0 = pnand %p6030_p13, %p6027_p12 }
  0x65   :  { %6035 = shalt.err (!%p6032_p0)
}
  0x66   :  { %s6036_s27 = scalar_lea.vmem %s6469_s22, 4096  ;;  %p6041_p2 = scmp.lt.s32.totalorder %s6469_s22, %s6469_s22 }
  0x67   :  { %p6037_p1 = scmp.ne.s32.totalorder %s6469_s22, %s6036_s27  ;;  %p6042_p3 = scmp.lt.s32.totalorder %s6036_s27, %s6036_s27 }
  0x69   :  { %p6043_p4 = por %p6042_p3, %p6041_p2 }
  0x6b   :  { %p6044_p5 = pnand %p6043_p4, %p6037_p1 }
  0x6d   :  { %6047 = shalt.err (!%p6044_p5)
}
  0x6e   :  { %168 = dma.hbm_to_vmem [thread:$0]  %s7383_s11, 4096, %s6469_s22, [#allocation21], %s6318_s23, %s6318_s23, %s6319_s30  }
  0x6f   :  { %s6320_s28 = smov [#allocation23]   ;;  %s6321_s7 = smov [#allocation2]  }
  0x70   :  { %s187_s29 = sshll.u32 %s6320_s28, 4  ;;  %s36_s0 = sshll.u32 %s6321_s7, 4  ;;  %s188_s29 = int_to_ptr.vmem [resolvable:$true] %s187_s29  ;;  %s6506_s0 = int_to_ptr.vmem [resolvable:$true] %s36_s0 }
  0x71   :  { %s6048_s3 = scalar_lea.hbm %s7385_s13, 128 }
  0x72   :  { %p6049_p6 = scmp.ne.s32.totalorder %s7385_s13, %s6048_s3  ;;  %p6052_p7 = scmp.lt.u32.totalorder %s6048_s3, %s7385_s13 }
  0x74   :  { %p6054_p8 = pnand %p6052_p7, %p6049_p6 }
  0x76   :  { %6057 = shalt.err (!%p6054_p8)
}
  0x77   :  { %s6058_s11 = scalar_lea.vmem %s188_s29, 128  ;;  %p6063_p10 = scmp.lt.s32.totalorder %s188_s29, %s188_s29 }
  0x78   :  { %p6059_p9 = scmp.ne.s32.totalorder %s188_s29, %s6058_s11  ;;  %p6064_p11 = scmp.lt.s32.totalorder %s6058_s11, %s6058_s11 }
  0x7a   :  { %p6065_p12 = por %p6064_p11, %p6063_p10 }
  0x7c   :  { %p6066_p13 = pnand %p6065_p12, %p6059_p9 }
  0x7e   :  { %6069 = shalt.err (!%p6066_p13)
}
  0x7f   :  { %190 = dma.hbm_to_vmem [thread:$0]  %s7385_s13, 128, %s188_s29, [#allocation24]  }
  0x80   :  { %s7391_s24 = sld [smem:[#allocation39_spill]] }
  0x86   :  { %s6070_s28 = scalar_lea.hbm %s7391_s24, 2048 }
  0x87   :  { %p6071_p0 = scmp.ne.s32.totalorder %s7391_s24, %s6070_s28  ;;  %p6074_p1 = scmp.lt.u32.totalorder %s6070_s28, %s7391_s24 }
  0x89   :  { %p6076_p2 = pnand %p6074_p1, %p6071_p0 }
  0x8b   :  { %6079 = shalt.err (!%p6076_p2)
}
  0x8c   :  { %s6080_s1 = scalar_lea.vmem %s6506_s0, 2048  ;;  %p6085_p4 = scmp.lt.s32.totalorder %s6506_s0, %s6506_s0 }
  0x8d   :  { %p6081_p3 = scmp.ne.s32.totalorder %s6506_s0, %s6080_s1  ;;  %p6086_p5 = scmp.lt.s32.totalorder %s6080_s1, %s6080_s1 }
  0x8f   :  { %p6087_p6 = por %p6086_p5, %p6085_p4 }
  0x91   :  { %p6088_p7 = pnand %p6087_p6, %p6081_p3 }
  0x93   :  { %6091 = shalt.err (!%p6088_p7)
}
  0x94   :  { %42 = dma.hbm_to_vmem [thread:$0]  %s7391_s24, 2048, %s6506_s0, [#allocation3], %s6312_s18, %s6312_s18, %s6313_s19  }
  0x95   :  { %s6322_s17 = smov [#allocation7]   ;;  %s6323_s25 = smov [#allocation10]  }
  0x96   :  { %s60_s21 = sshll.u32 %s6322_s17, 4  ;;  %s82_s11 = sshll.u32 %s6323_s25, 4  ;;  %s61_s21 = int_to_ptr.vmem [resolvable:$true] %s60_s21  ;;  %s6540_s11 = int_to_ptr.vmem [resolvable:$true] %s82_s11 }
  0x97   :  { %s6092_s27 = scalar_lea.hbm %s7374_s2, 4096 }
  0x98   :  { %p6093_p8 = scmp.ne.s32.totalorder %s7374_s2, %s6092_s27  ;;  %p6096_p9 = scmp.lt.u32.totalorder %s6092_s27, %s7374_s2 }
  0x9a   :  { %p6098_p10 = pnand %p6096_p9, %p6093_p8 }
  0x9c   :  { %6101 = shalt.err (!%p6098_p10)
}
  0x9d   :  { %s6102_s0 = scalar_lea.vmem %s61_s21, 4096  ;;  %p6107_p12 = scmp.lt.s32.totalorder %s61_s21, %s61_s21 }
  0x9e   :  { %p6103_p11 = scmp.ne.s32.totalorder %s61_s21, %s6102_s0  ;;  %p6108_p13 = scmp.lt.s32.totalorder %s6102_s0, %s6102_s0 }
  0xa0   :  { %p6109_p0 = por %p6108_p13, %p6107_p12 }
  0xa2   :  { %p6110_p1 = pnand %p6109_p0, %p6103_p11 }
  0xa4   :  { %6113 = shalt.err (!%p6110_p1)
}
  0xa5   :  { %66 = dma.hbm_to_vmem [thread:$0]  %s7374_s2, 4096, %s61_s21, [#allocation6], %s6312_s18, %s6312_s18, %s6313_s19  }
  0xa6   :  { %s6114_s13 = scalar_lea.hbm %s7376_s4, 1024 }
  0xa7   :  { %p6115_p2 = scmp.ne.s32.totalorder %s7376_s4, %s6114_s13  ;;  %p6118_p3 = scmp.lt.u32.totalorder %s6114_s13, %s7376_s4 }
  0xa9   :  { %p6120_p4 = pnand %p6118_p3, %p6115_p2 }
  0xab   :  { %6123 = shalt.err (!%p6120_p4)
}
  0xac   :  { %s6124_s26 = scalar_lea.vmem %s6540_s11, 1024  ;;  %p6129_p6 = scmp.lt.s32.totalorder %s6540_s11, %s6540_s11 }
  0xad   :  { %p6125_p5 = scmp.ne.s32.totalorder %s6540_s11, %s6124_s26  ;;  %p6130_p7 = scmp.lt.s32.totalorder %s6124_s26, %s6124_s26 }
  0xaf   :  { %p6131_p8 = por %p6130_p7, %p6129_p6 }
  0xb1   :  { %p6132_p9 = pnand %p6131_p8, %p6125_p5 }
  0xb3   :  { %6135 = shalt.err (!%p6132_p9)
}
  0xb4   :  { %88 = dma.hbm_to_vmem [thread:$0]  %s7376_s4, 1024, %s6540_s11, [#allocation9], %s6312_s18, %s6312_s18, %s6313_s19  }
  0xb5   :  { %s6324_s27 = smov [#allocation13]   ;;  %s6325_s28 = smov [#allocation16]  }
  0xb6   :  { %s104_s9 = sshll.u32 %s6324_s27, 4  ;;  %s126_s7 = sshll.u32 %s6325_s28, 4  ;;  %s105_s9 = int_to_ptr.vmem [resolvable:$true] %s104_s9  ;;  %s6577_s7 = int_to_ptr.vmem [resolvable:$true] %s126_s7 }
  0xb7   :  { %s6136_s24 = scalar_lea.hbm %s7378_s6, 1024 }
  0xb8   :  { %p6137_p10 = scmp.ne.s32.totalorder %s7378_s6, %s6136_s24  ;;  %p6140_p11 = scmp.lt.u32.totalorder %s6136_s24, %s7378_s6 }
  0xba   :  { %p6142_p12 = pnand %p6140_p11, %p6137_p10 }
  0xbc   :  { %6145 = shalt.err (!%p6142_p12)
}
  0xbd   :  { %s6146_s4 = scalar_lea.vmem %s105_s9, 1024  ;;  %p6151_p0 = scmp.lt.s32.totalorder %s105_s9, %s105_s9 }
  0xbe   :  { %p6147_p13 = scmp.ne.s32.totalorder %s105_s9, %s6146_s4  ;;  %p6152_p1 = scmp.lt.s32.totalorder %s6146_s4, %s6146_s4 }
  0xc0   :  { %p6153_p2 = por %p6152_p1, %p6151_p0 }
  0xc2   :  { %p6154_p3 = pnand %p6153_p2, %p6147_p13 }
  0xc4   :  { %6157 = shalt.err (!%p6154_p3)
}
  0xc5   :  { %110 = dma.hbm_to_vmem [thread:$0]  %s7378_s6, 1024, %s105_s9, [#allocation12], %s6318_s23, %s6318_s23, %s6319_s30  }
  0xc6   :  { %s6158_s17 = scalar_lea.hbm %s7380_s8, 4096 }
  0xc7   :  { %p6159_p4 = scmp.ne.s32.totalorder %s7380_s8, %s6158_s17  ;;  %p6162_p5 = scmp.lt.u32.totalorder %s6158_s17, %s7380_s8 }
  0xc9   :  { %p6164_p6 = pnand %p6162_p5, %p6159_p4 }
  0xcb   :  { %6167 = shalt.err (!%p6164_p6)
}
  0xcc   :  { %s6168_s21 = scalar_lea.vmem %s6577_s7, 4096  ;;  %p6173_p8 = scmp.lt.s32.totalorder %s6577_s7, %s6577_s7 }
  0xcd   :  { %p6169_p7 = scmp.ne.s32.totalorder %s6577_s7, %s6168_s21  ;;  %p6174_p9 = scmp.lt.s32.totalorder %s6168_s21, %s6168_s21 }
  0xcf   :  { %p6175_p10 = por %p6174_p9, %p6173_p8 }
  0xd1   :  { %p6176_p11 = pnand %p6175_p10, %p6169_p7 }
  0xd3   :  { %6179 = shalt.err (!%p6176_p11)
}
  0xd4   :  { %132 = dma.hbm_to_vmem [thread:$0]  %s7380_s8, 4096, %s6577_s7, [#allocation15], %s6318_s23, %s6318_s23, %s6319_s30  }
  0xd5   :  { %s6326_s9 = smov [#allocation19]   ;;  %s6327_s5 = smov [#allocation22]  }
  0xd6   :  { %s150_s28 = sshll.u32 %s6326_s9, 4  ;;  %s174_s0 = sshll.u32 %s6327_s5, 4  ;;  %s151_s28 = int_to_ptr.vmem [resolvable:$true] %s150_s28  ;;  %s6614_s0 = int_to_ptr.vmem [resolvable:$true] %s174_s0 }
  0xd7   :  { %s6180_s3 = scalar_lea.hbm %s7382_s10, 4096 }
  0xd8   :  { %p6181_p12 = scmp.ne.s32.totalorder %s7382_s10, %s6180_s3  ;;  %p6184_p13 = scmp.lt.u32.totalorder %s6180_s3, %s7382_s10 }
  0xda   :  { %p6186_p0 = pnand %p6184_p13, %p6181_p12 }
  0xdc   :  { %6189 = shalt.err (!%p6186_p0)
}
  0xdd   :  { %s6190_s8 = scalar_lea.vmem %s151_s28, 4096  ;;  %p6195_p2 = scmp.lt.s32.totalorder %s151_s28, %s151_s28 }
  0xde   :  { %p6191_p1 = scmp.ne.s32.totalorder %s151_s28, %s6190_s8  ;;  %p6196_p3 = scmp.lt.s32.totalorder %s6190_s8, %s6190_s8 }
  0xe0   :  { %p6197_p4 = por %p6196_p3, %p6195_p2 }
  0xe2   :  { %p6198_p5 = pnand %p6197_p4, %p6191_p1 }
  0xe4   :  { %6201 = shalt.err (!%p6198_p5)
}
  0xe5   :  { %156 = dma.hbm_to_vmem [thread:$0]  %s7382_s10, 4096, %s151_s28, [#allocation18], %s6318_s23, %s6318_s23, %s6319_s30  }
  0xe6   :  { %s6202_s17 = scalar_lea.hbm %s7384_s12, 2048 }
  0xe7   :  { %p6203_p6 = scmp.ne.s32.totalorder %s7384_s12, %s6202_s17  ;;  %p6206_p7 = scmp.lt.u32.totalorder %s6202_s17, %s7384_s12 }
  0xe9   :  { %p6208_p8 = pnand %p6206_p7, %p6203_p6 }
  0xeb   :  { %6211 = shalt.err (!%p6208_p8)
}
  0xec   :  { %s6212_s21 = scalar_lea.vmem %s6614_s0, 2048  ;;  %p6217_p10 = scmp.lt.s32.totalorder %s6614_s0, %s6614_s0 }
  0xed   :  { %p6213_p9 = scmp.ne.s32.totalorder %s6614_s0, %s6212_s21  ;;  %p6218_p11 = scmp.lt.s32.totalorder %s6212_s21, %s6212_s21 }
  0xef   :  { %p6219_p12 = por %p6218_p11, %p6217_p10 }
  0xf1   :  { %p6220_p13 = pnand %p6219_p12, %p6213_p9 }
  0xf3   :  { %6223 = shalt.err (!%p6220_p13)
}
  0xf4   :  { %180 = dma.hbm_to_vmem [thread:$0]  %s7384_s12, 2048, %s6614_s0, [#allocation21], %s6318_s23, %s6318_s23, %s6319_s30  }
  0xf5   :  { %s6328_s27 = smov [#allocation25]   ;;  %s6329_s28 = smov [#allocation26]  }
  0xf6   :  { %s197_s9 = sshll.u32 %s6328_s27, 4  ;;  %s207_s5 = sshll.u32 %s6329_s28, 4  ;;  %s198_s9 = int_to_ptr.vmem [resolvable:$true] %s197_s9  ;;  %s208_s5 = int_to_ptr.vmem [resolvable:$true] %s207_s5 }
  0xf7   :  { %s6224_s3 = scalar_lea.hbm %s7386_s14, 64 }
  0xf8   :  { %p6225_p0 = scmp.ne.s32.totalorder %s7386_s14, %s6224_s3  ;;  %p6228_p1 = scmp.lt.u32.totalorder %s6224_s3, %s7386_s14 }
  0xfa   :  { %p6230_p2 = pnand %p6228_p1, %p6225_p0 }
  0xfc   :  { %6233 = shalt.err (!%p6230_p2)
}
  0xfd   :  { %s6234_s12 = scalar_lea.vmem %s198_s9, 64  ;;  %p6239_p4 = scmp.lt.s32.totalorder %s198_s9, %s198_s9 }
  0xfe   :  { %p6235_p3 = scmp.ne.s32.totalorder %s198_s9, %s6234_s12  ;;  %p6240_p5 = scmp.lt.s32.totalorder %s6234_s12, %s6234_s12 }
 0x100   :  { %p6241_p6 = por %p6240_p5, %p6239_p4 }
 0x102   :  { %p6242_p7 = pnand %p6241_p6, %p6235_p3 }
 0x104   :  { %6245 = shalt.err (!%p6242_p7)
}
 0x105   :  { %200 = dma.hbm_to_vmem [thread:$0]  %s7386_s14, 64, %s198_s9, [#allocation24]  }
 0x106   :  { %s6246_s7 = scalar_lea.hbm %s7387_s15, 64 }
 0x107   :  { %p6247_p8 = scmp.ne.s32.totalorder %s7387_s15, %s6246_s7  ;;  %p6250_p9 = scmp.lt.u32.totalorder %s6246_s7, %s7387_s15 }
 0x109   :  { %p6252_p10 = pnand %p6250_p9, %p6247_p8 }
 0x10b   :  { %6255 = shalt.err (!%p6252_p10)
}
 0x10c   :  { %s6256_s25 = scalar_lea.vmem %s208_s5, 64  ;;  %p6261_p12 = scmp.lt.s32.totalorder %s208_s5, %s208_s5 }
 0x10d   :  { %p6257_p11 = scmp.ne.s32.totalorder %s208_s5, %s6256_s25  ;;  %p6262_p13 = scmp.lt.s32.totalorder %s6256_s25, %s6256_s25 }
 0x10f   :  { %p6263_p0 = por %p6262_p13, %p6261_p12 }
 0x111   :  { %p6264_p1 = pnand %p6263_p0, %p6257_p11 }
 0x113   :  { %6267 = shalt.err (!%p6264_p1)
}
 0x114   :  { %210 = dma.hbm_to_vmem [thread:$0]  %s7387_s15, 64, %s208_s5, [#allocation27]  }
 0x115   :  { %6290 = dma.done.wait [#allocation3], 2048  }
 0x116   :  { %6291 = vsyncadd [#allocation3], 4294965248 }
 0x117   :  { %6292 = dma.done.wait [#allocation6], 5120  }
 0x118   :  { %6293 = vsyncadd [#allocation6], 4294962176 }
 0x119   :  { %6294 = dma.done.wait [#allocation9], 1152  }
 0x11a   :  { %6295 = vsyncadd [#allocation9], 4294966144 }
 0x11b   :  { %6296 = dma.done.wait [#allocation12], 1040  }
 0x11c   :  { %6297 = vsyncadd [#allocation12], 4294966256 }
 0x11d   :  { %6298 = dma.done.wait [#allocation15], 4112  }
 0x11e   :  { %6299 = vsyncadd [#allocation15], 4294963184 }
 0x11f   :  { %6300 = dma.done.wait [#allocation18], 6144  }
 0x120   :  { %6301 = vsyncadd [#allocation18], 4294961152 }
 0x121   :  { %6302 = dma.done.wait [#allocation21], 6144  }
 0x122   :  { %6303 = vsyncadd [#allocation21], 4294961152 }
 0x123   :  { %6304 = dma.done.wait [#allocation24], 192  }
 0x124   :  { %6305 = vsyncadd [#allocation24], 4294967104 }
 0x125   :  { %6306 = dma.done.wait [#allocation27], 64  }
 0x126   :  { %6307 = vsyncadd [#allocation27], 4294967232  ;;  %v5608_v0 = vld [vmem:[#allocation5] sm:$0xff]   ;;  %v5609_v1 = vld [vmem:[#allocation5 + $0x8] sm:$0xff]   ;;  %v6330_v32 = vmov 0   ;;  %v634_v34 = vlaneseq  ;;  %vm2115_vm0 = vcmask 523264  }
 0x127   :  { %5080 = vmatprep.subr.bf16.mxu0 %v5608_v0  ;;  %v5610_v2 = vld [vmem:[#allocation5 + $0x10] sm:$0xff]   ;;  %v5611_v3 = vld [vmem:[#allocation5 + $0x18] sm:$0xff]   ;;  %v5616_v4 = vld [vmem:[#allocation2] sm:$0xff]   ;;  %5607 = vset.pattern.permute.xlu0 %v6330_v32  ;;  %s6332_s15 = smov [#allocation28]  }
 0x128   :  { %5081 = vmatpush3.bf16.msra.mxu0 %v5608_v0  ;;  %5096 = vmatprep.mubr.bf16.mxu0 %v5616_v4  ;;  %v5612_v5 = vld [vmem:[#allocation5 + $0x20] sm:$0xff]   ;;  %v5613_v6 = vld [vmem:[#allocation5 + $0x28] sm:$0xff]   ;;  %v5614_v7 = vld [vmem:[#allocation5 + $0x30] sm:$0xff]   ;;  %v6676_v37 = vshrl.u32 %v634_v34, 7  ;;  %s4681_s26 = sshll.u32 %s6332_s15, 4  ;;  %s4682_s26 = int_to_ptr.vmem [resolvable:$true] %s4681_s26 }
 0x129   :  { %5082 = vmatprep.subr.bf16.mxu0 %v5609_v1  ;;  %v5615_v8 = vld [vmem:[#allocation5 + $0x38] sm:$0xff]   ;;  %v5632_v9 = vld [vmem:[#allocation7] sm:$0xff]   ;;  %v5633_v10 = vld [vmem:[#allocation7 + $0x8] sm:$0xff]   ;;  %s6268_s2 = scalar_lea.vmem %s4682_s26, 128  ;;  %p6273_p3 = scmp.lt.s32.totalorder %s4682_s26, %s4682_s26 }
 0x12a   :  { %5368 = vmatprep.subr.bf16.mxu1 %v5632_v9  ;;  %v5617_v11 = vld [vmem:[#allocation2 + $0x8] sm:$0xff]   ;;  %v5618_v12 = vld [vmem:[#allocation2 + $0x10] sm:$0xff]   ;;  %v5635_v14 = vld [vmem:[#allocation7 + $0x18] sm:$0xff]   ;;  %v6679_v39 = vsub.s32 0, %v6676_v37  ;;  %vm4659_vm1 = vcmp.eq.s32.totalorder %v6676_v37, 0  ;;  %p6269_p2 = scmp.ne.s32.totalorder %s4682_s26, %s6268_s2  ;;  %p6274_p4 = scmp.lt.s32.totalorder %s6268_s2, %s6268_s2 }
 0x12b   :  { %5376 = vmatpush3.bf16.msra.mxu1 %v5632_v9  ;;  %v5634_v13 = vld [vmem:[#allocation7 + $0x10] sm:$0xff]   ;;  %v5619_v15 = vld [vmem:[#allocation2 + $0x18] sm:$0xff]   ;;  %v5620_v16 = vld [vmem:[#allocation2 + $0x20] sm:$0xff]  }
 0x12c   :  { %5083 = vmatpush3.bf16.msra.mxu0 %v5609_v1  ;;  %5369 = vmatprep.subr.bf16.mxu1 %v5633_v10  ;;  %v5636_v17 = vld [vmem:[#allocation7 + $0x20] sm:$0xff]   ;;  %v5637_v18 = vld [vmem:[#allocation7 + $0x28] sm:$0xff]   ;;  %v5622_v20 = vld [vmem:[#allocation2 + $0x30] sm:$0xff]   ;;  %p6275_p5 = por %p6274_p4, %p6273_p3 }
 0x12d   :  { %5084 = vmatprep.subr.bf16.mxu0 %v5610_v2  ;;  %v5621_v19 = vld [vmem:[#allocation2 + $0x28] sm:$0xff]   ;;  %v5623_v21 = vld [vmem:[#allocation2 + $0x38] sm:$0xff]   ;;  %v5624_v22 = vld [vmem:[#allocation2 + $0x40] sm:$0xff]  }
 0x12e   :  { %v5625_v23 = vld [vmem:[#allocation2 + $0x48] sm:$0xff]   ;;  %v5626_v24 = vld [vmem:[#allocation2 + $0x50] sm:$0xff]   ;;  %v5627_v25 = vld [vmem:[#allocation2 + $0x58] sm:$0xff]   ;;  %p6276_p6 = pnand %p6275_p5, %p6269_p2 }
 0x12f   :  { %5377 = vmatpush3.bf16.msra.mxu1 %v5633_v10  ;;  %v5628_v26 = vld [vmem:[#allocation2 + $0x60] sm:$0xff]   ;;  %v5629_v27 = vld [vmem:[#allocation2 + $0x68] sm:$0xff]   ;;  %v5630_v28 = vld [vmem:[#allocation2 + $0x70] sm:$0xff]  }
 0x130   :  { %5085 = vmatpush3.bf16.msra.mxu0 %v5610_v2  ;;  %5370 = vmatprep.subr.bf16.mxu1 %v5634_v13  ;;  %v5631_v29 = vld [vmem:[#allocation2 + $0x78] sm:$0xff]   ;;  %v5638_v30 = vld [vmem:[#allocation7 + $0x30] sm:$0xff]   ;;  %v5640_v33 = vld [vmem:[#allocation7 + $0x40] sm:$0xff]  }
 0x131   :  { %5086 = vmatprep.subr.bf16.mxu0 %v5611_v3  ;;  %v5639_v31 = vld [vmem:[#allocation7 + $0x38] sm:$0xff]   ;;  %v629_v35 = vld [vmem:[#allocation8] sm:$0x1]  ;;  %v5641_v53 = vld [vmem:[#allocation7 + $0x48] sm:$0xff]  }
 0x132   :  { %v630_v36 = vpack.c.bf16 %v629_v35, %v629_v35  ;;  %v5642_v59 = vld [vmem:[#allocation7 + $0x50] sm:$0xff]   ;;  %v5643_v1 = vld [vmem:[#allocation7 + $0x58] sm:$0xff]  }
 0x133   :  { %5378 = vmatpush3.bf16.msra.mxu1 %v5634_v13 }
 0x134   :  { %5087 = vmatpush3.bf16.msra.mxu0 %v5611_v3  ;;  %5371 = vmatprep.subr.bf16.mxu1 %v5635_v14  ;;  %v632_v38 = vpack.i.b16 %v630_v36, %v630_v36 }
 0x135   :  { %5088 = vmatprep.subr.bf16.mxu0 %v5612_v5 }
 0x136   :  { %v6682_v42 = vrot.slane %v632_v38, %v6679_v39 }
 0x137   :  { %5379 = vmatpush3.bf16.msra.mxu1 %v5635_v14 }
 0x138   :  { %5089 = vmatpush3.bf16.msra.mxu0 %v5612_v5  ;;  %5372 = vmatprep.subr.bf16.mxu1 %v5636_v17 }
 0x139   :  { %5090 = vmatprep.subr.bf16.mxu0 %v5613_v6 }
 0x13b   :  { %5380 = vmatpush3.bf16.msra.mxu1 %v5636_v17 }
 0x13c   :  { %5091 = vmatpush3.bf16.msra.mxu0 %v5613_v6  ;;  %5373 = vmatprep.subr.bf16.mxu1 %v5637_v18 }
 0x13d   :  { %5092 = vmatprep.subr.bf16.mxu0 %v5614_v7 }
 0x13f   :  { %5381 = vmatpush3.bf16.msra.mxu1 %v5637_v18 }
 0x140   :  { %5093 = vmatpush3.bf16.msra.mxu0 %v5614_v7  ;;  %5374 = vmatprep.subr.bf16.mxu1 %v5638_v30  ;;  %v5644_v7 = vld [vmem:[#allocation7 + $0x60] sm:$0xff]  }
 0x141   :  { %5094 = vmatprep.subr.bf16.mxu0 %v5615_v8 }
 0x143   :  { %5382 = vmatpush3.bf16.msra.mxu1 %v5638_v30 }
 0x144   :  { %5095 = vmatpush3.bf16.msra.mxu0 %v5615_v8  ;;  %5375 = vmatprep.subr.bf16.mxu1 %v5639_v31 }
 0x145   :  { %5128 = vmatprep.subr.bf16.mxu0 %v5632_v9 }
 0x147   :  { %5097 = vmatmul.mubr.bf16.vlgmr.msra.gmra.mrb[0].mxu0 %v5617_v11  ;;  %5383 = vmatpush3.bf16.msra.mxu1 %v5639_v31 }
 0x148   :  { %5100 = vmatprep.mubr.bf16.mxu0 %v5618_v12  ;;  %5129 = vmatpush3.bf16.msra.mxu0 %v5632_v9 }
 0x149   :  { %5130 = vmatprep.subr.bf16.mxu0 %v5633_v10 }
 0x14c   :  { %5131 = vmatpush3.bf16.msra.mxu0 %v5633_v10 }
 0x14d   :  { %5132 = vmatprep.subr.bf16.mxu0 %v5634_v13 }
 0x14f   :  { %5101 = vmatmul.mubr.bf16.gmra.mrb[4].mxu0 %v5619_v15 }
 0x150   :  { %5104 = vmatprep.mubr.bf16.mxu0 %v5620_v16  ;;  %5133 = vmatpush3.bf16.msra.mxu0 %v5634_v13  ;;  %v5645_v13 = vld [vmem:[#allocation7 + $0x68] sm:$0xff]  }
 0x151   :  { %5134 = vmatprep.subr.bf16.mxu0 %v5635_v14 }
 0x154   :  { %5135 = vmatpush3.bf16.msra.mxu0 %v5635_v14 }
 0x155   :  { %5136 = vmatprep.subr.bf16.mxu0 %v5636_v17 }
 0x157   :  { %5105 = vmatmul.mubr.bf16.gmra.mrb[8].mxu0 %v5621_v19 }
 0x158   :  { %5108 = vmatprep.mubr.bf16.mxu0 %v5622_v20  ;;  %5137 = vmatpush3.bf16.msra.mxu0 %v5636_v17 }
 0x159   :  { %5138 = vmatprep.subr.bf16.mxu0 %v5637_v18 }
 0x15c   :  { %5139 = vmatpush3.bf16.msra.mxu0 %v5637_v18 }
 0x15d   :  { %5140 = vmatprep.subr.bf16.mxu0 %v5638_v30 }
 0x15f   :  { %5109 = vmatmul.mubr.bf16.gmra.mrb[12].mxu0 %v5623_v21 }
 0x160   :  { %5112 = vmatprep.mubr.bf16.mxu0 %v5624_v22  ;;  %5141 = vmatpush3.bf16.msra.mxu0 %v5638_v30 }
 0x161   :  { %5142 = vmatprep.subr.bf16.mxu0 %v5639_v31 }
 0x164   :  { %5143 = vmatpush3.bf16.msra.mxu0 %v5639_v31 }
 0x165   :  { %5176 = vmatprep.subr.bf16.mxu0 %v5640_v33 }
 0x167   :  { %5113 = vmatmul.mubr.bf16.gmra.mrb[16].mxu0 %v5625_v23 }
 0x168   :  { %5116 = vmatprep.mubr.bf16.mxu0 %v5626_v24 }
 0x16f   :  { %5117 = vmatmul.mubr.bf16.gmra.mrb[20].mxu0 %v5627_v25 }
 0x170   :  { %5120 = vmatprep.mubr.bf16.mxu0 %v5628_v26 }
 0x177   :  { %5121 = vmatmul.mubr.bf16.gmra.mrb[24].mxu0 %v5629_v27 }
 0x178   :  { %5124 = vmatprep.mubr.bf16.mxu0 %v5630_v28 }
 0x17f   :  { %5125 = vmatmul.mubr.bf16.gmra.mrb[28].mxu0 %v5631_v29 }
 0x21a   :  { %v5098_v40 = vpop.f32.mrb[0].mxu0 }
 0x21b   :  { %v486_v41 = vpop.f32.mrb[1].mxu0 }
 0x21c   :  { %v5099_v43 = vpop.f32.mrb[2].mxu0 }
 0x21d   :  { %v614_v44 = vpack.c.bf16 %v5099_v43, %v5098_v40  ;;  %v489_v45 = vpop.f32.mrb[3].mxu0 }
 0x21e   :  { %v613_v46 = vpack.c.bf16 %v489_v45, %v486_v41 }
 0x21f   :  { %v639_v47 = vadd.bf16 %v6682_v42, %v614_v44 }
 0x220   :  { %v638_v48 = vadd.bf16 %v6682_v42, %v613_v46 }
 0x221   :  { %v655_v51 = vmax.bf16 %v6330_v32, %v639_v47 }
 0x222   :  { %v5102_v49 = vpop.f32.mrb[4].mxu0  ;;  %v654_v50 = vmax.bf16 %v6330_v32, %v638_v48 }
 0x223   :  { %v502_v52 = vpop.f32.mrb[5].mxu0 }
 0x224   :  { %v5103_v54 = vpop.f32.mrb[6].mxu0  ;;  %5144 = vmatprep.mubr.bf16.mxu0 %v654_v50 }
 0x225   :  { %v616_v55 = vpack.c.bf16 %v5103_v54, %v5102_v49  ;;  %v505_v56 = vpop.f32.mrb[7].mxu0  ;;  %5145 = vmatmul.mubr.bf16.vlgmr.msra.gmra.mrb[32].mxu0 %v655_v51 }
 0x226   :  { %v615_v57 = vpack.c.bf16 %v505_v56, %v502_v52  ;;  %5177 = vmatpush3.bf16.msra.mxu0 %v5640_v33 }
 0x227   :  { %v641_v58 = vadd.bf16 %v6682_v42, %v616_v55  ;;  %5178 = vmatprep.subr.bf16.mxu0 %v5641_v53 }
 0x228   :  { %v640_v60 = vadd.bf16 %v6682_v42, %v615_v57 }
 0x229   :  { %v657_v61 = vmax.bf16 %v6330_v32, %v641_v58 }
 0x22a   :  { %v5106_v62 = vpop.f32.mrb[8].mxu0  ;;  %v656_v63 = vmax.bf16 %v6330_v32, %v640_v60  ;;  %5179 = vmatpush3.bf16.msra.mxu0 %v5641_v53 }
 0x22b   :  { %v518_v0 = vpop.f32.mrb[9].mxu0  ;;  %5180 = vmatprep.subr.bf16.mxu0 %v5642_v59 }
 0x22c   :  { %v5107_v2 = vpop.f32.mrb[10].mxu0  ;;  %5148 = vmatprep.mubr.bf16.mxu0 %v656_v63 }
 0x22d   :  { %v618_v3 = vpack.c.bf16 %v5107_v2, %v5106_v62  ;;  %v521_v4 = vpop.f32.mrb[11].mxu0  ;;  %5149 = vmatmul.mubr.bf16.gmra.mrb[36].mxu0 %v657_v61  ;;  %v5646_v2 = vld [vmem:[#allocation7 + $0x70] sm:$0xff]  }
 0x22e   :  { %v617_v5 = vpack.c.bf16 %v521_v4, %v518_v0  ;;  %5181 = vmatpush3.bf16.msra.mxu0 %v5642_v59  ;;  %v5648_v4 = vld [vmem:[#allocation7 + $0x80] sm:$0xff]  }
 0x22f   :  { %v643_v6 = vadd.bf16 %v6682_v42, %v618_v3  ;;  %5182 = vmatprep.subr.bf16.mxu0 %v5643_v1  ;;  %v5647_v3 = vld [vmem:[#allocation7 + $0x78] sm:$0xff]   ;;  %5224 = vmatprep.subr.bf16.mxu1 %v5648_v4 }
 0x230   :  { %v642_v8 = vadd.bf16 %v6682_v42, %v617_v5  ;;  %v5649_v5 = vld [vmem:[#allocation7 + $0x88] sm:$0xff]  }
 0x231   :  { %v659_v9 = vmax.bf16 %v6330_v32, %v643_v6  ;;  %v5650_v6 = vld [vmem:[#allocation7 + $0x90] sm:$0xff]  }
 0x232   :  { %v5110_v10 = vpop.f32.mrb[12].mxu0  ;;  %v658_v11 = vmax.bf16 %v6330_v32, %v642_v8  ;;  %5183 = vmatpush3.bf16.msra.mxu0 %v5643_v1  ;;  %v5653_v8 = vld [vmem:[#allocation7 + $0xa8] sm:$0xff]  }
 0x233   :  { %v534_v12 = vpop.f32.mrb[13].mxu0  ;;  %5184 = vmatprep.subr.bf16.mxu0 %v5644_v7 }
 0x234   :  { %v5111_v14 = vpop.f32.mrb[14].mxu0  ;;  %5152 = vmatprep.mubr.bf16.mxu0 %v658_v11 }
 0x235   :  { %v620_v15 = vpack.c.bf16 %v5111_v14, %v5110_v10  ;;  %v537_v16 = vpop.f32.mrb[15].mxu0  ;;  %5153 = vmatmul.mubr.bf16.gmra.mrb[40].mxu0 %v659_v9  ;;  %v911_v9 = vld [vmem:[#allocation8 + $0x1] sm:$0x1] }
 0x236   :  { %v619_v17 = vpack.c.bf16 %v537_v16, %v534_v12  ;;  %5185 = vmatpush3.bf16.msra.mxu0 %v5644_v7  ;;  %v5652_v7 = vld [vmem:[#allocation7 + $0xa0] sm:$0xff]   ;;  %v912_v10 = vpack.c.bf16 %v911_v9, %v911_v9 }
 0x237   :  { %v645_v18 = vadd.bf16 %v6682_v42, %v620_v15  ;;  %5186 = vmatprep.subr.bf16.mxu0 %v5645_v13 }
 0x238   :  { %v644_v19 = vadd.bf16 %v6682_v42, %v619_v17  ;;  %v914_v11 = vpack.i.b16 %v912_v10, %v912_v10 }
 0x239   :  { %v661_v20 = vmax.bf16 %v6330_v32, %v645_v18 }
 0x23a   :  { %v5114_v21 = vpop.f32.mrb[16].mxu0  ;;  %v660_v22 = vmax.bf16 %v6330_v32, %v644_v19  ;;  %5187 = vmatpush3.bf16.msra.mxu0 %v5645_v13  ;;  %v6717_v14 = vrot.slane %v914_v11, %v6679_v39 }
 0x23b   :  { %v550_v23 = vpop.f32.mrb[17].mxu0  ;;  %5188 = vmatprep.subr.bf16.mxu0 %v5646_v2 }
 0x23c   :  { %v5115_v24 = vpop.f32.mrb[18].mxu0  ;;  %5156 = vmatprep.mubr.bf16.mxu0 %v660_v22 }
 0x23d   :  { %v622_v25 = vpack.c.bf16 %v5115_v24, %v5114_v21  ;;  %v553_v26 = vpop.f32.mrb[19].mxu0  ;;  %5157 = vmatmul.mubr.bf16.gmra.mrb[44].mxu0 %v661_v20 }
 0x23e   :  { %v621_v27 = vpack.c.bf16 %v553_v26, %v550_v23  ;;  %5189 = vmatpush3.bf16.msra.mxu0 %v5646_v2 }
 0x23f   :  { %v647_v28 = vadd.bf16 %v6682_v42, %v622_v25  ;;  %5190 = vmatprep.subr.bf16.mxu0 %v5647_v3 }
 0x240   :  { %v646_v29 = vadd.bf16 %v6682_v42, %v621_v27 }
 0x241   :  { %v663_v30 = vmax.bf16 %v6330_v32, %v647_v28 }
 0x242   :  { %v5118_v31 = vpop.f32.mrb[20].mxu0  ;;  %v662_v33 = vmax.bf16 %v6330_v32, %v646_v29  ;;  %5191 = vmatpush3.bf16.msra.mxu0 %v5647_v3 }
 0x243   :  { %v566_v34 = vpop.f32.mrb[21].mxu0 }
 0x244   :  { %5160 = vmatprep.mubr.bf16.mxu1 %v662_v33  ;;  %v5119_v35 = vpop.f32.mrb[22].mxu0 }
 0x245   :  { %v624_v36 = vpack.c.bf16 %v5119_v35, %v5118_v31  ;;  %5161 = vmatmul.mubr.bf16.vlgmr.msra.gmra.mrb[0].mxu1 %v663_v30  ;;  %v569_v38 = vpop.f32.mrb[23].mxu0 }
 0x246   :  { %v623_v40 = vpack.c.bf16 %v569_v38, %v566_v34  ;;  %5225 = vmatpush3.bf16.msra.mxu1 %v5648_v4 }
 0x247   :  { %v649_v41 = vadd.bf16 %v6682_v42, %v624_v36  ;;  %5226 = vmatprep.subr.bf16.mxu1 %v5649_v5 }
 0x248   :  { %v648_v43 = vadd.bf16 %v6682_v42, %v623_v40 }
 0x249   :  { %v665_v44 = vmax.bf16 %v6330_v32, %v649_v41 }
 0x24a   :  { %v664_v45 = vmax.bf16 %v6330_v32, %v648_v43  ;;  %v5122_v46 = vpop.f32.mrb[24].mxu0  ;;  %5227 = vmatpush3.bf16.msra.mxu1 %v5649_v5 }
 0x24b   :  { %v582_v47 = vpop.f32.mrb[25].mxu0  ;;  %5228 = vmatprep.subr.bf16.mxu1 %v5650_v6 }
 0x24c   :  { %5164 = vmatprep.mubr.bf16.mxu1 %v664_v45  ;;  %v5123_v48 = vpop.f32.mrb[26].mxu0 }
 0x24d   :  { %5165 = vmatmul.mubr.bf16.gmra.mrb[4].mxu1 %v665_v44  ;;  %v626_v49 = vpack.c.bf16 %v5123_v48, %v5122_v46  ;;  %v585_v50 = vpop.f32.mrb[27].mxu0 }
 0x24e   :  { %v625_v51 = vpack.c.bf16 %v585_v50, %v582_v47  ;;  %5229 = vmatpush3.bf16.msra.mxu1 %v5650_v6 }
 0x24f   :  { %v651_v52 = vadd.bf16 %v6682_v42, %v626_v49 }
 0x250   :  { %v650_v53 = vadd.bf16 %v6682_v42, %v625_v51 }
 0x251   :  { %v667_v54 = vmax.bf16 %v6330_v32, %v651_v52 }
 0x252   :  { %v666_v55 = vmax.bf16 %v6330_v32, %v650_v53  ;;  %v5126_v56 = vpop.f32.mrb[28].mxu0 }
 0x253   :  { %v598_v57 = vpop.f32.mrb[29].mxu0 }
 0x254   :  { %5168 = vmatprep.mubr.bf16.mxu1 %v666_v55  ;;  %v5127_v58 = vpop.f32.mrb[30].mxu0 }
 0x255   :  { %5169 = vmatmul.mubr.bf16.gmra.mrb[8].mxu1 %v667_v54  ;;  %v628_v59 = vpack.c.bf16 %v5127_v58, %v5126_v56  ;;  %v601_v60 = vpop.f32.mrb[31].mxu0 }
 0x256   :  { %v627_v61 = vpack.c.bf16 %v601_v60, %v598_v57 }
 0x257   :  { %v653_v62 = vadd.bf16 %v6682_v42, %v628_v59 }
 0x258   :  { %v652_v63 = vadd.bf16 %v6682_v42, %v627_v61  ;;  %v5651_v42 = vld [vmem:[#allocation7 + $0x98] sm:$0xff]  }
 0x259   :  { %v669_v0 = vmax.bf16 %v6330_v32, %v653_v62  ;;  %5230 = vmatprep.subr.bf16.mxu1 %v5651_v42 }
 0x25a   :  { %v668_v1 = vmax.bf16 %v6330_v32, %v652_v63  ;;  %5231 = vmatpush3.bf16.msra.mxu1 %v5651_v42 }
 0x25b   :  { %5232 = vmatprep.subr.bf16.mxu1 %v5652_v7 }
 0x25c   :  { %5172 = vmatprep.mubr.bf16.mxu1 %v668_v1 }
 0x25d   :  { %5173 = vmatmul.mubr.bf16.gmra.mrb[12].mxu1 %v669_v0 }
 0x25e   :  { %5233 = vmatpush3.bf16.msra.mxu1 %v5652_v7 }
 0x25f   :  { %5234 = vmatprep.subr.bf16.mxu1 %v5653_v8 }
 0x262   :  { %5235 = vmatpush3.bf16.msra.mxu1 %v5653_v8 }
 0x2f8   :  { %v5146_v12 = vpop.f32.mrb[32].mxu0 }
 0x2f9   :  { %v768_v13 = vpop.f32.mrb[33].mxu0 }
 0x2fa   :  { %v5147_v15 = vpop.f32.mrb[34].mxu0 }
 0x2fb   :  { %v896_v16 = vpack.c.bf16 %v5147_v15, %v5146_v12  ;;  %v771_v17 = vpop.f32.mrb[35].mxu0 }
 0x2fc   :  { %v895_v18 = vpack.c.bf16 %v771_v17, %v768_v13 }
 0x2fd   :  { %v921_v19 = vadd.bf16 %v6717_v14, %v896_v16 }
 0x2fe   :  { %v920_v20 = vadd.bf16 %v6717_v14, %v895_v18 }
 0x2ff   :  { %v937_v23 = vmax.bf16 %v6330_v32, %v921_v19 }
 0x300   :  { %v5150_v21 = vpop.f32.mrb[36].mxu0  ;;  %v936_v22 = vmax.bf16 %v6330_v32, %v920_v20 }
 0x301   :  { %v784_v24 = vpop.f32.mrb[37].mxu0 }
 0x302   :  { %v5151_v25 = vpop.f32.mrb[38].mxu0  ;;  %5192 = vmatprep.mubr.bf16.mxu0 %v936_v22 }
 0x303   :  { %v898_v26 = vpack.c.bf16 %v5151_v25, %v5150_v21  ;;  %v787_v27 = vpop.f32.mrb[39].mxu0  ;;  %5193 = vmatmul.mubr.bf16.vlgmr.msra.gmra.mrb[48].mxu0 %v937_v23 }
 0x304   :  { %v897_v28 = vpack.c.bf16 %v787_v27, %v784_v24 }
 0x305   :  { %v923_v29 = vadd.bf16 %v6717_v14, %v898_v26 }
 0x306   :  { %v922_v30 = vadd.bf16 %v6717_v14, %v897_v28 }
 0x307   :  { %v939_v31 = vmax.bf16 %v6330_v32, %v923_v29 }
 0x308   :  { %v5154_v33 = vpop.f32.mrb[40].mxu0  ;;  %v938_v34 = vmax.bf16 %v6330_v32, %v922_v30 }
 0x309   :  { %v800_v35 = vpop.f32.mrb[41].mxu0 }
 0x30a   :  { %v5155_v36 = vpop.f32.mrb[42].mxu0  ;;  %5196 = vmatprep.mubr.bf16.mxu0 %v938_v34  ;;  %v5654_v34 = vld [vmem:[#allocation7 + $0xb0] sm:$0xff]  }
 0x30b   :  { %v900_v38 = vpack.c.bf16 %v5155_v36, %v5154_v33  ;;  %v803_v40 = vpop.f32.mrb[43].mxu0  ;;  %5197 = vmatmul.mubr.bf16.gmra.mrb[52].mxu0 %v939_v31  ;;  %5236 = vmatprep.subr.bf16.mxu1 %v5654_v34  ;;  %v5656_v36 = vld [vmem:[#allocation7 + $0xc0] sm:$0xff]  }
 0x30c   :  { %v899_v41 = vpack.c.bf16 %v803_v40, %v800_v35  ;;  %5237 = vmatpush3.bf16.msra.mxu1 %v5654_v34  ;;  %v5655_v35 = vld [vmem:[#allocation7 + $0xb8] sm:$0xff]   ;;  %5272 = vmatprep.subr.bf16.mxu0 %v5656_v36  ;;  %v5658_v40 = vld [vmem:[#allocation7 + $0xd0] sm:$0xff]  }
 0x30d   :  { %v925_v43 = vadd.bf16 %v6717_v14, %v900_v38  ;;  %5238 = vmatprep.subr.bf16.mxu1 %v5655_v35  ;;  %v5657_v38 = vld [vmem:[#allocation7 + $0xc8] sm:$0xff]   ;;  %5273 = vmatpush3.bf16.msra.mxu0 %v5656_v36 }
 0x30e   :  { %v924_v44 = vadd.bf16 %v6717_v14, %v899_v41  ;;  %5274 = vmatprep.subr.bf16.mxu0 %v5657_v38  ;;  %v5660_v41 = vld [vmem:[#allocation7 + $0xe0] sm:$0xff]  }
 0x30f   :  { %v941_v45 = vmax.bf16 %v6330_v32, %v925_v43  ;;  %v5661_v43 = vld [vmem:[#allocation7 + $0xe8] sm:$0xff]  }
 0x310   :  { %v5158_v46 = vpop.f32.mrb[44].mxu0  ;;  %v940_v47 = vmax.bf16 %v6330_v32, %v924_v44  ;;  %5239 = vmatpush3.bf16.msra.mxu1 %v5655_v35  ;;  %v1194_v44 = vld [vmem:[#allocation8 + $0x2] sm:$0x1] }
 0x311   :  { %v816_v48 = vpop.f32.mrb[45].mxu0  ;;  %5275 = vmatpush3.bf16.msra.mxu0 %v5657_v38 }
 0x312   :  { %v5159_v49 = vpop.f32.mrb[46].mxu0  ;;  %5200 = vmatprep.mubr.bf16.mxu0 %v940_v47  ;;  %5276 = vmatprep.subr.bf16.mxu0 %v5658_v40 }
 0x313   :  { %v902_v50 = vpack.c.bf16 %v5159_v49, %v5158_v46  ;;  %v819_v51 = vpop.f32.mrb[47].mxu0  ;;  %5201 = vmatmul.mubr.bf16.gmra.mrb[56].mxu0 %v941_v45  ;;  %v1195_v45 = vpack.c.bf16 %v1194_v44, %v1194_v44 }
 0x314   :  { %v901_v52 = vpack.c.bf16 %v819_v51, %v816_v48 }
 0x315   :  { %v927_v53 = vadd.bf16 %v6717_v14, %v902_v50  ;;  %5277 = vmatpush3.bf16.msra.mxu0 %v5658_v40  ;;  %v1197_v46 = vpack.i.b16 %v1195_v45, %v1195_v45 }
 0x316   :  { %v926_v54 = vadd.bf16 %v6717_v14, %v901_v52 }
 0x317   :  { %v943_v55 = vmax.bf16 %v6330_v32, %v927_v53  ;;  %v6752_v49 = vrot.slane %v1197_v46, %v6679_v39 }
 0x318   :  { %v5162_v56 = vpop.f32.mrb[0].mxu1  ;;  %v942_v57 = vmax.bf16 %v6330_v32, %v926_v54 }
 0x319   :  { %v832_v58 = vpop.f32.mrb[1].mxu1 }
 0x31a   :  { %v5163_v59 = vpop.f32.mrb[2].mxu1  ;;  %5204 = vmatprep.mubr.bf16.mxu0 %v942_v57 }
 0x31b   :  { %v904_v60 = vpack.c.bf16 %v5163_v59, %v5162_v56  ;;  %v835_v61 = vpop.f32.mrb[3].mxu1  ;;  %5205 = vmatmul.mubr.bf16.gmra.mrb[60].mxu0 %v943_v55 }
 0x31c   :  { %v903_v62 = vpack.c.bf16 %v835_v61, %v832_v58 }
 0x31d   :  { %v929_v63 = vadd.bf16 %v6717_v14, %v904_v60 }
 0x31e   :  { %v928_v0 = vadd.bf16 %v6717_v14, %v903_v62 }
 0x31f   :  { %v945_v1 = vmax.bf16 %v6330_v32, %v929_v63 }
 0x320   :  { %v5166_v2 = vpop.f32.mrb[4].mxu1  ;;  %v944_v3 = vmax.bf16 %v6330_v32, %v928_v0 }
 0x321   :  { %v848_v4 = vpop.f32.mrb[5].mxu1 }
 0x322   :  { %5208 = vmatprep.mubr.bf16.mxu0 %v944_v3  ;;  %v5167_v5 = vpop.f32.mrb[6].mxu1 }
 0x323   :  { %v906_v6 = vpack.c.bf16 %v5167_v5, %v5166_v2  ;;  %5209 = vmatmul.mubr.bf16.gmra.mrb[64].mxu0 %v945_v1  ;;  %v851_v42 = vpop.f32.mrb[7].mxu1 }
 0x324   :  { %v905_v7 = vpack.c.bf16 %v851_v42, %v848_v4 }
 0x325   :  { %v931_v8 = vadd.bf16 %v6717_v14, %v906_v6 }
 0x326   :  { %v930_v9 = vadd.bf16 %v6717_v14, %v905_v7 }
 0x327   :  { %v947_v10 = vmax.bf16 %v6330_v32, %v931_v8 }
 0x328   :  { %v946_v11 = vmax.bf16 %v6330_v32, %v930_v9  ;;  %v5170_v12 = vpop.f32.mrb[8].mxu1 }
 0x329   :  { %v864_v13 = vpop.f32.mrb[9].mxu1 }
 0x32a   :  { %5212 = vmatprep.mubr.bf16.mxu0 %v946_v11  ;;  %v5171_v15 = vpop.f32.mrb[10].mxu1 }
 0x32b   :  { %5213 = vmatmul.mubr.bf16.gmra.mrb[68].mxu0 %v947_v10  ;;  %v908_v16 = vpack.c.bf16 %v5171_v15, %v5170_v12  ;;  %v867_v17 = vpop.f32.mrb[11].mxu1 }
 0x32c   :  { %v907_v18 = vpack.c.bf16 %v867_v17, %v864_v13 }
 0x32d   :  { %v933_v19 = vadd.bf16 %v6717_v14, %v908_v16 }
 0x32e   :  { %v932_v20 = vadd.bf16 %v6717_v14, %v907_v18 }
 0x32f   :  { %v949_v21 = vmax.bf16 %v6330_v32, %v933_v19 }
 0x330   :  { %v948_v22 = vmax.bf16 %v6330_v32, %v932_v20  ;;  %v5174_v23 = vpop.f32.mrb[12].mxu1 }
 0x331   :  { %v880_v24 = vpop.f32.mrb[13].mxu1 }
 0x332   :  { %5216 = vmatprep.mubr.bf16.mxu0 %v948_v22  ;;  %v5175_v25 = vpop.f32.mrb[14].mxu1 }
 0x333   :  { %5217 = vmatmul.mubr.bf16.gmra.mrb[72].mxu0 %v949_v21  ;;  %v910_v26 = vpack.c.bf16 %v5175_v25, %v5174_v23  ;;  %v883_v27 = vpop.f32.mrb[15].mxu1 }
 0x334   :  { %v909_v28 = vpack.c.bf16 %v883_v27, %v880_v24 }
 0x335   :  { %v935_v29 = vadd.bf16 %v6717_v14, %v910_v26 }
 0x336   :  { %v934_v30 = vadd.bf16 %v6717_v14, %v909_v28  ;;  %v5659_v14 = vld [vmem:[#allocation7 + $0xd8] sm:$0xff]  }
 0x337   :  { %v951_v31 = vmax.bf16 %v6330_v32, %v935_v29  ;;  %5278 = vmatprep.subr.bf16.mxu0 %v5659_v14 }
 0x338   :  { %v950_v33 = vmax.bf16 %v6330_v32, %v934_v30  ;;  %5279 = vmatpush3.bf16.msra.mxu0 %v5659_v14 }
 0x339   :  { %5280 = vmatprep.subr.bf16.mxu0 %v5660_v41 }
 0x33a   :  { %5220 = vmatprep.mubr.bf16.mxu0 %v950_v33 }
 0x33b   :  { %5221 = vmatmul.mubr.bf16.gmra.mrb[76].mxu0 %v951_v31 }
 0x33c   :  { %5281 = vmatpush3.bf16.msra.mxu0 %v5660_v41 }
 0x33d   :  { %5282 = vmatprep.subr.bf16.mxu0 %v5661_v43 }
 0x340   :  { %5283 = vmatpush3.bf16.msra.mxu0 %v5661_v43 }
 0x3d6   :  { %v5194_v47 = vpop.f32.mrb[48].mxu0 }
 0x3d7   :  { %v1051_v48 = vpop.f32.mrb[49].mxu0 }
 0x3d8   :  { %v5195_v50 = vpop.f32.mrb[50].mxu0 }
 0x3d9   :  { %v1179_v51 = vpack.c.bf16 %v5195_v50, %v5194_v47  ;;  %v1054_v52 = vpop.f32.mrb[51].mxu0 }
 0x3da   :  { %v1178_v53 = vpack.c.bf16 %v1054_v52, %v1051_v48 }
 0x3db   :  { %v1204_v54 = vadd.bf16 %v6752_v49, %v1179_v51 }
 0x3dc   :  { %v1203_v55 = vadd.bf16 %v6752_v49, %v1178_v53 }
 0x3dd   :  { %v1220_v58 = vmax.bf16 %v6330_v32, %v1204_v54 }
 0x3de   :  { %v5198_v56 = vpop.f32.mrb[52].mxu0  ;;  %v1219_v57 = vmax.bf16 %v6330_v32, %v1203_v55 }
 0x3df   :  { %v1067_v59 = vpop.f32.mrb[53].mxu0 }
 0x3e0   :  { %v5199_v60 = vpop.f32.mrb[54].mxu0  ;;  %5240 = vmatprep.mubr.bf16.mxu1 %v1219_v57 }
 0x3e1   :  { %v1181_v61 = vpack.c.bf16 %v5199_v60, %v5198_v56  ;;  %v1070_v62 = vpop.f32.mrb[55].mxu0  ;;  %5241 = vmatmul.mubr.bf16.vlgmr.msra.gmra.mrb[16].mxu1 %v1220_v58 }
 0x3e2   :  { %v1180_v63 = vpack.c.bf16 %v1070_v62, %v1067_v59 }
 0x3e3   :  { %v1206_v0 = vadd.bf16 %v6752_v49, %v1181_v61 }
 0x3e4   :  { %v1205_v1 = vadd.bf16 %v6752_v49, %v1180_v63 }
 0x3e5   :  { %v1222_v5 = vmax.bf16 %v6330_v32, %v1206_v0 }
 0x3e6   :  { %v5202_v2 = vpop.f32.mrb[56].mxu0  ;;  %v1221_v3 = vmax.bf16 %v6330_v32, %v1205_v1 }
 0x3e7   :  { %v1083_v4 = vpop.f32.mrb[57].mxu0 }
 0x3e8   :  { %v5203_v6 = vpop.f32.mrb[58].mxu0  ;;  %5244 = vmatprep.mubr.bf16.mxu1 %v1221_v3 }
 0x3e9   :  { %v1183_v42 = vpack.c.bf16 %v5203_v6, %v5202_v2  ;;  %v1086_v7 = vpop.f32.mrb[59].mxu0  ;;  %5245 = vmatmul.mubr.bf16.gmra.mrb[20].mxu1 %v1222_v5  ;;  %v5663_v5 = vld [vmem:[#allocation7 + $0xf8] sm:$0xff]   ;;  %v5664_v6 = vld [vmem:[#allocation10] sm:$0xff]  }
 0x3ea   :  { %v1182_v8 = vpack.c.bf16 %v1086_v7, %v1083_v4  ;;  %v5662_v4 = vld [vmem:[#allocation7 + $0xf0] sm:$0xff]   ;;  %5320 = vmatprep.subr.bf16.mxu1 %v5664_v6  ;;  %v5666_v7 = vld [vmem:[#allocation10 + $0x10] sm:$0xff]  }
 0x3eb   :  { %v1208_v9 = vadd.bf16 %v6752_v49, %v1183_v42  ;;  %5284 = vmatprep.subr.bf16.mxu0 %v5662_v4  ;;  %v5665_v42 = vld [vmem:[#allocation10 + $0x8] sm:$0xff]   ;;  %5321 = vmatpush3.bf16.msra.mxu1 %v5664_v6 }
 0x3ec   :  { %v1207_v10 = vadd.bf16 %v6752_v49, %v1182_v8  ;;  %5285 = vmatpush3.bf16.msra.mxu0 %v5662_v4  ;;  %5322 = vmatprep.subr.bf16.mxu1 %v5665_v42  ;;  %v5668_v8 = vld [vmem:[#allocation10 + $0x20] sm:$0xff]  }
 0x3ed   :  { %v1224_v11 = vmax.bf16 %v6330_v32, %v1208_v9  ;;  %5286 = vmatprep.subr.bf16.mxu0 %v5663_v5  ;;  %v5669_v9 = vld [vmem:[#allocation10 + $0x28] sm:$0xff]  }
 0x3ee   :  { %v5206_v12 = vpop.f32.mrb[60].mxu0  ;;  %v1223_v13 = vmax.bf16 %v6330_v32, %v1207_v10  ;;  %v1477_v10 = vld [vmem:[#allocation8 + $0x3] sm:$0x1] }
 0x3ef   :  { %v1099_v15 = vpop.f32.mrb[61].mxu0  ;;  %5323 = vmatpush3.bf16.msra.mxu1 %v5665_v42 }
 0x3f0   :  { %v5207_v16 = vpop.f32.mrb[62].mxu0  ;;  %5248 = vmatprep.mubr.bf16.mxu1 %v1223_v13  ;;  %5287 = vmatpush3.bf16.msra.mxu0 %v5663_v5 }
 0x3f1   :  { %v1185_v17 = vpack.c.bf16 %v5207_v16, %v5206_v12  ;;  %v1102_v18 = vpop.f32.mrb[63].mxu0  ;;  %5249 = vmatmul.mubr.bf16.gmra.mrb[24].mxu1 %v1224_v11  ;;  %5324 = vmatprep.subr.bf16.mxu1 %v5666_v7  ;;  %v1478_v11 = vpack.c.bf16 %v1477_v10, %v1477_v10 }
 0x3f2   :  { %v1184_v19 = vpack.c.bf16 %v1102_v18, %v1099_v15 }
 0x3f3   :  { %v1210_v20 = vadd.bf16 %v6752_v49, %v1185_v17  ;;  %5325 = vmatpush3.bf16.msra.mxu1 %v5666_v7  ;;  %v1480_v12 = vpack.i.b16 %v1478_v11, %v1478_v11 }
 0x3f4   :  { %v1209_v21 = vadd.bf16 %v6752_v49, %v1184_v19 }
 0x3f5   :  { %v1226_v22 = vmax.bf16 %v6330_v32, %v1210_v20  ;;  %v6787_v16 = vrot.slane %v1480_v12, %v6679_v39 }
 0x3f6   :  { %v5210_v23 = vpop.f32.mrb[64].mxu0  ;;  %v1225_v24 = vmax.bf16 %v6330_v32, %v1209_v21 }
 0x3f7   :  { %v1115_v25 = vpop.f32.mrb[65].mxu0 }
 0x3f8   :  { %v5211_v26 = vpop.f32.mrb[66].mxu0  ;;  %5252 = vmatprep.mubr.bf16.mxu1 %v1225_v24 }
 0x3f9   :  { %v1187_v27 = vpack.c.bf16 %v5211_v26, %v5210_v23  ;;  %v1118_v28 = vpop.f32.mrb[67].mxu0  ;;  %5253 = vmatmul.mubr.bf16.gmra.mrb[28].mxu1 %v1226_v22 }
 0x3fa   :  { %v1186_v29 = vpack.c.bf16 %v1118_v28, %v1115_v25 }
 0x3fb   :  { %v1212_v30 = vadd.bf16 %v6752_v49, %v1187_v27 }
 0x3fc   :  { %v1211_v31 = vadd.bf16 %v6752_v49, %v1186_v29 }
 0x3fd   :  { %v1228_v33 = vmax.bf16 %v6330_v32, %v1212_v30 }
 0x3fe   :  { %v5214_v34 = vpop.f32.mrb[68].mxu0  ;;  %v1227_v35 = vmax.bf16 %v6330_v32, %v1211_v31 }
 0x3ff   :  { %v1131_v36 = vpop.f32.mrb[69].mxu0 }
 0x400   :  { %5256 = vmatprep.mubr.bf16.mxu1 %v1227_v35  ;;  %v5215_v38 = vpop.f32.mrb[70].mxu0 }
 0x401   :  { %v1189_v40 = vpack.c.bf16 %v5215_v38, %v5214_v34  ;;  %5257 = vmatmul.mubr.bf16.gmra.mrb[32].mxu1 %v1228_v33  ;;  %v1134_v14 = vpop.f32.mrb[71].mxu0 }
 0x402   :  { %v1188_v41 = vpack.c.bf16 %v1134_v14, %v1131_v36 }
 0x403   :  { %v1214_v43 = vadd.bf16 %v6752_v49, %v1189_v40 }
 0x404   :  { %v1213_v44 = vadd.bf16 %v6752_v49, %v1188_v41 }
 0x405   :  { %v1230_v45 = vmax.bf16 %v6330_v32, %v1214_v43 }
 0x406   :  { %v1229_v46 = vmax.bf16 %v6330_v32, %v1213_v44  ;;  %v5218_v47 = vpop.f32.mrb[72].mxu0 }
 0x407   :  { %v1147_v48 = vpop.f32.mrb[73].mxu0 }
 0x408   :  { %5260 = vmatprep.mubr.bf16.mxu1 %v1229_v46  ;;  %v5219_v50 = vpop.f32.mrb[74].mxu0 }
 0x409   :  { %5261 = vmatmul.mubr.bf16.gmra.mrb[36].mxu1 %v1230_v45  ;;  %v1191_v51 = vpack.c.bf16 %v5219_v50, %v5218_v47  ;;  %v1150_v52 = vpop.f32.mrb[75].mxu0 }
 0x40a   :  { %v1190_v53 = vpack.c.bf16 %v1150_v52, %v1147_v48 }
 0x40b   :  { %v1216_v54 = vadd.bf16 %v6752_v49, %v1191_v51 }
 0x40c   :  { %v1215_v55 = vadd.bf16 %v6752_v49, %v1190_v53 }
 0x40d   :  { %v1232_v56 = vmax.bf16 %v6330_v32, %v1216_v54 }
 0x40e   :  { %v1231_v57 = vmax.bf16 %v6330_v32, %v1215_v55  ;;  %v5222_v58 = vpop.f32.mrb[76].mxu0 }
 0x40f   :  { %v1163_v59 = vpop.f32.mrb[77].mxu0 }
 0x410   :  { %5264 = vmatprep.mubr.bf16.mxu1 %v1231_v57  ;;  %v5223_v60 = vpop.f32.mrb[78].mxu0 }
 0x411   :  { %5265 = vmatmul.mubr.bf16.gmra.mrb[40].mxu1 %v1232_v56  ;;  %v1193_v61 = vpack.c.bf16 %v5223_v60, %v5222_v58  ;;  %v1166_v62 = vpop.f32.mrb[79].mxu0 }
 0x412   :  { %v1192_v63 = vpack.c.bf16 %v1166_v62, %v1163_v59 }
 0x413   :  { %v1218_v0 = vadd.bf16 %v6752_v49, %v1193_v61 }
 0x414   :  { %v1217_v1 = vadd.bf16 %v6752_v49, %v1192_v63  ;;  %v5667_v49 = vld [vmem:[#allocation10 + $0x18] sm:$0xff]  }
 0x415   :  { %v1234_v2 = vmax.bf16 %v6330_v32, %v1218_v0  ;;  %5326 = vmatprep.subr.bf16.mxu1 %v5667_v49 }
 0x416   :  { %v1233_v3 = vmax.bf16 %v6330_v32, %v1217_v1  ;;  %5327 = vmatpush3.bf16.msra.mxu1 %v5667_v49 }
 0x417   :  { %5328 = vmatprep.subr.bf16.mxu1 %v5668_v8 }
 0x418   :  { %5268 = vmatprep.mubr.bf16.mxu1 %v1233_v3 }
 0x419   :  { %5269 = vmatmul.mubr.bf16.gmra.mrb[44].mxu1 %v1234_v2 }
 0x41a   :  { %5329 = vmatpush3.bf16.msra.mxu1 %v5668_v8 }
 0x41b   :  { %5330 = vmatprep.subr.bf16.mxu1 %v5669_v9 }
 0x41e   :  { %5331 = vmatpush3.bf16.msra.mxu1 %v5669_v9 }
 0x4b4   :  { %v5242_v13 = vpop.f32.mrb[16].mxu1 }
 0x4b5   :  { %v1334_v15 = vpop.f32.mrb[17].mxu1 }
 0x4b6   :  { %v5243_v17 = vpop.f32.mrb[18].mxu1 }
 0x4b7   :  { %v1462_v18 = vpack.c.bf16 %v5243_v17, %v5242_v13  ;;  %v1337_v19 = vpop.f32.mrb[19].mxu1 }
 0x4b8   :  { %v1461_v20 = vpack.c.bf16 %v1337_v19, %v1334_v15 }
 0x4b9   :  { %v1487_v21 = vadd.bf16 %v6787_v16, %v1462_v18 }
 0x4ba   :  { %v1486_v22 = vadd.bf16 %v6787_v16, %v1461_v20 }
 0x4bb   :  { %v1503_v25 = vmax.bf16 %v6330_v32, %v1487_v21 }
 0x4bc   :  { %v5246_v23 = vpop.f32.mrb[20].mxu1  ;;  %v1502_v24 = vmax.bf16 %v6330_v32, %v1486_v22 }
 0x4bd   :  { %v1350_v26 = vpop.f32.mrb[21].mxu1 }
 0x4be   :  { %v5247_v27 = vpop.f32.mrb[22].mxu1  ;;  %5288 = vmatprep.mubr.bf16.mxu0 %v1502_v24 }
 0x4bf   :  { %v1464_v28 = vpack.c.bf16 %v5247_v27, %v5246_v23  ;;  %v1353_v29 = vpop.f32.mrb[23].mxu1  ;;  %5289 = vmatmul.mubr.bf16.vlgmr.msra.gmra.mrb[80].mxu0 %v1503_v25 }
 0x4c0   :  { %v1463_v30 = vpack.c.bf16 %v1353_v29, %v1350_v26 }
 0x4c1   :  { %v1489_v31 = vadd.bf16 %v6787_v16, %v1464_v28 }
 0x4c2   :  { %v1488_v33 = vadd.bf16 %v6787_v16, %v1463_v30 }
 0x4c3   :  { %v1505_v38 = vmax.bf16 %v6330_v32, %v1489_v31 }
 0x4c4   :  { %v5250_v34 = vpop.f32.mrb[24].mxu1  ;;  %v1504_v35 = vmax.bf16 %v6330_v32, %v1488_v33 }
 0x4c5   :  { %v1366_v36 = vpop.f32.mrb[25].mxu1 }
 0x4c6   :  { %v5251_v40 = vpop.f32.mrb[26].mxu1  ;;  %5292 = vmatprep.mubr.bf16.mxu0 %v1504_v35 }
 0x4c7   :  { %v1466_v14 = vpack.c.bf16 %v5251_v40, %v5250_v34  ;;  %v1369_v41 = vpop.f32.mrb[27].mxu1  ;;  %5293 = vmatmul.mubr.bf16.gmra.mrb[84].mxu0 %v1505_v38  ;;  %v5671_v38 = vld [vmem:[#allocation10 + $0x38] sm:$0xff]   ;;  %v5674_v40 = vld [vmem:[#allocation13 + $0x4] ss:$8 sps:$4 sm:$0xff]  }
 0x4c8   :  { %v1465_v43 = vpack.c.bf16 %v1369_v41, %v1366_v36  ;;  %v5670_v36 = vld [vmem:[#allocation10 + $0x30] sm:$0xff]  }
 0x4c9   :  { %v1491_v44 = vadd.bf16 %v6787_v16, %v1466_v14  ;;  %5332 = vmatprep.subr.bf16.mxu1 %v5670_v36  ;;  %v1760_v14 = vld [vmem:[#allocation8 + $0x4] sm:$0x1] }
 0x4ca   :  { %v1490_v45 = vadd.bf16 %v6787_v16, %v1465_v43  ;;  %5333 = vmatpush3.bf16.msra.mxu1 %v5670_v36  ;;  %v1761_v41 = vpack.c.bf16 %v1760_v14, %v1760_v14 }
 0x4cb   :  { %v1507_v46 = vmax.bf16 %v6330_v32, %v1491_v44  ;;  %5334 = vmatprep.subr.bf16.mxu1 %v5671_v38 }
 0x4cc   :  { %v5254_v47 = vpop.f32.mrb[28].mxu1  ;;  %v1506_v48 = vmax.bf16 %v6330_v32, %v1490_v45  ;;  %v1763_v43 = vpack.i.b16 %v1761_v41, %v1761_v41 }
 0x4cd   :  { %v1382_v50 = vpop.f32.mrb[29].mxu1 }
 0x4ce   :  { %v5255_v51 = vpop.f32.mrb[30].mxu1  ;;  %5296 = vmatprep.mubr.bf16.mxu0 %v1506_v48  ;;  %5335 = vmatpush3.bf16.msra.mxu1 %v5671_v38 }
 0x4cf   :  { %v1468_v52 = vpack.c.bf16 %v5255_v51, %v5254_v47  ;;  %v1385_v53 = vpop.f32.mrb[31].mxu1  ;;  %5297 = vmatmul.mubr.bf16.gmra.mrb[88].mxu0 %v1507_v46  ;;  %2164 = vmatprep.subr.bf16.mxu1 %v5674_v40  ;;  %v6822_v46 = vrot.slane %v1763_v43, %v6679_v39 }
 0x4d0   :  { %v1467_v54 = vpack.c.bf16 %v1385_v53, %v1382_v50 }
 0x4d1   :  { %v1493_v55 = vadd.bf16 %v6787_v16, %v1468_v52  ;;  %v5672_v52 = vld [vmem:[#allocation13] ss:$8 sps:$4 sm:$0xff]  }
 0x4d2   :  { %v1492_v56 = vadd.bf16 %v6787_v16, %v1467_v54  ;;  %v5677_v54 = vld [vmem:[#allocation13 + $0x14] ss:$8 sps:$4 sm:$0xff]  }
 0x4d3   :  { %v1509_v57 = vmax.bf16 %v6330_v32, %v1493_v55 }
 0x4d4   :  { %v5258_v58 = vpop.f32.mrb[32].mxu1  ;;  %v1508_v59 = vmax.bf16 %v6330_v32, %v1492_v56 }
 0x4d5   :  { %v1398_v60 = vpop.f32.mrb[33].mxu1 }
 0x4d6   :  { %v5259_v61 = vpop.f32.mrb[34].mxu1  ;;  %5300 = vmatprep.mubr.bf16.mxu0 %v1508_v59 }
 0x4d7   :  { %v1470_v62 = vpack.c.bf16 %v5259_v61, %v5258_v58  ;;  %v1401_v63 = vpop.f32.mrb[35].mxu1  ;;  %5301 = vmatmul.mubr.bf16.gmra.mrb[92].mxu0 %v1509_v57  ;;  %v5675_v58 = vld [vmem:[#allocation13 + $0x10] ss:$8 sps:$4 sm:$0xff]  }
 0x4d8   :  { %v1469_v0 = vpack.c.bf16 %v1401_v63, %v1398_v60 }
 0x4d9   :  { %v1495_v1 = vadd.bf16 %v6787_v16, %v1470_v62 }
 0x4da   :  { %v1494_v2 = vadd.bf16 %v6787_v16, %v1469_v0 }
 0x4db   :  { %v1511_v3 = vmax.bf16 %v6330_v32, %v1495_v1 }
 0x4dc   :  { %v5262_v4 = vpop.f32.mrb[36].mxu1  ;;  %v1510_v5 = vmax.bf16 %v6330_v32, %v1494_v2 }
 0x4dd   :  { %v1414_v6 = vpop.f32.mrb[37].mxu1 }
 0x4de   :  { %5304 = vmatprep.mubr.bf16.mxu0 %v1510_v5  ;;  %v5263_v42 = vpop.f32.mrb[38].mxu1 }
 0x4df   :  { %v1472_v7 = vpack.c.bf16 %v5263_v42, %v5262_v4  ;;  %5305 = vmatmul.mubr.bf16.gmra.mrb[96].mxu0 %v1511_v3  ;;  %v1417_v49 = vpop.f32.mrb[39].mxu1 }
 0x4e0   :  { %v1471_v8 = vpack.c.bf16 %v1417_v49, %v1414_v6 }
 0x4e1   :  { %v1497_v9 = vadd.bf16 %v6787_v16, %v1472_v7 }
 0x4e2   :  { %v1496_v10 = vadd.bf16 %v6787_v16, %v1471_v8 }
 0x4e3   :  { %v1513_v11 = vmax.bf16 %v6330_v32, %v1497_v9 }
 0x4e4   :  { %v1512_v12 = vmax.bf16 %v6330_v32, %v1496_v10  ;;  %v5266_v13 = vpop.f32.mrb[40].mxu1 }
 0x4e5   :  { %v1430_v15 = vpop.f32.mrb[41].mxu1 }
 0x4e6   :  { %5308 = vmatprep.mubr.bf16.mxu0 %v1512_v12  ;;  %v5267_v17 = vpop.f32.mrb[42].mxu1 }
 0x4e7   :  { %5309 = vmatmul.mubr.bf16.gmra.mrb[100].mxu0 %v1513_v11  ;;  %v1474_v18 = vpack.c.bf16 %v5267_v17, %v5266_v13  ;;  %v1433_v19 = vpop.f32.mrb[43].mxu1 }
 0x4e8   :  { %v1473_v20 = vpack.c.bf16 %v1433_v19, %v1430_v15 }
 0x4e9   :  { %v1499_v21 = vadd.bf16 %v6787_v16, %v1474_v18 }
 0x4ea   :  { %v1498_v22 = vadd.bf16 %v6787_v16, %v1473_v20 }
 0x4eb   :  { %v1515_v23 = vmax.bf16 %v6330_v32, %v1499_v21 }
 0x4ec   :  { %v1514_v24 = vmax.bf16 %v6330_v32, %v1498_v22  ;;  %v5270_v25 = vpop.f32.mrb[44].mxu1 }
 0x4ed   :  { %v1446_v26 = vpop.f32.mrb[45].mxu1 }
 0x4ee   :  { %5312 = vmatprep.mubr.bf16.mxu0 %v1514_v24  ;;  %v5271_v27 = vpop.f32.mrb[46].mxu1 }
 0x4ef   :  { %5313 = vmatmul.mubr.bf16.gmra.mrb[104].mxu0 %v1515_v23  ;;  %v1476_v28 = vpack.c.bf16 %v5271_v27, %v5270_v25  ;;  %v1449_v29 = vpop.f32.mrb[47].mxu1 }
 0x4f0   :  { %v1475_v30 = vpack.c.bf16 %v1449_v29, %v1446_v26 }
 0x4f1   :  { %v1501_v31 = vadd.bf16 %v6787_v16, %v1476_v28 }
 0x4f2   :  { %v1500_v33 = vadd.bf16 %v6787_v16, %v1475_v30 }
 0x4f3   :  { %v1517_v34 = vmax.bf16 %v6330_v32, %v1501_v31 }
 0x4f4   :  { %v1516_v35 = vmax.bf16 %v6330_v32, %v1500_v33 }
 0x4f6   :  { %5316 = vmatprep.mubr.bf16.mxu0 %v1516_v35 }
 0x4f7   :  { %5317 = vmatmul.mubr.bf16.gmra.mrb[108].mxu0 %v1517_v34 }
 0x592   :  { %v5290_v44 = vpop.f32.mrb[80].mxu0 }
 0x593   :  { %v1617_v45 = vpop.f32.mrb[81].mxu0 }
 0x594   :  { %v5291_v16 = vpop.f32.mrb[82].mxu0 }
 0x595   :  { %v1745_v47 = vpack.c.bf16 %v5291_v16, %v5290_v44  ;;  %v1620_v48 = vpop.f32.mrb[83].mxu0 }
 0x596   :  { %v1744_v50 = vpack.c.bf16 %v1620_v48, %v1617_v45 }
 0x597   :  { %v1770_v53 = vadd.bf16 %v6822_v46, %v1745_v47 }
 0x598   :  { %v1769_v51 = vadd.bf16 %v6822_v46, %v1744_v50 }
 0x59a   :  { %v5294_v55 = vpop.f32.mrb[84].mxu0  ;;  %5336 = vmatprep.mubr.bf16.mxu1 %v1769_v51 }
 0x59b   :  { %v1633_v56 = vpop.f32.mrb[85].mxu0  ;;  %5337 = vmatmul.mubr.bf16.vlgmr.msra.gmra.mrb[48].mxu1 %v1770_v53  ;;  %v5678_v53 = vld [vmem:[#allocation13 + $0x20] ss:$8 sps:$4 sm:$0xff]  }
 0x59c   :  { %v5295_v57 = vpop.f32.mrb[86].mxu0  ;;  %2165 = vmatpush1.bf16.msra.mxu1 %v5672_v52  ;;  %v5680_v52 = vld [vmem:[#allocation13 + $0x24] ss:$8 sps:$4 sm:$0xff]  }
 0x59d   :  { %v1747_v59 = vpack.c.bf16 %v5295_v57, %v5294_v55  ;;  %v1636_v60 = vpop.f32.mrb[87].mxu0  ;;  %2166 = vmatprep.subr.bf16.mxu1 %v5677_v54  ;;  %v5683_v54 = vld [vmem:[#allocation13 + $0x34] ss:$8 sps:$4 sm:$0xff]   ;;  %v5681_v55 = vld [vmem:[#allocation13 + $0x30] ss:$8 sps:$4 sm:$0xff]  }
 0x59e   :  { %v1746_v61 = vpack.c.bf16 %v1636_v60, %v1633_v56  ;;  %v2026_v56 = vld [vmem:[#allocation11] sm:$0x1] }
 0x59f   :  { %v1772_v63 = vadd.bf16 %v6822_v46, %v1747_v59  ;;  %v2027_v57 = vpack.c.bf16 %v2026_v56, %v2026_v56  ;;  %v5714_v56 = vld [vmem:[#allocation20 + $0x20] ss:$8 sps:$4 sm:$0xff]  }
 0x5a0   :  { %v1771_v62 = vadd.bf16 %v6822_v46, %v1746_v61  ;;  %2167 = vmatpush1.bf16.msra.mxu1 %v5675_v58 }
 0x5a1   :  { %2168 = vmatprep.subr.bf16.mxu1 %v5680_v52  ;;  %v2029_v58 = vpack.i.b16 %v2027_v57, %v2027_v57 }
 0x5a2   :  { %v5298_v0 = vpop.f32.mrb[88].mxu0  ;;  %5340 = vmatprep.mubr.bf16.mxu1 %v1771_v62 }
 0x5a3   :  { %v1649_v1 = vpop.f32.mrb[89].mxu0  ;;  %5341 = vmatmul.mubr.bf16.gmra.mrb[52].mxu1 %v1772_v63 }
 0x5a4   :  { %v5299_v2 = vpop.f32.mrb[90].mxu0  ;;  %2169 = vmatpush1.bf16.msra.mxu1 %v5678_v53  ;;  %v5716_v53 = vld [vmem:[#allocation20 + $0x24] ss:$8 sps:$4 sm:$0xff]  }
 0x5a5   :  { %v1749_v3 = vpack.c.bf16 %v5299_v2, %v5298_v0  ;;  %v1652_v4 = vpop.f32.mrb[91].mxu0  ;;  %2170 = vmatprep.subr.bf16.mxu1 %v5683_v54 }
 0x5a6   :  { %v1748_v5 = vpack.c.bf16 %v1652_v4, %v1649_v1 }
 0x5a7   :  { %v1774_v42 = vadd.bf16 %v6822_v46, %v1749_v3 }
 0x5a8   :  { %v1773_v6 = vadd.bf16 %v6822_v46, %v1748_v5  ;;  %2171 = vmatpush1.bf16.msra.mxu1 %v5681_v55 }
 0x5aa   :  { %v5302_v7 = vpop.f32.mrb[92].mxu0  ;;  %5344 = vmatprep.mubr.bf16.mxu1 %v1773_v6 }
 0x5ab   :  { %v1665_v49 = vpop.f32.mrb[93].mxu0  ;;  %5345 = vmatmul.mubr.bf16.gmra.mrb[56].mxu1 %v1774_v42 }
 0x5ac   :  { %v5303_v8 = vpop.f32.mrb[94].mxu0 }
 0x5ad   :  { %v1751_v9 = vpack.c.bf16 %v5303_v8, %v5302_v7  ;;  %v1668_v10 = vpop.f32.mrb[95].mxu0 }
 0x5ae   :  { %v1750_v11 = vpack.c.bf16 %v1668_v10, %v1665_v49 }
 0x5af   :  { %v1776_v12 = vadd.bf16 %v6822_v46, %v1751_v9 }
 0x5b0   :  { %v1775_v13 = vadd.bf16 %v6822_v46, %v1750_v11 }
 0x5b2   :  { %v5306_v15 = vpop.f32.mrb[96].mxu0  ;;  %5348 = vmatprep.mubr.bf16.mxu1 %v1775_v13 }
 0x5b3   :  { %v1681_v17 = vpop.f32.mrb[97].mxu0  ;;  %5349 = vmatmul.mubr.bf16.gmra.mrb[60].mxu1 %v1776_v12 }
 0x5b4   :  { %v5307_v18 = vpop.f32.mrb[98].mxu0 }
 0x5b5   :  { %v1753_v19 = vpack.c.bf16 %v5307_v18, %v5306_v15  ;;  %v1684_v20 = vpop.f32.mrb[99].mxu0 }
 0x5b6   :  { %v1752_v21 = vpack.c.bf16 %v1684_v20, %v1681_v17 }
 0x5b7   :  { %v1778_v22 = vadd.bf16 %v6822_v46, %v1753_v19 }
 0x5b8   :  { %v1777_v23 = vadd.bf16 %v6822_v46, %v1752_v21 }
 0x5ba   :  { %5352 = vmatprep.mubr.bf16.mxu1 %v1777_v23  ;;  %v5310_v24 = vpop.f32.mrb[100].mxu0 }
 0x5bb   :  { %5353 = vmatmul.mubr.bf16.gmra.mrb[64].mxu1 %v1778_v22  ;;  %v1697_v25 = vpop.f32.mrb[101].mxu0 }
 0x5bc   :  { %v5311_v26 = vpop.f32.mrb[102].mxu0 }
 0x5bd   :  { %v1755_v27 = vpack.c.bf16 %v5311_v26, %v5310_v24  ;;  %v1700_v28 = vpop.f32.mrb[103].mxu0 }
 0x5be   :  { %v1754_v29 = vpack.c.bf16 %v1700_v28, %v1697_v25 }
 0x5bf   :  { %v1780_v30 = vadd.bf16 %v6822_v46, %v1755_v27 }
 0x5c0   :  { %v1779_v31 = vadd.bf16 %v6822_v46, %v1754_v29 }
 0x5c2   :  { %5356 = vmatprep.mubr.bf16.mxu1 %v1779_v31  ;;  %v5314_v33 = vpop.f32.mrb[104].mxu0 }
 0x5c3   :  { %5357 = vmatmul.mubr.bf16.gmra.mrb[68].mxu1 %v1780_v30  ;;  %v1713_v34 = vpop.f32.mrb[105].mxu0 }
 0x5c4   :  { %v5315_v35 = vpop.f32.mrb[106].mxu0 }
 0x5c5   :  { %v1757_v36 = vpack.c.bf16 %v5315_v35, %v5314_v33  ;;  %v1716_v38 = vpop.f32.mrb[107].mxu0 }
 0x5c6   :  { %v1756_v40 = vpack.c.bf16 %v1716_v38, %v1713_v34 }
 0x5c7   :  { %v1782_v14 = vadd.bf16 %v6822_v46, %v1757_v36  ;;  %v5710_v36 = vld [vmem:[#allocation20 + $0x4] ss:$8 sps:$4 sm:$0xff]  }
 0x5c8   :  { %v1781_v41 = vadd.bf16 %v6822_v46, %v1756_v40  ;;  %v5708_v40 = vld [vmem:[#allocation20] ss:$8 sps:$4 sm:$0xff]   ;;  %3556 = vmatprep.subr.bf16.mxu0 %v5710_v36  ;;  %v5740_v36 = vld [vmem:[#allocation20 + $0x94] ss:$8 sps:$4 sm:$0xff]  }
 0x5c9   :  { %3557 = vmatpush1.bf16.msra.mxu0 %v5708_v40  ;;  %v5743_v40 = vld [vmem:[#allocation20 + $0xa4] ss:$8 sps:$4 sm:$0xff]  }
 0x5ca   :  { %5360 = vmatprep.mubr.bf16.mxu1 %v1781_v41  ;;  %v5318_v43 = vpop.f32.mrb[108].mxu0 }
 0x5cb   :  { %5361 = vmatmul.mubr.bf16.gmra.mrb[72].mxu1 %v1782_v14  ;;  %v1729_v44 = vpop.f32.mrb[109].mxu0 }
 0x5cc   :  { %v5319_v45 = vpop.f32.mrb[110].mxu0 }
 0x5cd   :  { %v1759_v16 = vpack.c.bf16 %v5319_v45, %v5318_v43  ;;  %v1732_v47 = vpop.f32.mrb[111].mxu0 }
 0x5ce   :  { %v1758_v48 = vpack.c.bf16 %v1732_v47, %v1729_v44 }
 0x5cf   :  { %v1784_v50 = vadd.bf16 %v6822_v46, %v1759_v16  ;;  %v5713_v16 = vld [vmem:[#allocation20 + $0x14] ss:$8 sps:$4 sm:$0xff]  }
 0x5d0   :  { %v1783_v51 = vadd.bf16 %v6822_v46, %v1758_v48  ;;  %v6842_v46 = vrot.slane %v2029_v58, %v6679_v39  ;;  %3558 = vmatprep.subr.bf16.mxu0 %v5713_v16  ;;  %v5749_v16 = vld [vmem:[#allocation20 + $0xb4] ss:$8 sps:$4 sm:$0xff]  }
 0x5d2   :  { %5364 = vmatprep.mubr.bf16.mxu1 %v1783_v51 }
 0x5d3   :  { %5365 = vmatmul.mubr.bf16.gmra.mrb[76].mxu1 %v1784_v50  ;;  %v5711_v50 = vld [vmem:[#allocation20 + $0x10] ss:$8 sps:$4 sm:$0xff]  }
 0x5d4   :  { %2196 = vmatprep.mubr.bf16.mxu1 %v6330_v32  ;;  %3559 = vmatpush1.bf16.msra.mxu0 %v5711_v50 }
 0x5d5   :  { %3560 = vmatprep.subr.bf16.mxu0 %v5716_v53  ;;  %v2450_v53 = vld [vmem:[#allocation23] sm:$0x1] }
 0x5d6   :  { %2453 = vperm.xlu0 %5607, %v2450_v53   ;;  %v5797_v53 = vld [vmem:[#allocation16 + $0xd4] ss:$8 sps:$4 sm:$0xff]  }
 0x5d8   :  { %3561 = vmatpush1.bf16.msra.mxu0 %v5714_v56  ;;  %v5686_v56 = vld [vmem:[#allocation17 + $0x4] ss:$8 sps:$4 sm:$0xff]  }
 0x66e   :  { %v5338_v59 = vpop.f32.mrb[48].mxu1 }
 0x66f   :  { %v1883_v60 = vpop.f32.mrb[49].mxu1 }
 0x670   :  { %v5339_v61 = vpop.f32.mrb[50].mxu1 }
 0x671   :  { %v2011_v62 = vpack.c.bf16 %v5339_v61, %v5338_v59  ;;  %v1886_v63 = vpop.f32.mrb[51].mxu1 }
 0x672   :  { %v2010_v0 = vpack.c.bf16 %v1886_v63, %v1883_v60 }
 0x673   :  { %v2036_v7 = vadd.bf16 %v6842_v46, %v2011_v62  ;;  %v5719_v62 = vld [vmem:[#allocation20 + $0x34] ss:$8 sps:$4 sm:$0xff]  }
 0x674   :  { %v2035_v1 = vadd.bf16 %v6842_v46, %v2010_v0  ;;  %3562 = vmatprep.subr.bf16.mxu0 %v5719_v62  ;;  %v5689_v62 = vld [vmem:[#allocation17 + $0x14] ss:$8 sps:$4 sm:$0xff]  }
 0x675   :  { %v6850_v8 = vmax.bf16 %v6330_v32, %v2036_v7 }
 0x676   :  { %v2051_v2 = vmax.bf16 %v6330_v32, %v2035_v1  ;;  %v5342_v3 = vpop.f32.mrb[52].mxu1  ;;  %v5717_v1 = vld [vmem:[#allocation20 + $0x30] ss:$8 sps:$4 sm:$0xff]  }
 0x677   :  { %v1899_v4 = vpop.f32.mrb[53].mxu1  ;;  %v2120_v63 = vsel %vm2115_vm0, %v6850_v8, 0  ;;  %3563 = vmatpush1.bf16.msra.mxu0 %v5717_v1  ;;  %v5690_v1 = vld [vmem:[#allocation17 + $0x20] ss:$8 sps:$4 sm:$0xff]  }
 0x678   :  { %v5343_v5 = vpop.f32.mrb[54].mxu1  ;;  %4770 = vmatmul.mubr.msk.bf16.vlgmr.msra.gmra.mrb[80].mxu1 %vm2115_vm0, %v2051_v2  ;;  %v2117_v48 = vsel %vm2115_vm0, %v2051_v2, 0 }
 0x679   :  { %v2013_v6 = vpack.c.bf16 %v5343_v5, %v5342_v3  ;;  %v1902_v42 = vpop.f32.mrb[55].mxu1  ;;  %2206 = vmatprep.mubr.bf16.mxu1 %v6330_v32 }
 0x67a   :  { %v2012_v49 = vpack.c.bf16 %v1902_v42, %v1899_v4  ;;  %v5722_v4 = vld [vmem:[#allocation20 + $0x44] ss:$8 sps:$4 sm:$0xff]  }
 0x67b   :  { %v2038_v24 = vadd.bf16 %v6842_v46, %v2013_v6  ;;  %3564 = vmatprep.subr.bf16.mxu0 %v5722_v4  ;;  %v5698_v4 = vld [vmem:[#allocation17 + $0x44] ss:$8 sps:$4 sm:$0xff]  }
 0x67c   :  { %v2037_v15 = vadd.bf16 %v6842_v46, %v2012_v49  ;;  %v5720_v49 = vld [vmem:[#allocation20 + $0x40] ss:$8 sps:$4 sm:$0xff]  }
 0x67d   :  { %v6873_v26 = vmax.bf16 %v6330_v32, %v2038_v24  ;;  %3565 = vmatpush1.bf16.msra.mxu0 %v5720_v49  ;;  %v5728_v24 = vld [vmem:[#allocation20 + $0x64] ss:$8 sps:$4 sm:$0xff]   ;;  %v5702_v49 = vld [vmem:[#allocation17 + $0x60] ss:$8 sps:$4 sm:$0xff]  }
 0x67e   :  { %v5346_v9 = vpop.f32.mrb[56].mxu1  ;;  %v6857_v18 = vmax.bf16 %v6330_v32, %v2037_v15 }
 0x67f   :  { %v1915_v10 = vpop.f32.mrb[57].mxu1 }
 0x680   :  { %v5347_v11 = vpop.f32.mrb[58].mxu1  ;;  %4771 = vmatmul.mubr.msk.bf16.gmra.mrb[84].mxu1 %vm2115_vm0, %v6850_v8 }
 0x681   :  { %v2015_v12 = vpack.c.bf16 %v5347_v11, %v5346_v9  ;;  %v1918_v13 = vpop.f32.mrb[59].mxu1  ;;  %2216 = vmatprep.mubr.bf16.mxu1 %v6330_v32 }
 0x682   :  { %v2014_v17 = vpack.c.bf16 %v1918_v13, %v1915_v10  ;;  %v2123_v13 = vsel %vm2115_vm0, %v6857_v18, 0 }
 0x683   :  { %v2040_v54 = vadd.bf16 %v6842_v46, %v2015_v12  ;;  %v5725_v12 = vld [vmem:[#allocation20 + $0x54] ss:$8 sps:$4 sm:$0xff]  }
 0x684   :  { %v2039_v33 = vadd.bf16 %v6842_v46, %v2014_v17  ;;  %v5723_v17 = vld [vmem:[#allocation20 + $0x50] ss:$8 sps:$4 sm:$0xff]   ;;  %3566 = vmatprep.subr.bf16.mxu0 %v5725_v12  ;;  %v5746_v12 = vld [vmem:[#allocation16 + $0x14] ss:$8 sps:$4 sm:$0xff]  }
 0x685   :  { %v6901_v58 = vmax.bf16 %v6330_v32, %v2040_v54  ;;  %3567 = vmatpush1.bf16.msra.mxu0 %v5723_v17  ;;  %v5761_v54 = vld [vmem:[#allocation20 + $0xe4] ss:$8 sps:$4 sm:$0xff]  }
 0x686   :  { %v6859_v19 = vpop.f32.mrb[60].mxu1  ;;  %v6882_v14 = vmax.bf16 %v6330_v32, %v2039_v33  ;;  %3568 = vmatprep.subr.bf16.mxu0 %v5728_v24  ;;  %v5729_v33 = vld [vmem:[#allocation20 + $0x70] ss:$8 sps:$4 sm:$0xff]   ;;  %v5755_v17 = vld [vmem:[#allocation16 + $0x24] ss:$8 sps:$4 sm:$0xff]   ;;  %v5893_v24 = vld [vmem:[#allocation2 + $0x8] sm:$0xff]  }
 0x687   :  { %v6861_v20 = vpop.f32.mrb[61].mxu1 }
 0x688   :  { %v6863_v21 = vpop.f32.mrb[62].mxu1  ;;  %4772 = vmatmul.mubr.msk.bf16.gmra.mrb[88].mxu1 %vm2115_vm0, %v6857_v18 }
 0x689   :  { %v2017_v22 = vpack.c.bf16 %v6863_v21, %v6859_v19  ;;  %v1934_v23 = vpop.f32.mrb[63].mxu1  ;;  %2226 = vmatprep.mubr.bf16.mxu1 %v6330_v32  ;;  %v5731_v21 = vld [vmem:[#allocation20 + $0x74] ss:$8 sps:$4 sm:$0xff]  }
 0x68a   :  { %v2016_v25 = vpack.c.bf16 %v1934_v23, %v6861_v20 }
 0x68c   :  { %v2041_v5 = vadd.bf16 %v6842_v46, %v2016_v25  ;;  %v2042_v25 = vadd.bf16 %v6842_v46, %v2017_v22  ;;  %v2126_v22 = vsel %vm2115_vm0, %v6873_v26, 0 }
 0x68e   :  { %v5354_v27 = vpop.f32.mrb[64].mxu1  ;;  %v6917_v8 = vmax.bf16 %v6330_v32, %v2041_v5  ;;  %v5696_v5 = vld [vmem:[#allocation17 + $0x40] ss:$8 sps:$4 sm:$0xff]  }
 0x68f   :  { %v1947_v28 = vpop.f32.mrb[65].mxu1 }
 0x690   :  { %v5355_v29 = vpop.f32.mrb[66].mxu1  ;;  %4773 = vmatmul.mubr.msk.bf16.gmra.mrb[92].mxu1 %vm2115_vm0, %v6873_v26  ;;  %v2129_v26 = vsel %vm2115_vm0, %v6882_v14, 0 }
 0x691   :  { %v2019_v30 = vpack.c.bf16 %v5355_v29, %v5354_v27  ;;  %v1950_v31 = vpop.f32.mrb[67].mxu1  ;;  %2236 = vmatprep.mubr.bf16.mxu1 %v6330_v32  ;;  %v5726_v29 = vld [vmem:[#allocation20 + $0x60] ss:$8 sps:$4 sm:$0xff]  }
 0x692   :  { %v2018_v34 = vpack.c.bf16 %v1950_v31, %v1947_v28  ;;  %v6937_v31 = vmax.bf16 %v6330_v32, %v2042_v25  ;;  %3569 = vmatpush1.bf16.msra.mxu0 %v5726_v29  ;;  %v5762_v25 = vld [vmem:[#allocation16 + $0x30] ss:$8 sps:$4 sm:$0xff]   ;;  %v5894_v29 = vld [vmem:[#allocation2 + $0x10] sm:$0xff]  }
 0x693   :  { %v2044_v35 = vadd.bf16 %v6842_v46, %v2019_v30  ;;  %3570 = vmatprep.subr.bf16.mxu0 %v5731_v21  ;;  %v5779_v21 = vld [vmem:[#allocation16 + $0x74] ss:$8 sps:$4 sm:$0xff]  }
 0x694   :  { %v2043_v38 = vadd.bf16 %v6842_v46, %v2018_v34  ;;  %v5734_v34 = vld [vmem:[#allocation20 + $0x84] ss:$8 sps:$4 sm:$0xff]  }
 0x695   :  { %v6885_v41 = vmax.bf16 %v6330_v32, %v2044_v35 }
 0x696   :  { %v6888_v43 = vmax.bf16 %v6330_v32, %v2043_v38  ;;  %v5358_v44 = vpop.f32.mrb[68].mxu1  ;;  %3571 = vmatpush1.bf16.msra.mxu0 %v5729_v33  ;;  %v5738_v38 = vld [vmem:[#allocation20 + $0x90] ss:$8 sps:$4 sm:$0xff]  }
 0x697   :  { %v1963_v45 = vpop.f32.mrb[69].mxu1  ;;  %3572 = vmatprep.subr.bf16.mxu0 %v5734_v34  ;;  %v5777_v33 = vld [vmem:[#allocation16 + $0x70] ss:$8 sps:$4 sm:$0xff]   ;;  %v5782_v34 = vld [vmem:[#allocation16 + $0x84] ss:$8 sps:$4 sm:$0xff]  }
 0x698   :  { %4774 = vmatmul.mubr.msk.bf16.gmra.mrb[96].mxu1 %vm2115_vm0, %v6882_v14  ;;  %5576 = vmatprep.subr.msk.bf16.mxu1 %vm2115_vm0, %v6888_v43  ;;  %v5359_v47 = vpop.f32.mrb[70].mxu1  ;;  %v2132_v14 = vsel %vm2115_vm0, %v6901_v58, 0 }
 0x699   :  { %v2021_v51 = vpack.c.bf16 %v5359_v47, %v5358_v44  ;;  %5063 = vmatpush3.bf16.xpose.msra.mxu1 %v2117_v48  ;;  %v1966_v52 = vpop.f32.mrb[71].mxu1  ;;  %2246 = vmatprep.mubr.bf16.mxu1 %v6330_v32  ;;  %v5741_v44 = vld [vmem:[#allocation20 + $0xa0] ss:$8 sps:$4 sm:$0xff]   ;;  %v5752_v47 = vld [vmem:[#allocation20 + $0xc4] ss:$8 sps:$4 sm:$0xff]  }
 0x69a   :  { %v2020_v55 = vpack.c.bf16 %v1966_v52, %v1963_v45  ;;  %5577 = vmatprep.subr.msk.bf16.mxu1 %vm2115_vm0, %v6885_v41  ;;  %v5750_v48 = vld [vmem:[#allocation20 + $0xc0] ss:$8 sps:$4 sm:$0xff]   ;;  %v5756_v52 = vld [vmem:[#allocation20 + $0xd0] ss:$8 sps:$4 sm:$0xff]  }
 0x69b   :  { %v2046_v6 = vadd.bf16 %v6842_v46, %v2021_v51  ;;  %v5758_v51 = vld [vmem:[#allocation20 + $0xd4] ss:$8 sps:$4 sm:$0xff]  }
 0x69c   :  { %v2045_v57 = vadd.bf16 %v6842_v46, %v2020_v55  ;;  %v5759_v55 = vld [vmem:[#allocation20 + $0xe0] ss:$8 sps:$4 sm:$0xff]  }
 0x69d   :  { %v6920_v9 = vmax.bf16 %v6330_v32, %v2046_v6  ;;  %v5701_v6 = vld [vmem:[#allocation17 + $0x54] ss:$8 sps:$4 sm:$0xff]  }
 0x69e   :  { %v6904_v59 = vmax.bf16 %v6330_v32, %v2045_v57  ;;  %v5362_v60 = vpop.f32.mrb[72].mxu1  ;;  %v5767_v57 = vld [vmem:[#allocation20 + $0xf4] ss:$8 sps:$4 sm:$0xff]  }
 0x69f   :  { %v1979_v61 = vpop.f32.mrb[73].mxu1 }
 0x6a0   :  { %4775 = vmatmul.mubr.msk.bf16.gmra.mrb[100].mxu1 %vm2115_vm0, %v6901_v58  ;;  %v5363_v0 = vpop.f32.mrb[74].mxu1  ;;  %v2138_v58 = vsel %vm2115_vm0, %v6937_v31, 0 }
 0x6a1   :  { %5065 = vmatpush3.bf16.xpose.msra.mxu1 %v2120_v63  ;;  %2256 = vmatprep.mubr.bf16.mxu1 %v6330_v32  ;;  %v2023_v2 = vpack.c.bf16 %v5363_v0, %v5362_v60  ;;  %v1982_v3 = vpop.f32.mrb[75].mxu1  ;;  %v2449_v60 = vld [vmem:[#allocation14] sm:$0x1]  ;;  %v5687_v63 = vld [vmem:[#allocation17 + $0x10] ss:$8 sps:$4 sm:$0xff]  }
 0x6a2   :  { %5578 = vmatprep.subr.msk.bf16.mxu1 %vm2115_vm0, %v6904_v59  ;;  %v2022_v42 = vpack.c.bf16 %v1982_v3, %v1979_v61  ;;  %v5684_v61 = vld [vmem:[#allocation17] ss:$8 sps:$4 sm:$0xff]   ;;  %v5692_v0 = vld [vmem:[#allocation17 + $0x24] ss:$8 sps:$4 sm:$0xff]   ;;  %v5693_v3 = vld [vmem:[#allocation17 + $0x30] ss:$8 sps:$4 sm:$0xff]  }
 0x6a3   :  { %v2048_v7 = vadd.bf16 %v6842_v46, %v2023_v2  ;;  %v5695_v2 = vld [vmem:[#allocation17 + $0x34] ss:$8 sps:$4 sm:$0xff]  }
 0x6a4   :  { %v2047_v27 = vadd.bf16 %v6842_v46, %v2022_v42  ;;  %v5699_v42 = vld [vmem:[#allocation17 + $0x50] ss:$8 sps:$4 sm:$0xff]  }
 0x6a5   :  { %v2064_v35 = vmax.bf16 %v6330_v32, %v2048_v7  ;;  %v5704_v7 = vld [vmem:[#allocation17 + $0x64] ss:$8 sps:$4 sm:$0xff]  }
 0x6a6   :  { %v5366_v10 = vpop.f32.mrb[76].mxu1  ;;  %v6940_v19 = vmax.bf16 %v6330_v32, %v2047_v27  ;;  %v5770_v27 = vld [vmem:[#allocation16 + $0x44] ss:$8 sps:$4 sm:$0xff]  }
 0x6a7   :  { %v1995_v11 = vpop.f32.mrb[77].mxu1 }
 0x6a8   :  { %4776 = vmatmul.mubr.msk.bf16.gmra.mrb[104].mxu1 %vm2115_vm0, %v6917_v8  ;;  %v5367_v15 = vpop.f32.mrb[78].mxu1 }
 0x6a9   :  { %5067 = vmatpush3.bf16.xpose.msra.mxu1 %v2123_v13  ;;  %2266 = vmatprep.mubr.bf16.mxu1 %v6330_v32  ;;  %v2025_v20 = vpack.c.bf16 %v5367_v15, %v5366_v10  ;;  %v1998_v23 = vpop.f32.mrb[79].mxu1  ;;  %v5737_v10 = vld [vmem:[#allocation16 + $0x4] ss:$8 sps:$4 sm:$0xff]   ;;  %v5892_v13 = vld [vmem:[#allocation2] sm:$0xff]  }
 0x6aa   :  { %5579 = vmatprep.subr.msk.bf16.mxu1 %vm2115_vm0, %v6920_v9  ;;  %v2024_v28 = vpack.c.bf16 %v1998_v23, %v1995_v11  ;;  %v5735_v11 = vld [vmem:[#allocation16] ss:$8 sps:$4 sm:$0xff]   ;;  %v5744_v15 = vld [vmem:[#allocation16 + $0x10] ss:$8 sps:$4 sm:$0xff]   ;;  %v5764_v23 = vld [vmem:[#allocation16 + $0x34] ss:$8 sps:$4 sm:$0xff]  }
 0x6ab   :  { %v2050_v18 = vadd.bf16 %v6842_v46, %v2025_v20  ;;  %v5753_v20 = vld [vmem:[#allocation16 + $0x20] ss:$8 sps:$4 sm:$0xff]  }
 0x6ac   :  { %v2049_v30 = vadd.bf16 %v6842_v46, %v2024_v28  ;;  %v5732_v46 = vld [vmem:[#allocation20 + $0x80] ss:$8 sps:$4 sm:$0xff]  }
 0x6ad   :  { %3573 = vmatpush1.bf16.msra.mxu0 %v5732_v46  ;;  %v2066_v50 = vmax.bf16 %v6330_v32, %v2050_v18  ;;  %v5768_v28 = vld [vmem:[#allocation16 + $0x40] ss:$8 sps:$4 sm:$0xff]   ;;  %v5773_v18 = vld [vmem:[#allocation16 + $0x54] ss:$8 sps:$4 sm:$0xff]  }
 0x6ae   :  { %3574 = vmatprep.subr.bf16.mxu0 %v5740_v36  ;;  %v2065_v45 = vmax.bf16 %v6330_v32, %v2049_v30  ;;  %v5771_v30 = vld [vmem:[#allocation16 + $0x50] ss:$8 sps:$4 sm:$0xff]   ;;  %v5780_v46 = vld [vmem:[#allocation16 + $0x80] ss:$8 sps:$4 sm:$0xff]  }
 0x6af   :  { %v5896_v36 = vld [vmem:[#allocation2 + $0x20] sm:$0xff]  }
 0x6b0   :  { %4777 = vmatmul.mubr.msk.bf16.gmra.mrb[108].mxu1 %vm2115_vm0, %v6937_v31  ;;  %v5776_v31 = vld [vmem:[#allocation16 + $0x64] ss:$8 sps:$4 sm:$0xff]  }
 0x6b1   :  { %5069 = vmatpush3.bf16.xpose.msra.mxu1 %v2126_v22  ;;  %2276 = vmatprep.mubr.bf16.mxu1 %v6330_v32  ;;  %v5895_v22 = vld [vmem:[#allocation2 + $0x18] sm:$0xff]  }
 0x6b2   :  { %5580 = vmatprep.subr.msk.bf16.mxu1 %vm2115_vm0, %v6940_v19  ;;  %3575 = vmatpush1.bf16.msra.mxu0 %v5738_v38  ;;  %v5788_v38 = vld [vmem:[#allocation16 + $0xa4] ss:$8 sps:$4 sm:$0xff]  }
 0x6b3   :  { %3576 = vmatprep.subr.bf16.mxu0 %v5743_v40  ;;  %v6992_v40 = vsub.s32 1, %v6676_v37 }
 0x6b6   :  { %3577 = vmatpush1.bf16.msra.mxu0 %v5741_v44  ;;  %v5786_v44 = vld [vmem:[#allocation16 + $0xa0] ss:$8 sps:$4 sm:$0xff]  }
 0x6b7   :  { %3578 = vmatprep.subr.bf16.mxu0 %v5749_v16  ;;  %v5791_v16 = vld [vmem:[#allocation16 + $0xb4] ss:$8 sps:$4 sm:$0xff]  }
 0x6b8   :  { %4778 = vmatmul.mubr.msk.bf16.gmra.mrb[112].mxu1 %vm2115_vm0, %v6888_v43  ;;  %v5747_v43 = vld [vmem:[#allocation20 + $0xb0] ss:$8 sps:$4 sm:$0xff]  }
 0x6b9   :  { %5071 = vmatpush3.bf16.xpose.msra.mxu1 %v2129_v26  ;;  %2286 = vmatprep.mubr.bf16.mxu1 %v6330_v32  ;;  %v5783_v26 = vld [vmem:[#allocation16 + $0x90] ss:$8 sps:$4 sm:$0xff]  }
 0x6ba   :  { %5581 = vmatprep.subr.msk.bf16.mxu1 %vm2115_vm0, %v2064_v35  ;;  %3579 = vmatpush1.bf16.msra.mxu0 %v5747_v43 }
 0x6bb   :  { %3580 = vmatprep.subr.bf16.mxu0 %v5752_v47  ;;  %v5789_v47 = vld [vmem:[#allocation16 + $0xb0] ss:$8 sps:$4 sm:$0xff]  }
 0x6be   :  { %3581 = vmatpush1.bf16.msra.mxu0 %v5750_v48 }
 0x6bf   :  { %3582 = vmatprep.subr.bf16.mxu0 %v5758_v51 }
 0x6c0   :  { %4779 = vmatmul.mubr.msk.bf16.gmra.mrb[116].mxu1 %vm2115_vm0, %v6885_v41  ;;  %v2135_v41 = vsel %vm2115_vm0, %v6917_v8, 0  ;;  %v5707_v8 = vld [vmem:[#allocation17 + $0x74] ss:$8 sps:$4 sm:$0xff]  }
 0x6c1   :  { %5073 = vmatpush3.bf16.xpose.msra.mxu1 %v2132_v14  ;;  %2296 = vmatprep.mubr.bf16.mxu1 %v6330_v32  ;;  %v5897_v14 = vld [vmem:[#allocation2 + $0x28] sm:$0xff]  }
 0x6c2   :  { %5582 = vmatprep.subr.msk.bf16.mxu1 %vm2115_vm0, %v2065_v45  ;;  %3583 = vmatpush1.bf16.msra.mxu0 %v5756_v52 }
 0x6c3   :  { %3584 = vmatprep.subr.bf16.mxu0 %v5761_v54  ;;  %v5898_v54 = vld [vmem:[#allocation2 + $0x30] sm:$0xff]  }
 0x6c6   :  { %3585 = vmatpush1.bf16.msra.mxu0 %v5759_v55 }
 0x6c7   :  { %3586 = vmatprep.subr.bf16.mxu0 %v5767_v57 }
 0x6c8   :  { %4780 = vmatmul.mubr.msk.bf16.gmra.mrb[120].mxu1 %vm2115_vm0, %v6904_v59  ;;  %v5765_v59 = vld [vmem:[#allocation20 + $0xf0] ss:$8 sps:$4 sm:$0xff]  }
 0x6c9   :  { %5075 = vmatpush3.bf16.xpose.msra.mxu1 %v2135_v41  ;;  %2306 = vmatprep.mubr.bf16.mxu1 %v6330_v32  ;;  %v5792_v41 = vld [vmem:[#allocation16 + $0xc0] ss:$8 sps:$4 sm:$0xff]  }
 0x6ca   :  { %5583 = vmatprep.subr.msk.bf16.mxu1 %vm2115_vm0, %v2066_v50  ;;  %3587 = vmatpush1.bf16.msra.mxu0 %v5765_v59 }
 0x6d0   :  { %4781 = vmatmul.mubr.msk.bf16.gmra.mrb[124].mxu1 %vm2115_vm0, %v6920_v9  ;;  %v5705_v9 = vld [vmem:[#allocation17 + $0x70] ss:$8 sps:$4 sm:$0xff]  }
 0x6d1   :  { %5077 = vmatpush3.bf16.xpose.msra.mxu1 %v2138_v58  ;;  %2316 = vmatprep.mubr.bf16.mxu1 %v6330_v32  ;;  %v5800_v58 = vld [vmem:[#allocation16 + $0xe4] ss:$8 sps:$4 sm:$0xff]  }
 0x6d2   :  { %2661 = vmatprep.subr.bf16.mxu1 %v5686_v56  ;;  %v5795_v56 = vld [vmem:[#allocation16 + $0xd0] ss:$8 sps:$4 sm:$0xff]  }
 0x6d8   :  { %4782 = vmatmul.mubr.msk.bf16.gmra.mrb[128].mxu1 %vm2115_vm0, %v6940_v19  ;;  %v5774_v19 = vld [vmem:[#allocation16 + $0x60] ss:$8 sps:$4 sm:$0xff]  }
 0x6d9   :  { %2326 = vmatprep.mubr.bf16.mxu1 %v6330_v32 }
 0x6e0   :  { %4783 = vmatmul.mubr.msk.bf16.gmra.mrb[132].mxu1 %vm2115_vm0, %v2064_v35  ;;  %v5785_v35 = vld [vmem:[#allocation16 + $0x94] ss:$8 sps:$4 sm:$0xff]  }
 0x6e1   :  { %2336 = vmatprep.mubr.bf16.mxu1 %v6330_v32 }
 0x6e8   :  { %4784 = vmatmul.mubr.msk.bf16.gmra.mrb[136].mxu1 %vm2115_vm0, %v2065_v45  ;;  %v2389_v45 = vld [vmem:[#allocation23] ss:$4 sm:$0x3] }
 0x6e9   :  { %2346 = vmatprep.mubr.bf16.mxu1 %v6330_v32  ;;  %v2398_v43 = vrot.slane %v2389_v45, %v6992_v40  ;;  %v2394_v48 = vrot.slane %v2389_v45, %v6679_v39 }
 0x6eb   :  { %v2402_v51 = vpack.c.bf16 %v2398_v43, %v2398_v43  ;;  %v2401_v52 = vpack.c.bf16 %v2394_v48, %v2394_v48  ;;  %v7049_v43 = vld [vmem:[#allocation2 + $0x58] sm:$0xff]  }
 0x6ed   :  { %v2411_v55 = vpack.i.b16 %v2402_v51, %v2402_v51  ;;  %v2404_v57 = vpack.i.b16 %v2401_v52, %v2401_v52 }
 0x6f0   :  { %4785 = vmatmul.mubr.msk.bf16.gmra.mrb[140].mxu1 %vm2115_vm0, %v2066_v50  ;;  %v5794_v50 = vld [vmem:[#allocation16 + $0xc4] ss:$8 sps:$4 sm:$0xff]  }
 0x6f1   :  { %5078 = vmatprep.mubr.msk.bf16.mxu1 %vm2115_vm0, %v2449_v60 }
 0x6f8   :  { %5079 = vmatmul.mubr.msk.bf16.vlgmr.msra.gmra.mrb[144].mxu1 %vm2115_vm0, %v2449_v60 }
 0x6f9   :  { %2662 = vmatpush1.bf16.msra.mxu1 %v5684_v61  ;;  %2693 = vmatprep.mubr.bf16.mxu1 %v6330_v32 }
 0x6fa   :  { %2663 = vmatprep.subr.bf16.mxu1 %v5689_v62  ;;  %v6999_v62 = vrot.slane %v2411_v55, %v6679_v39  ;;  %v7061_v55 = vld [vmem:[#allocation2 + $0x60] sm:$0xff]  }
 0x6fd   :  { %2664 = vmatpush1.bf16.msra.mxu1 %v5687_v63  ;;  %v5798_v63 = vld [vmem:[#allocation16 + $0xe0] ss:$8 sps:$4 sm:$0xff]  }
 0x6fe   :  { %2665 = vmatprep.subr.bf16.mxu1 %v5692_v0 }
 0x701   :  { %2666 = vmatpush1.bf16.msra.mxu1 %v5690_v1  ;;  %v7002_v1 = vrot.slane %v2404_v57, %v6679_v39 }
 0x702   :  { %2667 = vmatprep.subr.bf16.mxu1 %v5695_v2 }
 0x705   :  { %2668 = vmatpush1.bf16.msra.mxu1 %v5693_v3  ;;  %v5803_v3 = vld [vmem:[#allocation16 + $0xf4] ss:$8 sps:$4 sm:$0xff]  }
 0x706   :  { %2669 = vmatprep.subr.bf16.mxu1 %v5698_v4 }
 0x709   :  { %2670 = vmatpush1.bf16.msra.mxu1 %v5696_v5  ;;  %v5899_v5 = vld [vmem:[#allocation2 + $0x38] sm:$0xff]  }
 0x70a   :  { %2671 = vmatprep.subr.bf16.mxu1 %v5701_v6 }
 0x70d   :  { %2672 = vmatpush1.bf16.msra.mxu1 %v5699_v42  ;;  %v5801_v42 = vld [vmem:[#allocation16 + $0xf0] ss:$8 sps:$4 sm:$0xff]  }
 0x70e   :  { %2673 = vmatprep.subr.bf16.mxu1 %v5704_v7 }
 0x711   :  { %2674 = vmatpush1.bf16.msra.mxu1 %v5702_v49 }
 0x712   :  { %2675 = vmatprep.subr.bf16.mxu1 %v5707_v8 }
 0x715   :  { %2676 = vmatpush1.bf16.msra.mxu1 %v5705_v9 }
 0x716   :  { %3014 = vmatprep.subr.bf16.mxu1 %v5737_v10 }
 0x718   :  { %2694 = vmatmul.mubr.bf16.vlgmr.msra.gmra.mrb[148].mxu1 %v5892_v13  ;;  %v7013_v13 = vld [vmem:[#allocation2 + $0x40] sm:$0xff]  }
 0x719   :  { %2703 = vmatprep.mubr.bf16.mxu1 %v6330_v32  ;;  %3015 = vmatpush1.bf16.msra.mxu1 %v5735_v11 }
 0x71a   :  { %3016 = vmatprep.subr.bf16.mxu1 %v5746_v12 }
 0x71d   :  { %3017 = vmatpush1.bf16.msra.mxu1 %v5744_v15 }
 0x71e   :  { %3018 = vmatprep.subr.bf16.mxu1 %v5755_v17 }
 0x720   :  { %2704 = vmatmul.mubr.bf16.gmra.mrb[152].mxu1 %v5893_v24 }
 0x721   :  { %2713 = vmatprep.mubr.bf16.mxu1 %v6330_v32  ;;  %3019 = vmatpush1.bf16.msra.mxu1 %v5753_v20 }
 0x722   :  { %3020 = vmatprep.subr.bf16.mxu1 %v5764_v23 }
 0x725   :  { %3021 = vmatpush1.bf16.msra.mxu1 %v5762_v25 }
 0x726   :  { %3022 = vmatprep.subr.bf16.mxu1 %v5770_v27 }
 0x728   :  { %2714 = vmatmul.mubr.bf16.gmra.mrb[156].mxu1 %v5894_v29 }
 0x729   :  { %2723 = vmatprep.mubr.bf16.mxu1 %v6330_v32  ;;  %3023 = vmatpush1.bf16.msra.mxu1 %v5768_v28 }
 0x72a   :  { %3024 = vmatprep.subr.bf16.mxu1 %v5773_v18  ;;  %v7025_v18 = vld [vmem:[#allocation2 + $0x48] sm:$0xff]  }
 0x72d   :  { %3025 = vmatpush1.bf16.msra.mxu1 %v5771_v30 }
 0x72e   :  { %3026 = vmatprep.subr.bf16.mxu1 %v5776_v31 }
 0x730   :  { %2724 = vmatmul.mubr.bf16.gmra.mrb[160].mxu1 %v5895_v22 }
 0x731   :  { %2733 = vmatprep.mubr.bf16.mxu1 %v6330_v32  ;;  %3027 = vmatpush1.bf16.msra.mxu1 %v5774_v19 }
 0x732   :  { %3028 = vmatprep.subr.bf16.mxu1 %v5779_v21 }
 0x735   :  { %3029 = vmatpush1.bf16.msra.mxu1 %v5777_v33 }
 0x736   :  { %3030 = vmatprep.subr.bf16.mxu1 %v5782_v34 }
 0x738   :  { %2734 = vmatmul.mubr.bf16.gmra.mrb[164].mxu1 %v5896_v36 }
 0x739   :  { %2743 = vmatprep.mubr.bf16.mxu1 %v6330_v32  ;;  %3031 = vmatpush1.bf16.msra.mxu1 %v5780_v46  ;;  %v7037_v46 = vld [vmem:[#allocation2 + $0x50] sm:$0xff]  }
 0x73a   :  { %3032 = vmatprep.subr.bf16.mxu1 %v5785_v35 }
 0x73d   :  { %3033 = vmatpush1.bf16.msra.mxu1 %v5783_v26 }
 0x73e   :  { %3034 = vmatprep.subr.bf16.mxu1 %v5788_v38 }
 0x740   :  { %2744 = vmatmul.mubr.bf16.gmra.mrb[168].mxu1 %v5897_v14 }
 0x741   :  { %2753 = vmatprep.mubr.bf16.mxu1 %v6330_v32  ;;  %3035 = vmatpush1.bf16.msra.mxu1 %v5786_v44 }
 0x742   :  { %3036 = vmatprep.subr.bf16.mxu1 %v5791_v16 }
 0x745   :  { %3037 = vmatpush1.bf16.msra.mxu1 %v5789_v47 }
 0x746   :  { %3038 = vmatprep.subr.bf16.mxu1 %v5794_v50 }
 0x748   :  { %2754 = vmatmul.mubr.bf16.gmra.mrb[172].mxu1 %v5898_v54 }
 0x749   :  { %2763 = vmatprep.mubr.bf16.mxu1 %v6330_v32  ;;  %3039 = vmatpush1.bf16.msra.mxu1 %v5792_v41 }
 0x74a   :  { %3040 = vmatprep.subr.bf16.mxu1 %v5797_v53 }
 0x74b   :  { %v2198_v59 = vpop.f32.mrb[80].mxu1 }
 0x74c   :  { %v2200_v60 = vpop.f32.mrb[81].mxu1 }
 0x74d   :  { %v2202_v61 = vpop.f32.mrb[82].mxu1  ;;  %3041 = vmatpush1.bf16.msra.mxu1 %v5795_v56 }
 0x74e   :  { %v2357_v0 = vpack.c.bf16 %v2202_v61, %v2198_v59  ;;  %v2204_v2 = vpop.f32.mrb[83].mxu1  ;;  %3042 = vmatprep.subr.bf16.mxu1 %v5800_v58 }
 0x74f   :  { %v2358_v4 = vpack.c.bf16 %v2204_v2, %v2200_v60  ;;  %v7073_v2 = vld [vmem:[#allocation2 + $0x68] sm:$0xff]  }
 0x750   :  { %2764 = vmatmul.mubr.bf16.gmra.mrb[176].mxu1 %v5899_v5  ;;  %v7009_v7 = vadd.bf16 %v7002_v1, %v2357_v0 }
 0x751   :  { %v7005_v6 = vadd.bf16 %v6999_v62, %v2358_v4  ;;  %2773 = vmatprep.mubr.bf16.mxu1 %v6330_v32  ;;  %3043 = vmatpush1.bf16.msra.mxu1 %v5798_v63 }
 0x752   :  { %3044 = vmatprep.subr.bf16.mxu1 %v5803_v3 }
 0x753   :  { %v2208_v49 = vpop.f32.mrb[84].mxu1  ;;  %3588 = vmatprep.mubr.bf16.mxu0 %v7005_v6 }
 0x754   :  { %v2210_v8 = vpop.f32.mrb[85].mxu1  ;;  %3589 = vmatmul.mubr.bf16.vlgmr.msra.gmra.mrb[112].mxu0 %v7009_v7 }
 0x755   :  { %v2212_v9 = vpop.f32.mrb[86].mxu1  ;;  %3045 = vmatpush1.bf16.msra.mxu1 %v5801_v42 }
 0x756   :  { %v2359_v10 = vpack.c.bf16 %v2212_v9, %v2208_v49  ;;  %v2214_v11 = vpop.f32.mrb[87].mxu1 }
 0x757   :  { %v2360_v12 = vpack.c.bf16 %v2214_v11, %v2210_v8  ;;  %v7085_v11 = vld [vmem:[#allocation2 + $0x70] sm:$0xff]  }
 0x758   :  { %2774 = vmatmul.mubr.bf16.gmra.mrb[180].mxu1 %v7013_v13  ;;  %v7021_v17 = vadd.bf16 %v7002_v1, %v2359_v10 }
 0x759   :  { %v7017_v15 = vadd.bf16 %v6999_v62, %v2360_v12  ;;  %2783 = vmatprep.mubr.bf16.mxu1 %v6330_v32 }
 0x75b   :  { %v2218_v20 = vpop.f32.mrb[88].mxu1  ;;  %3598 = vmatprep.mubr.bf16.mxu0 %v7017_v15 }
 0x75c   :  { %v2220_v23 = vpop.f32.mrb[89].mxu1  ;;  %3599 = vmatmul.mubr.bf16.gmra.mrb[116].mxu0 %v7021_v17 }
 0x75d   :  { %v2222_v24 = vpop.f32.mrb[90].mxu1 }
 0x75e   :  { %v2361_v25 = vpack.c.bf16 %v2222_v24, %v2218_v20  ;;  %v2224_v27 = vpop.f32.mrb[91].mxu1 }
 0x75f   :  { %v2362_v28 = vpack.c.bf16 %v2224_v27, %v2220_v23 }
 0x760   :  { %2784 = vmatmul.mubr.bf16.gmra.mrb[184].mxu1 %v7025_v18  ;;  %v7033_v30 = vadd.bf16 %v7002_v1, %v2361_v25 }
 0x761   :  { %v7029_v29 = vadd.bf16 %v6999_v62, %v2362_v28  ;;  %2793 = vmatprep.mubr.bf16.mxu1 %v6330_v32 }
 0x763   :  { %v2228_v31 = vpop.f32.mrb[92].mxu1  ;;  %3608 = vmatprep.mubr.bf16.mxu0 %v7029_v29 }
 0x764   :  { %v2230_v19 = vpop.f32.mrb[93].mxu1  ;;  %3609 = vmatmul.mubr.bf16.gmra.mrb[120].mxu0 %v7033_v30 }
 0x765   :  { %v2232_v21 = vpop.f32.mrb[94].mxu1 }
 0x766   :  { %v2363_v22 = vpack.c.bf16 %v2232_v21, %v2228_v31  ;;  %v2234_v33 = vpop.f32.mrb[95].mxu1  ;;  %v5804_v21 = vld [vmem:[#allocation19] ss:$8 sps:$4 sm:$0xff]  }
 0x767   :  { %v2364_v34 = vpack.c.bf16 %v2234_v33, %v2230_v19  ;;  %v7097_v19 = vld [vmem:[#allocation2 + $0x78] sm:$0xff]  }
 0x768   :  { %2794 = vmatmul.mubr.bf16.gmra.mrb[188].mxu1 %v7037_v46  ;;  %v7045_v36 = vadd.bf16 %v7002_v1, %v2363_v22  ;;  %v5806_v22 = vld [vmem:[#allocation19 + $0x4] ss:$8 sps:$4 sm:$0xff]  }
 0x769   :  { %v7041_v35 = vadd.bf16 %v6999_v62, %v2364_v34  ;;  %2803 = vmatprep.mubr.bf16.mxu1 %v6330_v32  ;;  %v5809_v34 = vld [vmem:[#allocation19 + $0x14] ss:$8 sps:$4 sm:$0xff]   ;;  %3909 = vmatprep.subr.bf16.mxu0 %v5806_v22 }
 0x76a   :  { %3910 = vmatpush1.bf16.msra.mxu0 %v5804_v21 }
 0x76b   :  { %v2238_v26 = vpop.f32.mrb[96].mxu1  ;;  %3618 = vmatprep.mubr.bf16.mxu0 %v7041_v35  ;;  %3911 = vmatprep.subr.bf16.mxu0 %v5809_v34 }
 0x76c   :  { %v2240_v38 = vpop.f32.mrb[97].mxu1  ;;  %3619 = vmatmul.mubr.bf16.gmra.mrb[124].mxu0 %v7045_v36 }
 0x76d   :  { %v2242_v44 = vpop.f32.mrb[98].mxu1 }
 0x76e   :  { %v2365_v45 = vpack.c.bf16 %v2242_v44, %v2238_v26  ;;  %v2244_v16 = vpop.f32.mrb[99].mxu1  ;;  %v5807_v44 = vld [vmem:[#allocation19 + $0x10] ss:$8 sps:$4 sm:$0xff]  }
 0x76f   :  { %v2366_v14 = vpack.c.bf16 %v2244_v16, %v2240_v38  ;;  %v5812_v16 = vld [vmem:[#allocation19 + $0x24] ss:$8 sps:$4 sm:$0xff]   ;;  %3912 = vmatpush1.bf16.msra.mxu0 %v5807_v44 }
 0x770   :  { %2804 = vmatmul.mubr.bf16.gmra.mrb[192].mxu1 %v7049_v43  ;;  %v7057_v48 = vadd.bf16 %v7002_v1, %v2365_v45  ;;  %3913 = vmatprep.subr.bf16.mxu0 %v5812_v16 }
 0x771   :  { %v7053_v47 = vadd.bf16 %v6999_v62, %v2366_v14  ;;  %2813 = vmatprep.mubr.bf16.mxu1 %v6330_v32 }
 0x773   :  { %v2248_v50 = vpop.f32.mrb[100].mxu1  ;;  %3628 = vmatprep.mubr.bf16.mxu0 %v7053_v47 }
 0x774   :  { %v2250_v51 = vpop.f32.mrb[101].mxu1  ;;  %3629 = vmatmul.mubr.bf16.gmra.mrb[128].mxu0 %v7057_v48 }
 0x775   :  { %v2252_v41 = vpop.f32.mrb[102].mxu1 }
 0x776   :  { %v2367_v52 = vpack.c.bf16 %v2252_v41, %v2248_v50  ;;  %v2254_v53 = vpop.f32.mrb[103].mxu1 }
 0x777   :  { %v2368_v54 = vpack.c.bf16 %v2254_v53, %v2250_v51 }
 0x778   :  { %2814 = vmatmul.mubr.bf16.gmra.mrb[196].mxu1 %v7061_v55  ;;  %v7069_v57 = vadd.bf16 %v7002_v1, %v2367_v52  ;;  %v5815_v52 = vld [vmem:[#allocation19 + $0x34] ss:$8 sps:$4 sm:$0xff]  }
 0x779   :  { %v7065_v56 = vadd.bf16 %v6999_v62, %v2368_v54  ;;  %2823 = vmatprep.mubr.bf16.mxu1 %v6330_v32 }
 0x77b   :  { %v2258_v58 = vpop.f32.mrb[104].mxu1  ;;  %3638 = vmatprep.mubr.bf16.mxu0 %v7065_v56 }
 0x77c   :  { %v2260_v59 = vpop.f32.mrb[105].mxu1  ;;  %3639 = vmatmul.mubr.bf16.gmra.mrb[132].mxu0 %v7069_v57 }
 0x77d   :  { %v2262_v60 = vpop.f32.mrb[106].mxu1 }
 0x77e   :  { %v2369_v61 = vpack.c.bf16 %v2262_v60, %v2258_v58  ;;  %v2264_v63 = vpop.f32.mrb[107].mxu1 }
 0x77f   :  { %v2370_v0 = vpack.c.bf16 %v2264_v63, %v2260_v59  ;;  %v5813_v59 = vld [vmem:[#allocation19 + $0x30] ss:$8 sps:$4 sm:$0xff]  }
 0x780   :  { %2824 = vmatmul.mubr.bf16.gmra.mrb[200].mxu1 %v7073_v2  ;;  %v7081_v4 = vadd.bf16 %v7002_v1, %v2369_v61 }
 0x781   :  { %v7077_v3 = vadd.bf16 %v6999_v62, %v2370_v0  ;;  %2833 = vmatprep.mubr.bf16.mxu1 %v6330_v32 }
 0x783   :  { %v2268_v5 = vpop.f32.mrb[108].mxu1  ;;  %3648 = vmatprep.mubr.bf16.mxu0 %v7077_v3 }
 0x784   :  { %v2270_v42 = vpop.f32.mrb[109].mxu1  ;;  %3649 = vmatmul.mubr.bf16.gmra.mrb[136].mxu0 %v7081_v4 }
 0x785   :  { %v2272_v49 = vpop.f32.mrb[110].mxu1 }
 0x786   :  { %v2371_v8 = vpack.c.bf16 %v2272_v49, %v2268_v5  ;;  %v2274_v9 = vpop.f32.mrb[111].mxu1 }
 0x787   :  { %v2372_v10 = vpack.c.bf16 %v2274_v9, %v2270_v42  ;;  %v5816_v42 = vld [vmem:[#allocation19 + $0x40] ss:$8 sps:$4 sm:$0xff]  }
 0x788   :  { %2834 = vmatmul.mubr.bf16.gmra.mrb[204].mxu1 %v7085_v11  ;;  %v7093_v20 = vadd.bf16 %v7002_v1, %v2371_v8 }
 0x789   :  { %v7089_v12 = vadd.bf16 %v6999_v62, %v2372_v10  ;;  %2843 = vmatprep.mubr.bf16.mxu1 %v6330_v32  ;;  %v5819_v10 = vld [vmem:[#allocation19 + $0x50] ss:$8 sps:$4 sm:$0xff]  }
 0x78b   :  { %v2278_v23 = vpop.f32.mrb[112].mxu1  ;;  %3658 = vmatprep.mubr.bf16.mxu0 %v7089_v12 }
 0x78c   :  { %v2280_v24 = vpop.f32.mrb[113].mxu1  ;;  %3659 = vmatmul.mubr.bf16.gmra.mrb[140].mxu0 %v7093_v20 }
 0x78d   :  { %v2282_v25 = vpop.f32.mrb[114].mxu1 }
 0x78e   :  { %v2373_v27 = vpack.c.bf16 %v2282_v25, %v2278_v23  ;;  %v2284_v28 = vpop.f32.mrb[115].mxu1 }
 0x78f   :  { %v2374_v31 = vpack.c.bf16 %v2284_v28, %v2280_v24 }
 0x790   :  { %2844 = vmatmul.mubr.bf16.gmra.mrb[208].mxu1 %v7097_v19  ;;  %v7105_v26 = vadd.bf16 %v7002_v1, %v2373_v27 }
 0x791   :  { %v7101_v33 = vadd.bf16 %v6999_v62, %v2374_v31  ;;  %3046 = vmatprep.mubr.bf16.mxu1 %v7005_v6  ;;  %v5810_v6 = vld [vmem:[#allocation19 + $0x20] ss:$8 sps:$4 sm:$0xff]  }
 0x792   :  { %3914 = vmatpush1.bf16.msra.mxu0 %v5810_v6  ;;  %v5822_v31 = vld [vmem:[#allocation19 + $0x60] ss:$8 sps:$4 sm:$0xff]  }
 0x793   :  { %v2288_v38 = vpop.f32.mrb[116].mxu1  ;;  %3668 = vmatprep.mubr.bf16.mxu0 %v7101_v33  ;;  %3915 = vmatprep.subr.bf16.mxu0 %v5815_v52 }
 0x794   :  { %v2290_v45 = vpop.f32.mrb[117].mxu1  ;;  %3669 = vmatmul.mubr.bf16.gmra.mrb[144].mxu0 %v7105_v26 }
 0x795   :  { %v2292_v14 = vpop.f32.mrb[118].mxu1 }
 0x796   :  { %v2375_v50 = vpack.c.bf16 %v2292_v14, %v2288_v38  ;;  %v2294_v51 = vpop.f32.mrb[119].mxu1  ;;  %3916 = vmatpush1.bf16.msra.mxu0 %v5813_v59  ;;  %v5825_v38 = vld [vmem:[#allocation19 + $0x70] ss:$8 sps:$4 sm:$0xff]  }
 0x797   :  { %v2376_v41 = vpack.c.bf16 %v2294_v51, %v2290_v45  ;;  %v5828_v51 = vld [vmem:[#allocation19 + $0x80] ss:$8 sps:$4 sm:$0xff]  }
 0x798   :  { %3047 = vmatmul.mubr.bf16.vlgmr.msra.gmra.mrb[148].mxu1 %v7009_v7  ;;  %v7115_v54 = vadd.bf16 %v7002_v1, %v2375_v50  ;;  %v5818_v7 = vld [vmem:[#allocation19 + $0x44] ss:$8 sps:$4 sm:$0xff]  }
 0x799   :  { %v7111_v53 = vadd.bf16 %v6999_v62, %v2376_v41  ;;  %3056 = vmatprep.mubr.bf16.mxu1 %v7017_v15  ;;  %3917 = vmatprep.subr.bf16.mxu0 %v5818_v7  ;;  %v5821_v15 = vld [vmem:[#allocation19 + $0x54] ss:$8 sps:$4 sm:$0xff]  }
 0x79a   :  { %3918 = vmatpush1.bf16.msra.mxu0 %v5816_v42 }
 0x79b   :  { %v2298_v58 = vpop.f32.mrb[120].mxu1  ;;  %3678 = vmatprep.mubr.bf16.mxu0 %v7111_v53  ;;  %3919 = vmatprep.subr.bf16.mxu0 %v5821_v15 }
 0x79c   :  { %v2300_v60 = vpop.f32.mrb[121].mxu1  ;;  %3679 = vmatmul.mubr.bf16.gmra.mrb[148].mxu0 %v7115_v54 }
 0x79d   :  { %v2302_v61 = vpop.f32.mrb[122].mxu1 }
 0x79e   :  { %v2377_v63 = vpack.c.bf16 %v2302_v61, %v2298_v58  ;;  %v2304_v0 = vpop.f32.mrb[123].mxu1  ;;  %3920 = vmatpush1.bf16.msra.mxu0 %v5819_v10  ;;  %v5831_v58 = vld [vmem:[#allocation19 + $0x90] ss:$8 sps:$4 sm:$0xff]  }
 0x79f   :  { %v2378_v5 = vpack.c.bf16 %v2304_v0, %v2300_v60  ;;  %v5834_v0 = vld [vmem:[#allocation19 + $0xa0] ss:$8 sps:$4 sm:$0xff]  }
 0x7a0   :  { %3057 = vmatmul.mubr.bf16.gmra.mrb[152].mxu1 %v7021_v17  ;;  %v7125_v8 = vadd.bf16 %v7002_v1, %v2377_v63  ;;  %v5824_v17 = vld [vmem:[#allocation19 + $0x64] ss:$8 sps:$4 sm:$0xff]  }
 0x7a1   :  { %v7121_v49 = vadd.bf16 %v6999_v62, %v2378_v5  ;;  %3066 = vmatprep.mubr.bf16.mxu1 %v7029_v29  ;;  %3921 = vmatprep.subr.bf16.mxu0 %v5824_v17  ;;  %v5827_v29 = vld [vmem:[#allocation19 + $0x74] ss:$8 sps:$4 sm:$0xff]  }
 0x7a2   :  { %3922 = vmatpush1.bf16.msra.mxu0 %v5822_v31 }
 0x7a3   :  { %v2308_v9 = vpop.f32.mrb[124].mxu1  ;;  %3688 = vmatprep.mubr.bf16.mxu0 %v7121_v49  ;;  %3923 = vmatprep.subr.bf16.mxu0 %v5827_v29 }
 0x7a4   :  { %v2310_v23 = vpop.f32.mrb[125].mxu1  ;;  %3689 = vmatmul.mubr.bf16.gmra.mrb[152].mxu0 %v7125_v8 }
 0x7a5   :  { %v2312_v24 = vpop.f32.mrb[126].mxu1 }
 0x7a6   :  { %v2379_v25 = vpack.c.bf16 %v2312_v24, %v2308_v9  ;;  %v2314_v27 = vpop.f32.mrb[127].mxu1  ;;  %3924 = vmatpush1.bf16.msra.mxu0 %v5825_v38  ;;  %v5837_v9 = vld [vmem:[#allocation19 + $0xb0] ss:$8 sps:$4 sm:$0xff]  }
 0x7a7   :  { %v2380_v28 = vpack.c.bf16 %v2314_v27, %v2310_v23  ;;  %v5842_v23 = vld [vmem:[#allocation19 + $0xc4] ss:$8 sps:$4 sm:$0xff]   ;;  %v5840_v27 = vld [vmem:[#allocation19 + $0xc0] ss:$8 sps:$4 sm:$0xff]  }
 0x7a8   :  { %3067 = vmatmul.mubr.bf16.gmra.mrb[156].mxu1 %v7033_v30  ;;  %v7135_v22 = vadd.bf16 %v7002_v1, %v2379_v25  ;;  %v5830_v30 = vld [vmem:[#allocation19 + $0x84] ss:$8 sps:$4 sm:$0xff]  }
 0x7a9   :  { %v7131_v21 = vadd.bf16 %v6999_v62, %v2380_v28  ;;  %3076 = vmatprep.mubr.bf16.mxu1 %v7041_v35  ;;  %3925 = vmatprep.subr.bf16.mxu0 %v5830_v30  ;;  %v5833_v35 = vld [vmem:[#allocation19 + $0x94] ss:$8 sps:$4 sm:$0xff]  }
 0x7aa   :  { %3926 = vmatpush1.bf16.msra.mxu0 %v5828_v51 }
 0x7ab   :  { %v2318_v34 = vpop.f32.mrb[128].mxu1  ;;  %3698 = vmatprep.mubr.bf16.mxu0 %v7131_v21  ;;  %3927 = vmatprep.subr.bf16.mxu0 %v5833_v35 }
 0x7ac   :  { %v2320_v44 = vpop.f32.mrb[129].mxu1  ;;  %3699 = vmatmul.mubr.bf16.gmra.mrb[156].mxu0 %v7135_v22 }
 0x7ad   :  { %v2322_v45 = vpop.f32.mrb[130].mxu1 }
 0x7ae   :  { %v2381_v16 = vpack.c.bf16 %v2322_v45, %v2318_v34  ;;  %v2324_v14 = vpop.f32.mrb[131].mxu1  ;;  %3928 = vmatpush1.bf16.msra.mxu0 %v5831_v58  ;;  %v5843_v34 = vld [vmem:[#allocation19 + $0xd0] ss:$8 sps:$4 sm:$0xff]  }
 0x7af   :  { %v2382_v50 = vpack.c.bf16 %v2324_v14, %v2320_v44 }
 0x7b0   :  { %3077 = vmatmul.mubr.bf16.gmra.mrb[160].mxu1 %v7045_v36  ;;  %v7145_v6 = vadd.bf16 %v7002_v1, %v2381_v16  ;;  %v5836_v36 = vld [vmem:[#allocation19 + $0xa4] ss:$8 sps:$4 sm:$0xff]  }
 0x7b1   :  { %v7141_v41 = vadd.bf16 %v6999_v62, %v2382_v50  ;;  %3086 = vmatprep.mubr.bf16.mxu1 %v7053_v47  ;;  %3929 = vmatprep.subr.bf16.mxu0 %v5836_v36  ;;  %v5839_v47 = vld [vmem:[#allocation19 + $0xb4] ss:$8 sps:$4 sm:$0xff]  }
 0x7b2   :  { %3930 = vmatpush1.bf16.msra.mxu0 %v5834_v0 }
 0x7b3   :  { %v2328_v52 = vpop.f32.mrb[132].mxu1  ;;  %3708 = vmatprep.mubr.bf16.mxu0 %v7141_v41  ;;  %3931 = vmatprep.subr.bf16.mxu0 %v5839_v47  ;;  %v5852_v47 = vld [vmem:[#allocation22] ss:$8 sps:$4 sm:$0xff]  }
 0x7b4   :  { %v2330_v59 = vpop.f32.mrb[133].mxu1  ;;  %3709 = vmatmul.mubr.bf16.gmra.mrb[160].mxu0 %v7145_v6 }
 0x7b5   :  { %v2332_v60 = vpop.f32.mrb[134].mxu1 }
 0x7b6   :  { %v2383_v7 = vpack.c.bf16 %v2332_v60, %v2328_v52  ;;  %v2334_v61 = vpop.f32.mrb[135].mxu1  ;;  %3932 = vmatpush1.bf16.msra.mxu0 %v5837_v9 }
 0x7b7   :  { %v2384_v63 = vpack.c.bf16 %v2334_v61, %v2330_v59  ;;  %3933 = vmatprep.subr.bf16.mxu0 %v5842_v23 }
 0x7b8   :  { %3087 = vmatmul.mubr.bf16.gmra.mrb[164].mxu1 %v7057_v48  ;;  %v2443_v42 = vadd.bf16 %v7002_v1, %v2383_v7 }
 0x7b9   :  { %v7151_v5 = vadd.bf16 %v6999_v62, %v2384_v63  ;;  %3096 = vmatprep.mubr.bf16.mxu1 %v7065_v56  ;;  %v5845_v56 = vld [vmem:[#allocation19 + $0xd4] ss:$8 sps:$4 sm:$0xff]  }
 0x7ba   :  { %3934 = vmatpush1.bf16.msra.mxu0 %v5840_v27 }
 0x7bb   :  { %v2338_v15 = vpop.f32.mrb[136].mxu1  ;;  %3718 = vmatprep.mubr.bf16.mxu0 %v7151_v5  ;;  %3935 = vmatprep.subr.bf16.mxu0 %v5845_v56 }
 0x7bc   :  { %v2340_v10 = vpop.f32.mrb[137].mxu1  ;;  %3719 = vmatmul.mubr.bf16.gmra.mrb[164].mxu0 %v2443_v42 }
 0x7bd   :  { %v2342_v17 = vpop.f32.mrb[138].mxu1 }
 0x7be   :  { %v2385_v48 = vpack.c.bf16 %v2342_v17, %v2338_v15  ;;  %v2344_v24 = vpop.f32.mrb[139].mxu1  ;;  %3936 = vmatpush1.bf16.msra.mxu0 %v5843_v34  ;;  %v5857_v15 = vld [vmem:[#allocation22 + $0x14] ss:$8 sps:$4 sm:$0xff]  }
 0x7bf   :  { %v2386_v25 = vpack.c.bf16 %v2344_v24, %v2340_v10 }
 0x7c0   :  { %3097 = vmatmul.mubr.bf16.gmra.mrb[168].mxu1 %v7069_v57  ;;  %v2445_v31 = vadd.bf16 %v7002_v1, %v2385_v48  ;;  %v5855_v48 = vld [vmem:[#allocation22 + $0x10] ss:$8 sps:$4 sm:$0xff]  }
 0x7c1   :  { %v2446_v28 = vadd.bf16 %v6999_v62, %v2386_v25  ;;  %3106 = vmatprep.mubr.bf16.mxu1 %v7077_v3  ;;  %v5860_v25 = vld [vmem:[#allocation22 + $0x24] ss:$8 sps:$4 sm:$0xff]  }
 0x7c3   :  { %v2348_v29 = vpop.f32.mrb[140].mxu1  ;;  %3728 = vmatprep.mubr.bf16.mxu0 %v2446_v28 }
 0x7c4   :  { %v2350_v38 = vpop.f32.mrb[141].mxu1  ;;  %3729 = vmatmul.mubr.bf16.gmra.mrb[168].mxu0 %v2445_v31 }
 0x7c5   :  { %v2352_v44 = vpop.f32.mrb[142].mxu1 }
 0x7c6   :  { %v2387_v30 = vpack.c.bf16 %v2352_v44, %v2348_v29  ;;  %v2354_v45 = vpop.f32.mrb[143].mxu1 }
 0x7c7   :  { %v2388_v16 = vpack.c.bf16 %v2354_v45, %v2350_v38  ;;  %v5863_v38 = vld [vmem:[#allocation22 + $0x34] ss:$8 sps:$4 sm:$0xff]  }
 0x7c8   :  { %3107 = vmatmul.mubr.bf16.gmra.mrb[172].mxu1 %v7081_v4  ;;  %v2447_v3 = vadd.bf16 %v7002_v1, %v2387_v30  ;;  %v5846_v1 = vld [vmem:[#allocation19 + $0xe0] ss:$8 sps:$4 sm:$0xff]   ;;  %v5851_v4 = vld [vmem:[#allocation19 + $0xf4] ss:$8 sps:$4 sm:$0xff]  }
 0x7c9   :  { %v2448_v57 = vadd.bf16 %v6999_v62, %v2388_v16  ;;  %3116 = vmatprep.mubr.bf16.mxu1 %v7089_v12  ;;  %v5848_v62 = vld [vmem:[#allocation19 + $0xe4] ss:$8 sps:$4 sm:$0xff]   ;;  %v5849_v12 = vld [vmem:[#allocation19 + $0xf0] ss:$8 sps:$4 sm:$0xff]  }
 0x7ca   :  { %3937 = vmatprep.subr.bf16.mxu0 %v5848_v62 }
 0x7cb   :  { %3738 = vmatprep.mubr.bf16.mxu0 %v2448_v57  ;;  %v7164_v14 = vpop.f32.mrb[144].mxu1  ;;  %3938 = vmatpush1.bf16.msra.mxu0 %v5846_v1 }
 0x7cc   :  { %3739 = vmatmul.mubr.bf16.gmra.mrb[172].mxu0 %v2447_v3  ;;  %v7166_v50 = vpop.f32.mrb[145].mxu1  ;;  %3939 = vmatprep.subr.bf16.mxu0 %v5851_v4  ;;  %v5864_v4 = vld [vmem:[#allocation22 + $0x40] ss:$8 sps:$4 sm:$0xff]  }
 0x7cd   :  { %v2510_v51 = vpop.f32.mrb[146].mxu1 }
 0x7ce   :  { %v2511_v35 = vpop.f32.mrb[147].mxu1  ;;  %v5866_v51 = vld [vmem:[#allocation22 + $0x44] ss:$8 sps:$4 sm:$0xff]  }
 0x7cf   :  { %3940 = vmatpush1.bf16.msra.mxu0 %v5849_v12 }
 0x7d0   :  { %3117 = vmatmul.mubr.bf16.gmra.mrb[176].mxu1 %v7093_v20  ;;  %v5854_v20 = vld [vmem:[#allocation22 + $0x4] ss:$8 sps:$4 sm:$0xff]  }
 0x7d1   :  { %3126 = vmatprep.mubr.bf16.mxu1 %v7101_v33  ;;  %4198 = vmatprep.subr.bf16.mxu0 %v5854_v20  ;;  %v3240_v33 = vld [vmem:[#allocation23 + $0x1] ss:$4 sm:$0x3] }
 0x7d8   :  { %3127 = vmatmul.mubr.bf16.gmra.mrb[180].mxu1 %v7105_v26  ;;  %v3245_v26 = vrot.slane %v3240_v33, %v6679_v39 }
 0x7d9   :  { %3136 = vmatprep.mubr.bf16.mxu1 %v7111_v53  ;;  %v3249_v53 = vrot.slane %v3240_v33, %v6992_v40  ;;  %v5869_v33 = vld [vmem:[#allocation22 + $0x54] ss:$8 sps:$4 sm:$0xff]  }
 0x7e0   :  { %3137 = vmatmul.mubr.bf16.gmra.mrb[184].mxu1 %v7115_v54  ;;  %v3252_v54 = vpack.c.bf16 %v3245_v26, %v3245_v26 }
 0x7e1   :  { %3146 = vmatprep.mubr.bf16.mxu1 %v7121_v49  ;;  %v3253_v49 = vpack.c.bf16 %v3249_v53, %v3249_v53 }
 0x7e8   :  { %3147 = vmatmul.mubr.bf16.gmra.mrb[188].mxu1 %v7125_v8  ;;  %v3255_v8 = vpack.i.b16 %v3252_v54, %v3252_v54 }
 0x7e9   :  { %3156 = vmatprep.mubr.bf16.mxu1 %v7131_v21  ;;  %v3262_v21 = vpack.i.b16 %v3253_v49, %v3253_v49 }
 0x7eb   :  { %v7186_v58 = vrot.slane %v3262_v21, %v6679_v39 }
 0x7f0   :  { %3157 = vmatmul.mubr.bf16.gmra.mrb[192].mxu1 %v7135_v22 }
 0x7f1   :  { %3166 = vmatprep.mubr.bf16.mxu1 %v7141_v41 }
 0x7f8   :  { %3167 = vmatmul.mubr.bf16.gmra.mrb[196].mxu1 %v7145_v6  ;;  %v7183_v6 = vrot.slane %v3255_v8, %v6679_v39  ;;  %v5867_v8 = vld [vmem:[#allocation22 + $0x50] ss:$8 sps:$4 sm:$0xff]  }
 0x7f9   :  { %3176 = vmatprep.mubr.bf16.mxu1 %v7151_v5 }
 0x800   :  { %3177 = vmatmul.mubr.bf16.gmra.mrb[200].mxu1 %v2443_v42 }
 0x801   :  { %3186 = vmatprep.mubr.bf16.mxu1 %v2446_v28 }
 0x808   :  { %3187 = vmatmul.mubr.bf16.gmra.mrb[204].mxu1 %v2445_v31  ;;  %v5858_v31 = vld [vmem:[#allocation22 + $0x20] ss:$8 sps:$4 sm:$0xff]  }
 0x809   :  { %3196 = vmatprep.mubr.bf16.mxu1 %v2448_v57  ;;  %v5861_v57 = vld [vmem:[#allocation22 + $0x30] ss:$8 sps:$4 sm:$0xff]  }
 0x810   :  { %3197 = vmatmul.mubr.bf16.gmra.mrb[208].mxu1 %v2447_v3 }
 0x86b   :  { %v3048_v22 = vpop.f32.mrb[148].mxu1 }
 0x86c   :  { %v3050_v41 = vpop.f32.mrb[149].mxu1 }
 0x86d   :  { %v3052_v52 = vpop.f32.mrb[150].mxu1 }
 0x86e   :  { %v3207_v59 = vpack.c.bf16 %v3052_v52, %v3048_v22  ;;  %v3054_v36 = vpop.f32.mrb[151].mxu1  ;;  %v5872_v22 = vld [vmem:[#allocation22 + $0x64] ss:$8 sps:$4 sm:$0xff]  }
 0x86f   :  { %v3208_v60 = vpack.c.bf16 %v3054_v36, %v3050_v41  ;;  %v5870_v36 = vld [vmem:[#allocation22 + $0x60] ss:$8 sps:$4 sm:$0xff]  }
 0x870   :  { %v3268_v7 = vadd.bf16 %v7183_v6, %v3207_v59 }
 0x871   :  { %v3269_v61 = vadd.bf16 %v7186_v58, %v3208_v60 }
 0x872   :  { %v3300_v5 = vmax.bf16 %v6330_v32, %v3268_v7 }
 0x873   :  { %v3058_v63 = vpop.f32.mrb[152].mxu1  ;;  %v3301_v0 = vmax.bf16 %v6330_v32, %v3269_v61  ;;  %v5875_v61 = vld [vmem:[#allocation22 + $0x74] ss:$8 sps:$4 sm:$0xff]  }
 0x874   :  { %v3060_v42 = vpop.f32.mrb[153].mxu1 }
 0x875   :  { %v3062_v9 = vpop.f32.mrb[154].mxu1  ;;  %3941 = vmatprep.mubr.bf16.mxu0 %v3301_v0 }
 0x876   :  { %v3209_v10 = vpack.c.bf16 %v3062_v9, %v3058_v63  ;;  %v3064_v23 = vpop.f32.mrb[155].mxu1  ;;  %3942 = vmatmul.mubr.bf16.vlgmr.msra.gmra.mrb[112].mxu0 %v3300_v5 }
 0x877   :  { %v3210_v17 = vpack.c.bf16 %v3064_v23, %v3060_v42  ;;  %4199 = vmatpush1.bf16.msra.mxu0 %v5852_v47  ;;  %v5873_v42 = vld [vmem:[#allocation22 + $0x70] ss:$8 sps:$4 sm:$0xff]  }
 0x878   :  { %v3270_v24 = vadd.bf16 %v7183_v6, %v3209_v10  ;;  %4200 = vmatprep.subr.bf16.mxu0 %v5857_v15 }
 0x879   :  { %v3271_v27 = vadd.bf16 %v7186_v58, %v3210_v17 }
 0x87a   :  { %v3302_v34 = vmax.bf16 %v6330_v32, %v3270_v24 }
 0x87b   :  { %v3068_v56 = vpop.f32.mrb[156].mxu1  ;;  %v3303_v28 = vmax.bf16 %v6330_v32, %v3271_v27  ;;  %4201 = vmatpush1.bf16.msra.mxu0 %v5855_v48 }
 0x87c   :  { %v3070_v29 = vpop.f32.mrb[157].mxu1  ;;  %4202 = vmatprep.subr.bf16.mxu0 %v5860_v25 }
 0x87d   :  { %v3072_v44 = vpop.f32.mrb[158].mxu1  ;;  %3951 = vmatprep.mubr.bf16.mxu0 %v3303_v28 }
 0x87e   :  { %v3211_v30 = vpack.c.bf16 %v3072_v44, %v3068_v56  ;;  %v3074_v45 = vpop.f32.mrb[159].mxu1  ;;  %3952 = vmatmul.mubr.bf16.gmra.mrb[116].mxu0 %v3302_v34 }
 0x87f   :  { %v3212_v16 = vpack.c.bf16 %v3074_v45, %v3070_v29  ;;  %4203 = vmatpush1.bf16.msra.mxu0 %v5858_v31 }
 0x880   :  { %v3272_v3 = vadd.bf16 %v7183_v6, %v3211_v30  ;;  %4204 = vmatprep.subr.bf16.mxu0 %v5863_v38 }
 0x881   :  { %v3273_v35 = vadd.bf16 %v7186_v58, %v3212_v16 }
 0x882   :  { %v3304_v20 = vmax.bf16 %v6330_v32, %v3272_v3 }
 0x883   :  { %v3078_v62 = vpop.f32.mrb[160].mxu1  ;;  %v3305_v1 = vmax.bf16 %v6330_v32, %v3273_v35  ;;  %4205 = vmatpush1.bf16.msra.mxu0 %v5861_v57 }
 0x884   :  { %v3080_v12 = vpop.f32.mrb[161].mxu1  ;;  %4206 = vmatprep.subr.bf16.mxu0 %v5866_v51 }
 0x885   :  { %v3082_v26 = vpop.f32.mrb[162].mxu1  ;;  %3961 = vmatprep.mubr.bf16.mxu0 %v3305_v1 }
 0x886   :  { %v3213_v53 = vpack.c.bf16 %v3082_v26, %v3078_v62  ;;  %v3084_v54 = vpop.f32.mrb[163].mxu1  ;;  %3962 = vmatmul.mubr.bf16.gmra.mrb[120].mxu0 %v3304_v20 }
 0x887   :  { %v3214_v49 = vpack.c.bf16 %v3084_v54, %v3080_v12  ;;  %4207 = vmatpush1.bf16.msra.mxu0 %v5864_v4 }
 0x888   :  { %v3274_v21 = vadd.bf16 %v7183_v6, %v3213_v53  ;;  %4208 = vmatprep.subr.bf16.mxu0 %v5869_v33 }
 0x889   :  { %v3275_v41 = vadd.bf16 %v7186_v58, %v3214_v49 }
 0x88a   :  { %v3306_v7 = vmax.bf16 %v6330_v32, %v3274_v21 }
 0x88b   :  { %v3088_v52 = vpop.f32.mrb[164].mxu1  ;;  %v3307_v59 = vmax.bf16 %v6330_v32, %v3275_v41  ;;  %4209 = vmatpush1.bf16.msra.mxu0 %v5867_v8 }
 0x88c   :  { %v3090_v60 = vpop.f32.mrb[165].mxu1  ;;  %4210 = vmatprep.subr.bf16.mxu0 %v5872_v22 }
 0x88d   :  { %v3092_v63 = vpop.f32.mrb[166].mxu1  ;;  %3971 = vmatprep.mubr.bf16.mxu0 %v3307_v59 }
 0x88e   :  { %v3215_v0 = vpack.c.bf16 %v3092_v63, %v3088_v52  ;;  %v3094_v47 = vpop.f32.mrb[167].mxu1  ;;  %3972 = vmatmul.mubr.bf16.gmra.mrb[124].mxu0 %v3306_v7 }
 0x88f   :  { %v3216_v5 = vpack.c.bf16 %v3094_v47, %v3090_v60  ;;  %4211 = vmatpush1.bf16.msra.mxu0 %v5870_v36 }
 0x890   :  { %v3276_v15 = vadd.bf16 %v7183_v6, %v3215_v0  ;;  %4212 = vmatprep.subr.bf16.mxu0 %v5875_v61 }
 0x891   :  { %v3277_v9 = vadd.bf16 %v7186_v58, %v3216_v5 }
 0x892   :  { %v3308_v48 = vmax.bf16 %v6330_v32, %v3276_v15 }
 0x893   :  { %v3098_v10 = vpop.f32.mrb[168].mxu1  ;;  %v3309_v23 = vmax.bf16 %v6330_v32, %v3277_v9  ;;  %4213 = vmatpush1.bf16.msra.mxu0 %v5873_v42 }
 0x894   :  { %v3100_v17 = vpop.f32.mrb[169].mxu1 }
 0x895   :  { %v3102_v24 = vpop.f32.mrb[170].mxu1  ;;  %3981 = vmatprep.mubr.bf16.mxu0 %v3309_v23 }
 0x896   :  { %v3217_v25 = vpack.c.bf16 %v3102_v24, %v3098_v10  ;;  %v3104_v27 = vpop.f32.mrb[171].mxu1  ;;  %3982 = vmatmul.mubr.bf16.gmra.mrb[128].mxu0 %v3308_v48 }
 0x897   :  { %v3218_v56 = vpack.c.bf16 %v3104_v27, %v3100_v17 }
 0x898   :  { %v3278_v28 = vadd.bf16 %v7183_v6, %v3217_v25 }
 0x899   :  { %v3279_v31 = vadd.bf16 %v7186_v58, %v3218_v56 }
 0x89a   :  { %v3310_v44 = vmax.bf16 %v6330_v32, %v3278_v28 }
 0x89b   :  { %v3108_v29 = vpop.f32.mrb[172].mxu1  ;;  %v3311_v34 = vmax.bf16 %v6330_v32, %v3279_v31 }
 0x89c   :  { %v3110_v38 = vpop.f32.mrb[173].mxu1 }
 0x89d   :  { %v3112_v30 = vpop.f32.mrb[174].mxu1  ;;  %3991 = vmatprep.mubr.bf16.mxu0 %v3311_v34 }
 0x89e   :  { %v3219_v45 = vpack.c.bf16 %v3112_v30, %v3108_v29  ;;  %v3114_v16 = vpop.f32.mrb[175].mxu1  ;;  %3992 = vmatmul.mubr.bf16.gmra.mrb[132].mxu0 %v3310_v44 }
 0x89f   :  { %v3220_v57 = vpack.c.bf16 %v3114_v16, %v3110_v38 }
 0x8a0   :  { %v3280_v3 = vadd.bf16 %v7183_v6, %v3219_v45 }
 0x8a1   :  { %v3281_v51 = vadd.bf16 %v7186_v58, %v3220_v57 }
 0x8a2   :  { %v3312_v4 = vmax.bf16 %v6330_v32, %v3280_v3 }
 0x8a3   :  { %v3118_v35 = vpop.f32.mrb[176].mxu1  ;;  %v3313_v62 = vmax.bf16 %v6330_v32, %v3281_v51 }
 0x8a4   :  { %v3120_v1 = vpop.f32.mrb[177].mxu1 }
 0x8a5   :  { %v3122_v12 = vpop.f32.mrb[178].mxu1  ;;  %4001 = vmatprep.mubr.bf16.mxu0 %v3313_v62 }
 0x8a6   :  { %v3221_v20 = vpack.c.bf16 %v3122_v12, %v3118_v35  ;;  %v3124_v33 = vpop.f32.mrb[179].mxu1  ;;  %4002 = vmatmul.mubr.bf16.gmra.mrb[136].mxu0 %v3312_v4 }
 0x8a7   :  { %v3222_v26 = vpack.c.bf16 %v3124_v33, %v3120_v1 }
 0x8a8   :  { %v3282_v53 = vadd.bf16 %v7183_v6, %v3221_v20 }
 0x8a9   :  { %v3283_v54 = vadd.bf16 %v7186_v58, %v3222_v26 }
 0x8aa   :  { %v3314_v22 = vmax.bf16 %v6330_v32, %v3282_v53 }
 0x8ab   :  { %v3128_v49 = vpop.f32.mrb[180].mxu1  ;;  %v3315_v8 = vmax.bf16 %v6330_v32, %v3283_v54 }
 0x8ac   :  { %v3130_v21 = vpop.f32.mrb[181].mxu1 }
 0x8ad   :  { %v3132_v41 = vpop.f32.mrb[182].mxu1  ;;  %4011 = vmatprep.mubr.bf16.mxu0 %v3315_v8 }
 0x8ae   :  { %v3223_v52 = vpack.c.bf16 %v3132_v41, %v3128_v49  ;;  %v3134_v59 = vpop.f32.mrb[183].mxu1  ;;  %4012 = vmatmul.mubr.bf16.gmra.mrb[140].mxu0 %v3314_v22 }
 0x8af   :  { %v3224_v36 = vpack.c.bf16 %v3134_v59, %v3130_v21 }
 0x8b0   :  { %v3284_v60 = vadd.bf16 %v7183_v6, %v3223_v52 }
 0x8b1   :  { %v3285_v7 = vadd.bf16 %v7186_v58, %v3224_v36 }
 0x8b2   :  { %v3316_v47 = vmax.bf16 %v6330_v32, %v3284_v60 }
 0x8b3   :  { %v3138_v61 = vpop.f32.mrb[184].mxu1  ;;  %v3317_v63 = vmax.bf16 %v6330_v32, %v3285_v7 }
 0x8b4   :  { %v3140_v0 = vpop.f32.mrb[185].mxu1 }
 0x8b5   :  { %v3142_v5 = vpop.f32.mrb[186].mxu1  ;;  %4021 = vmatprep.mubr.bf16.mxu0 %v3317_v63 }
 0x8b6   :  { %v3225_v42 = vpack.c.bf16 %v3142_v5, %v3138_v61  ;;  %v3144_v15 = vpop.f32.mrb[187].mxu1  ;;  %4022 = vmatmul.mubr.bf16.gmra.mrb[144].mxu0 %v3316_v47 }
 0x8b7   :  { %v3226_v9 = vpack.c.bf16 %v3144_v15, %v3140_v0 }
 0x8b8   :  { %v3286_v10 = vadd.bf16 %v7183_v6, %v3225_v42 }
 0x8b9   :  { %v3287_v23 = vadd.bf16 %v7186_v58, %v3226_v9 }
 0x8ba   :  { %v3318_v25 = vmax.bf16 %v6330_v32, %v3286_v10 }
 0x8bb   :  { %v3148_v17 = vpop.f32.mrb[188].mxu1  ;;  %v3319_v48 = vmax.bf16 %v6330_v32, %v3287_v23 }
 0x8bc   :  { %v3150_v24 = vpop.f32.mrb[189].mxu1 }
 0x8bd   :  { %v3152_v27 = vpop.f32.mrb[190].mxu1  ;;  %4031 = vmatprep.mubr.bf16.mxu0 %v3319_v48 }
 0x8be   :  { %v3227_v56 = vpack.c.bf16 %v3152_v27, %v3148_v17  ;;  %v3154_v28 = vpop.f32.mrb[191].mxu1  ;;  %4032 = vmatmul.mubr.bf16.gmra.mrb[148].mxu0 %v3318_v25 }
 0x8bf   :  { %v3228_v31 = vpack.c.bf16 %v3154_v28, %v3150_v24 }
 0x8c0   :  { %v3288_v29 = vadd.bf16 %v7183_v6, %v3227_v56 }
 0x8c1   :  { %v3289_v34 = vadd.bf16 %v7186_v58, %v3228_v31 }
 0x8c2   :  { %v3320_v45 = vmax.bf16 %v6330_v32, %v3288_v29 }
 0x8c3   :  { %v3158_v38 = vpop.f32.mrb[192].mxu1  ;;  %v3321_v44 = vmax.bf16 %v6330_v32, %v3289_v34 }
 0x8c4   :  { %v3160_v30 = vpop.f32.mrb[193].mxu1 }
 0x8c5   :  { %v3162_v16 = vpop.f32.mrb[194].mxu1  ;;  %4041 = vmatprep.mubr.bf16.mxu0 %v3321_v44 }
 0x8c6   :  { %v3229_v57 = vpack.c.bf16 %v3162_v16, %v3158_v38  ;;  %v3164_v3 = vpop.f32.mrb[195].mxu1  ;;  %4042 = vmatmul.mubr.bf16.gmra.mrb[152].mxu0 %v3320_v45  ;;  %v5908_v16 = vld [vmem:[#allocation2] sm:$0xff]  }
 0x8c7   :  { %v3230_v51 = vpack.c.bf16 %v3164_v3, %v3160_v30  ;;  %v5910_v3 = vld [vmem:[#allocation2 + $0x10] sm:$0xff]  }
 0x8c8   :  { %v3290_v35 = vadd.bf16 %v7183_v6, %v3229_v57  ;;  %v5909_v57 = vld [vmem:[#allocation2 + $0x8] sm:$0xff]  }
 0x8c9   :  { %v3291_v62 = vadd.bf16 %v7186_v58, %v3230_v51  ;;  %v5913_v51 = vld [vmem:[#allocation2 + $0x28] sm:$0xff]  }
 0x8ca   :  { %v3322_v20 = vmax.bf16 %v6330_v32, %v3290_v35  ;;  %v5914_v35 = vld [vmem:[#allocation2 + $0x30] sm:$0xff]  }
 0x8cb   :  { %v3168_v1 = vpop.f32.mrb[196].mxu1  ;;  %v3323_v4 = vmax.bf16 %v6330_v32, %v3291_v62  ;;  %v5915_v62 = vld [vmem:[#allocation2 + $0x38] sm:$0xff]  }
 0x8cc   :  { %v3170_v12 = vpop.f32.mrb[197].mxu1 }
 0x8cd   :  { %v3172_v33 = vpop.f32.mrb[198].mxu1  ;;  %4051 = vmatprep.mubr.bf16.mxu0 %v3323_v4 }
 0x8ce   :  { %v3231_v26 = vpack.c.bf16 %v3172_v33, %v3168_v1  ;;  %v3174_v53 = vpop.f32.mrb[199].mxu1  ;;  %4052 = vmatmul.mubr.bf16.gmra.mrb[156].mxu0 %v3322_v20 }
 0x8cf   :  { %v3232_v54 = vpack.c.bf16 %v3174_v53, %v3170_v12  ;;  %v7284_v53 = vld.sshfl [vmem:[#allocation25] sm:$0x33 pattern:$0x76325410] }
 0x8d0   :  { %v3292_v49 = vadd.bf16 %v7183_v6, %v3231_v26 }
 0x8d1   :  { %v3293_v8 = vadd.bf16 %v7186_v58, %v3232_v54 }
 0x8d2   :  { %v3324_v52 = vmax.bf16 %v6330_v32, %v3292_v49 }
 0x8d3   :  { %v3178_v21 = vpop.f32.mrb[200].mxu1  ;;  %v3325_v22 = vmax.bf16 %v6330_v32, %v3293_v8 }
 0x8d4   :  { %v3180_v41 = vpop.f32.mrb[201].mxu1 }
 0x8d5   :  { %v3182_v59 = vpop.f32.mrb[202].mxu1  ;;  %4061 = vmatprep.mubr.bf16.mxu0 %v3325_v22 }
 0x8d6   :  { %v3233_v36 = vpack.c.bf16 %v3182_v59, %v3178_v21  ;;  %v3184_v60 = vpop.f32.mrb[203].mxu1  ;;  %4062 = vmatmul.mubr.bf16.gmra.mrb[160].mxu0 %v3324_v52 }
 0x8d7   :  { %v3234_v7 = vpack.c.bf16 %v3184_v60, %v3180_v41 }
 0x8d8   :  { %v3294_v61 = vadd.bf16 %v7183_v6, %v3233_v36  ;;  %v4581_v36 = vld [vmem:[#allocation26] sm:$0xf] }
 0x8d9   :  { %v3295_v63 = vadd.bf16 %v7186_v58, %v3234_v7  ;;  %4584 = vperm.xlu0 %5607, %v4581_v36  }
 0x8da   :  { %v3326_v42 = vmax.bf16 %v6330_v32, %v3294_v61 }
 0x8db   :  { %v3188_v0 = vpop.f32.mrb[204].mxu1  ;;  %v3327_v47 = vmax.bf16 %v6330_v32, %v3295_v63 }
 0x8dc   :  { %v3190_v5 = vpop.f32.mrb[205].mxu1 }
 0x8dd   :  { %v3192_v15 = vpop.f32.mrb[206].mxu1  ;;  %4071 = vmatprep.mubr.bf16.mxu0 %v3327_v47 }
 0x8de   :  { %v3235_v9 = vpack.c.bf16 %v3192_v15, %v3188_v0  ;;  %v3194_v10 = vpop.f32.mrb[207].mxu1  ;;  %4072 = vmatmul.mubr.bf16.gmra.mrb[164].mxu0 %v3326_v42 }
 0x8df   :  { %v3236_v23 = vpack.c.bf16 %v3194_v10, %v3190_v5 }
 0x8e0   :  { %v3296_v17 = vadd.bf16 %v7183_v6, %v3235_v9 }
 0x8e1   :  { %v3297_v48 = vadd.bf16 %v7186_v58, %v3236_v23 }
 0x8e2   :  { %v3328_v56 = vmax.bf16 %v6330_v32, %v3296_v17 }
 0x8e3   :  { %v3198_v24 = vpop.f32.mrb[208].mxu1  ;;  %v3329_v25 = vmax.bf16 %v6330_v32, %v3297_v48 }
 0x8e4   :  { %v3200_v27 = vpop.f32.mrb[209].mxu1 }
 0x8e5   :  { %v3202_v28 = vpop.f32.mrb[210].mxu1  ;;  %4081 = vmatprep.mubr.bf16.mxu0 %v3329_v25 }
 0x8e6   :  { %v3237_v31 = vpack.c.bf16 %v3202_v28, %v3198_v24  ;;  %v3204_v29 = vpop.f32.mrb[211].mxu1  ;;  %4082 = vmatmul.mubr.bf16.gmra.mrb[168].mxu0 %v3328_v56 }
 0x8e7   :  { %v3238_v34 = vpack.c.bf16 %v3204_v29, %v3200_v27 }
 0x8e8   :  { %v3298_v38 = vadd.bf16 %v7183_v6, %v3237_v31  ;;  %v5911_v6 = vld [vmem:[#allocation2 + $0x18] sm:$0xff]  }
 0x8e9   :  { %v3299_v44 = vadd.bf16 %v7186_v58, %v3238_v34  ;;  %v5912_v58 = vld [vmem:[#allocation2 + $0x20] sm:$0xff]  }
 0x8ea   :  { %v3330_v45 = vmax.bf16 %v6330_v32, %v3298_v38 }
 0x8eb   :  { %v3331_v30 = vmax.bf16 %v6330_v32, %v3299_v44 }
 0x8ed   :  { %4091 = vmatprep.mubr.bf16.mxu0 %v3331_v30 }
 0x8ee   :  { %4092 = vmatmul.mubr.bf16.gmra.mrb[172].mxu0 %v3330_v45 }
 0x8ef   :  { %4230 = vmatprep.mubr.bf16.mxu0 %v6330_v32 }
 0x8f6   :  { %4231 = vmatmul.mubr.bf16.vlgmr.msra.gmra.mrb[112].mxu0 %v5908_v16 }
 0x8f7   :  { %4240 = vmatprep.mubr.bf16.mxu0 %v6330_v32 }
 0x8fe   :  { %4241 = vmatmul.mubr.bf16.gmra.mrb[116].mxu0 %v5909_v57 }
 0x8ff   :  { %4250 = vmatprep.mubr.bf16.mxu0 %v6330_v32 }
 0x906   :  { %4251 = vmatmul.mubr.bf16.gmra.mrb[120].mxu0 %v5910_v3 }
 0x907   :  { %4260 = vmatprep.mubr.bf16.mxu0 %v6330_v32 }
 0x90e   :  { %4261 = vmatmul.mubr.bf16.gmra.mrb[124].mxu0 %v5911_v6 }
 0x90f   :  { %4270 = vmatprep.mubr.bf16.mxu0 %v6330_v32 }
 0x916   :  { %4271 = vmatmul.mubr.bf16.gmra.mrb[128].mxu0 %v5912_v58 }
 0x917   :  { %4280 = vmatprep.mubr.bf16.mxu0 %v6330_v32 }
 0x91e   :  { %4281 = vmatmul.mubr.bf16.gmra.mrb[132].mxu0 %v5913_v51 }
 0x91f   :  { %4290 = vmatprep.mubr.bf16.mxu0 %v6330_v32 }
 0x926   :  { %4291 = vmatmul.mubr.bf16.gmra.mrb[136].mxu0 %v5914_v35 }
 0x927   :  { %4300 = vmatprep.mubr.bf16.mxu0 %v6330_v32 }
 0x92e   :  { %4301 = vmatmul.mubr.bf16.gmra.mrb[140].mxu0 %v5915_v62 }
 0x92f   :  { %4310 = vmatprep.mubr.bf16.mxu0 %v6330_v32 }
 0x936   :  { %4311 = vmatmul.mubr.bf16.gmra.mrb[144].mxu0 %v7013_v13  ;;  %v4488_v13 = vld [vmem:[#allocation23 + $0x2] ss:$4 sm:$0x3] }
 0x937   :  { %4320 = vmatprep.mubr.bf16.mxu0 %v6330_v32 }
 0x93e   :  { %4321 = vmatmul.mubr.bf16.gmra.mrb[148].mxu0 %v7025_v18  ;;  %v4493_v18 = vrot.slane %v4488_v13, %v6679_v39 }
 0x93f   :  { %4330 = vmatprep.mubr.bf16.mxu0 %v6330_v32 }
 0x946   :  { %4331 = vmatmul.mubr.bf16.gmra.mrb[152].mxu0 %v7037_v46  ;;  %v4497_v46 = vrot.slane %v4488_v13, %v6992_v40  ;;  %v4595_v40 = vcombine.high %v7284_v53, %v7284_v53 }
 0x947   :  { %4340 = vmatprep.mubr.bf16.mxu0 %v6330_v32 }
 0x948   :  { %v4501_v1 = vpack.c.bf16 %v4497_v46, %v4497_v46  ;;  %4630 = vmatprep.mubr.bf16.mxu1 %v4595_v40 }
 0x94a   :  { %v4510_v4 = vpack.i.b16 %v4501_v1, %v4501_v1 }
 0x94e   :  { %4341 = vmatmul.mubr.bf16.gmra.mrb[156].mxu0 %v7049_v43  ;;  %v4500_v43 = vpack.c.bf16 %v4493_v18, %v4493_v18 }
 0x94f   :  { %4350 = vmatprep.mubr.bf16.mxu0 %v6330_v32 }
 0x956   :  { %4351 = vmatmul.mubr.bf16.gmra.mrb[160].mxu0 %v7061_v55  ;;  %v4503_v55 = vpack.i.b16 %v4500_v43, %v4500_v43 }
 0x957   :  { %4360 = vmatprep.mubr.bf16.mxu0 %v6330_v32 }
 0x95e   :  { %4361 = vmatmul.mubr.bf16.gmra.mrb[164].mxu0 %v7073_v2  ;;  %v7279_v2 = vrot.slane %v4503_v55, %v6679_v39 }
 0x95f   :  { %4370 = vmatprep.mubr.bf16.mxu0 %v6330_v32 }
 0x966   :  { %4371 = vmatmul.mubr.bf16.gmra.mrb[168].mxu0 %v7085_v11  ;;  %v7282_v11 = vrot.slane %v4510_v4, %v6679_v39 }
 0x967   :  { %4380 = vmatprep.mubr.bf16.mxu0 %v6330_v32 }
 0x96e   :  { %4381 = vmatmul.mubr.bf16.gmra.mrb[172].mxu0 %v7097_v19 }
 0x9c9   :  { %v4232_v12 = vpop.f32.mrb[112].mxu0 }
 0x9ca   :  { %v4234_v20 = vpop.f32.mrb[113].mxu0 }
 0x9cb   :  { %v4236_v33 = vpop.f32.mrb[114].mxu0 }
 0x9cc   :  { %v4455_v26 = vpack.c.bf16 %v4236_v33, %v4232_v12  ;;  %v4238_v19 = vpop.f32.mrb[115].mxu0 }
 0x9cd   :  { %v4456_v54 = vpack.c.bf16 %v4238_v19, %v4234_v20 }
 0x9ce   :  { %v4516_v49 = vadd.bf16 %v7279_v2, %v4455_v26 }
 0x9cf   :  { %v4517_v8 = vadd.bf16 %v7282_v11, %v4456_v54 }
 0x9d0   :  { %v4548_v41 = vmax.bf16 %v6330_v32, %v4516_v49 }
 0x9d1   :  { %v4242_v21 = vpop.f32.mrb[116].mxu0  ;;  %v4549_v22 = vmax.bf16 %v6330_v32, %v4517_v8 }
 0x9d2   :  { %v4244_v52 = vpop.f32.mrb[117].mxu0 }
 0x9d3   :  { %v4246_v59 = vpop.f32.mrb[118].mxu0  ;;  %4598 = vmatprep.subr.bf16.mxu1 %v4549_v22 }
 0x9d4   :  { %v4457_v60 = vpack.c.bf16 %v4246_v59, %v4242_v21  ;;  %v4248_v7 = vpop.f32.mrb[119].mxu0  ;;  %4599 = vmatpush1.bf16.xpose.msra.mxu1 %v4548_v41 }
 0x9d5   :  { %v4458_v61 = vpack.c.bf16 %v4248_v7, %v4244_v52 }
 0x9d6   :  { %v4518_v63 = vadd.bf16 %v7279_v2, %v4457_v60 }
 0x9d7   :  { %v4519_v0 = vadd.bf16 %v7282_v11, %v4458_v61 }
 0x9d8   :  { %v4550_v42 = vmax.bf16 %v6330_v32, %v4518_v63 }
 0x9d9   :  { %v4252_v47 = vpop.f32.mrb[120].mxu0  ;;  %v4551_v5 = vmax.bf16 %v6330_v32, %v4519_v0 }
 0x9da   :  { %v4254_v15 = vpop.f32.mrb[121].mxu0 }
 0x9db   :  { %v4256_v9 = vpop.f32.mrb[122].mxu0  ;;  %4600 = vmatprep.subr.bf16.mxu1 %v4551_v5 }
 0x9dc   :  { %v4459_v10 = vpack.c.bf16 %v4256_v9, %v4252_v47  ;;  %v4258_v23 = vpop.f32.mrb[123].mxu0  ;;  %4601 = vmatpush1.bf16.xpose.msra.mxu1 %v4550_v42 }
 0x9dd   :  { %v4460_v17 = vpack.c.bf16 %v4258_v23, %v4254_v15 }
 0x9de   :  { %v4520_v48 = vadd.bf16 %v7279_v2, %v4459_v10 }
 0x9df   :  { %v4521_v24 = vadd.bf16 %v7282_v11, %v4460_v17 }
 0x9e0   :  { %v4552_v56 = vmax.bf16 %v6330_v32, %v4520_v48 }
 0x9e1   :  { %v4262_v25 = vpop.f32.mrb[124].mxu0  ;;  %v4553_v27 = vmax.bf16 %v6330_v32, %v4521_v24 }
 0x9e2   :  { %v4264_v28 = vpop.f32.mrb[125].mxu0 }
 0x9e3   :  { %v4266_v31 = vpop.f32.mrb[126].mxu0  ;;  %4602 = vmatprep.subr.bf16.mxu1 %v4553_v27 }
 0x9e4   :  { %v4461_v29 = vpack.c.bf16 %v4266_v31, %v4262_v25  ;;  %v4268_v34 = vpop.f32.mrb[127].mxu0  ;;  %4603 = vmatpush1.bf16.xpose.msra.mxu1 %v4552_v56 }
 0x9e5   :  { %v4462_v38 = vpack.c.bf16 %v4268_v34, %v4264_v28 }
 0x9e6   :  { %v4522_v44 = vadd.bf16 %v7279_v2, %v4461_v29 }
 0x9e7   :  { %v4523_v30 = vadd.bf16 %v7282_v11, %v4462_v38 }
 0x9e8   :  { %v4554_v57 = vmax.bf16 %v6330_v32, %v4522_v44 }
 0x9e9   :  { %v4272_v45 = vpop.f32.mrb[128].mxu0  ;;  %v4555_v16 = vmax.bf16 %v6330_v32, %v4523_v30 }
 0x9ea   :  { %v4274_v3 = vpop.f32.mrb[129].mxu0 }
 0x9eb   :  { %v4276_v6 = vpop.f32.mrb[130].mxu0  ;;  %4604 = vmatprep.subr.bf16.mxu1 %v4555_v16 }
 0x9ec   :  { %v4463_v58 = vpack.c.bf16 %v4276_v6, %v4272_v45  ;;  %v4278_v51 = vpop.f32.mrb[131].mxu0  ;;  %4605 = vmatpush1.bf16.xpose.msra.mxu1 %v4554_v57 }
 0x9ed   :  { %v4464_v35 = vpack.c.bf16 %v4278_v51, %v4274_v3 }
 0x9ee   :  { %v4524_v62 = vadd.bf16 %v7279_v2, %v4463_v58 }
 0x9ef   :  { %v4525_v13 = vadd.bf16 %v7282_v11, %v4464_v35 }
 0x9f0   :  { %v4556_v43 = vmax.bf16 %v6330_v32, %v4524_v62 }
 0x9f1   :  { %v4282_v18 = vpop.f32.mrb[132].mxu0  ;;  %v4557_v46 = vmax.bf16 %v6330_v32, %v4525_v13 }
 0x9f2   :  { %v4284_v1 = vpop.f32.mrb[133].mxu0 }
 0x9f3   :  { %v4286_v55 = vpop.f32.mrb[134].mxu0  ;;  %4606 = vmatprep.subr.bf16.mxu1 %v4557_v46 }
 0x9f4   :  { %v4465_v4 = vpack.c.bf16 %v4286_v55, %v4282_v18  ;;  %v4288_v12 = vpop.f32.mrb[135].mxu0  ;;  %4607 = vmatpush1.bf16.xpose.msra.mxu1 %v4556_v43 }
 0x9f5   :  { %v4466_v20 = vpack.c.bf16 %v4288_v12, %v4284_v1 }
 0x9f6   :  { %v4526_v33 = vadd.bf16 %v7279_v2, %v4465_v4 }
 0x9f7   :  { %v4527_v26 = vadd.bf16 %v7282_v11, %v4466_v20 }
 0x9f8   :  { %v4558_v40 = vmax.bf16 %v6330_v32, %v4526_v33 }
 0x9f9   :  { %v4292_v19 = vpop.f32.mrb[136].mxu0  ;;  %v4559_v54 = vmax.bf16 %v6330_v32, %v4527_v26 }
 0x9fa   :  { %v4294_v49 = vpop.f32.mrb[137].mxu0 }
 0x9fb   :  { %v4296_v8 = vpop.f32.mrb[138].mxu0  ;;  %4608 = vmatprep.subr.bf16.mxu1 %v4559_v54 }
 0x9fc   :  { %v4467_v21 = vpack.c.bf16 %v4296_v8, %v4292_v19  ;;  %v4298_v22 = vpop.f32.mrb[139].mxu0  ;;  %4609 = vmatpush1.bf16.xpose.msra.mxu1 %v4558_v40 }
 0x9fd   :  { %v4468_v41 = vpack.c.bf16 %v4298_v22, %v4294_v49 }
 0x9fe   :  { %v4528_v52 = vadd.bf16 %v7279_v2, %v4467_v21 }
 0x9ff   :  { %v4529_v59 = vadd.bf16 %v7282_v11, %v4468_v41 }
 0xa00   :  { %v4560_v7 = vmax.bf16 %v6330_v32, %v4528_v52 }
 0xa01   :  { %v4302_v36 = vpop.f32.mrb[140].mxu0  ;;  %v4561_v60 = vmax.bf16 %v6330_v32, %v4529_v59 }
 0xa02   :  { %v4304_v61 = vpop.f32.mrb[141].mxu0 }
 0xa03   :  { %v4306_v63 = vpop.f32.mrb[142].mxu0  ;;  %4610 = vmatprep.subr.bf16.mxu1 %v4561_v60 }
 0xa04   :  { %v4469_v0 = vpack.c.bf16 %v4306_v63, %v4302_v36  ;;  %v4308_v47 = vpop.f32.mrb[143].mxu0  ;;  %4611 = vmatpush1.bf16.xpose.msra.mxu1 %v4560_v7 }
 0xa05   :  { %v4470_v5 = vpack.c.bf16 %v4308_v47, %v4304_v61 }
 0xa06   :  { %v4530_v42 = vadd.bf16 %v7279_v2, %v4469_v0 }
 0xa07   :  { %v4531_v15 = vadd.bf16 %v7282_v11, %v4470_v5 }
 0xa08   :  { %v4562_v23 = vmax.bf16 %v6330_v32, %v4530_v42 }
 0xa09   :  { %v4312_v9 = vpop.f32.mrb[144].mxu0  ;;  %v4563_v10 = vmax.bf16 %v6330_v32, %v4531_v15 }
 0xa0a   :  { %v4314_v17 = vpop.f32.mrb[145].mxu0 }
 0xa0b   :  { %v4316_v48 = vpop.f32.mrb[146].mxu0  ;;  %4612 = vmatprep.subr.bf16.mxu1 %v4563_v10 }
 0xa0c   :  { %v4471_v24 = vpack.c.bf16 %v4316_v48, %v4312_v9  ;;  %v4318_v25 = vpop.f32.mrb[147].mxu0  ;;  %4613 = vmatpush1.bf16.xpose.msra.mxu1 %v4562_v23 }
 0xa0d   :  { %v4472_v27 = vpack.c.bf16 %v4318_v25, %v4314_v17 }
 0xa0e   :  { %v4532_v56 = vadd.bf16 %v7279_v2, %v4471_v24 }
 0xa0f   :  { %v4533_v28 = vadd.bf16 %v7282_v11, %v4472_v27 }
 0xa10   :  { %v4564_v34 = vmax.bf16 %v6330_v32, %v4532_v56 }
 0xa11   :  { %v4322_v31 = vpop.f32.mrb[148].mxu0  ;;  %v4565_v29 = vmax.bf16 %v6330_v32, %v4533_v28 }
 0xa12   :  { %v4324_v38 = vpop.f32.mrb[149].mxu0 }
 0xa13   :  { %v4326_v44 = vpop.f32.mrb[150].mxu0  ;;  %4614 = vmatprep.subr.bf16.mxu1 %v4565_v29 }
 0xa14   :  { %v4473_v30 = vpack.c.bf16 %v4326_v44, %v4322_v31  ;;  %v4328_v45 = vpop.f32.mrb[151].mxu0  ;;  %4615 = vmatpush1.bf16.xpose.msra.mxu1 %v4564_v34 }
 0xa15   :  { %v4474_v16 = vpack.c.bf16 %v4328_v45, %v4324_v38 }
 0xa16   :  { %v4534_v57 = vadd.bf16 %v7279_v2, %v4473_v30 }
 0xa17   :  { %v4535_v3 = vadd.bf16 %v7282_v11, %v4474_v16 }
 0xa18   :  { %v4566_v51 = vmax.bf16 %v6330_v32, %v4534_v57 }
 0xa19   :  { %v4332_v6 = vpop.f32.mrb[152].mxu0  ;;  %v4567_v58 = vmax.bf16 %v6330_v32, %v4535_v3 }
 0xa1a   :  { %v4334_v35 = vpop.f32.mrb[153].mxu0 }
 0xa1b   :  { %v4336_v62 = vpop.f32.mrb[154].mxu0  ;;  %4616 = vmatprep.subr.bf16.mxu1 %v4567_v58 }
 0xa1c   :  { %v4475_v13 = vpack.c.bf16 %v4336_v62, %v4332_v6  ;;  %v4338_v18 = vpop.f32.mrb[155].mxu0  ;;  %4617 = vmatpush1.bf16.xpose.msra.mxu1 %v4566_v51 }
 0xa1d   :  { %v4476_v46 = vpack.c.bf16 %v4338_v18, %v4334_v35  ;;  %v6331_v18 = vmov 839922192  }
 0xa1e   :  { %v4536_v43 = vadd.bf16 %v7279_v2, %v4475_v13 }
 0xa1f   :  { %v4537_v1 = vadd.bf16 %v7282_v11, %v4476_v46  ;;  %v2457_v46 = vunpack.c.l.s4 %v6331_v18 }
 0xa20   :  { %v4568_v12 = vmax.bf16 %v6330_v32, %v4536_v43 }
 0xa21   :  { %v4342_v55 = vpop.f32.mrb[156].mxu0  ;;  %v4569_v4 = vmax.bf16 %v6330_v32, %v4537_v1  ;;  %v2458_v43 = vunpack.c.0.s8 %v2457_v46 }
 0xa22   :  { %v4344_v20 = vpop.f32.mrb[157].mxu0 }
 0xa23   :  { %v4346_v33 = vpop.f32.mrb[158].mxu0  ;;  %4618 = vmatprep.subr.bf16.mxu1 %v4569_v4  ;;  %v2461_v1 = vsub.s32 %v2458_v43, %v6676_v37 }
 0xa24   :  { %v4477_v26 = vpack.c.bf16 %v4346_v33, %v4342_v55  ;;  %v4348_v19 = vpop.f32.mrb[159].mxu0  ;;  %4619 = vmatpush1.bf16.xpose.msra.mxu1 %v4568_v12  ;;  %v2454_v55 = vpop.permute.xlu0 %2453 }
 0xa25   :  { %v4478_v54 = vpack.c.bf16 %v4348_v19, %v4344_v20  ;;  %v2462_v4 = vrot.slane %v2454_v55, %v2461_v1 }
 0xa26   :  { %v4538_v40 = vadd.bf16 %v7279_v2, %v4477_v26 }
 0xa27   :  { %v4539_v49 = vadd.bf16 %v7282_v11, %v4478_v54  ;;  %v2467_v12 = vrot.slane %v2462_v4, %v6679_v39 }
 0xa28   :  { %v4570_v22 = vmax.bf16 %v6330_v32, %v4538_v40 }
 0xa29   :  { %v4352_v8 = vpop.f32.mrb[160].mxu0  ;;  %v4571_v21 = vmax.bf16 %v6330_v32, %v4539_v49  ;;  %v4585_v49 = vpop.permute.xlu0 %4584 }
 0xa2a   :  { %v4354_v41 = vpop.f32.mrb[161].mxu0 }
 0xa2b   :  { %v4356_v52 = vpop.f32.mrb[162].mxu0  ;;  %4620 = vmatprep.subr.bf16.mxu1 %v4571_v21 }
 0xa2c   :  { %v4479_v59 = vpack.c.bf16 %v4356_v52, %v4352_v8  ;;  %v4358_v36 = vpop.f32.mrb[163].mxu0  ;;  %4621 = vmatpush1.bf16.xpose.msra.mxu1 %v4570_v22 }
 0xa2d   :  { %v4480_v60 = vpack.c.bf16 %v4358_v36, %v4354_v41 }
 0xa2e   :  { %v4540_v7 = vadd.bf16 %v7279_v2, %v4479_v59 }
 0xa2f   :  { %v4541_v61 = vadd.bf16 %v7282_v11, %v4480_v60 }
 0xa30   :  { %v4572_v47 = vmax.bf16 %v6330_v32, %v4540_v7 }
 0xa31   :  { %v4362_v63 = vpop.f32.mrb[164].mxu0  ;;  %v4573_v0 = vmax.bf16 %v6330_v32, %v4541_v61 }
 0xa32   :  { %v4364_v5 = vpop.f32.mrb[165].mxu0 }
 0xa33   :  { %v4366_v42 = vpop.f32.mrb[166].mxu0  ;;  %4622 = vmatprep.subr.bf16.mxu1 %v4573_v0 }
 0xa34   :  { %v4481_v15 = vpack.c.bf16 %v4366_v42, %v4362_v63  ;;  %v4368_v9 = vpop.f32.mrb[167].mxu0  ;;  %4623 = vmatpush1.bf16.xpose.msra.mxu1 %v4572_v47 }
 0xa35   :  { %v4482_v10 = vpack.c.bf16 %v4368_v9, %v4364_v5 }
 0xa36   :  { %v4542_v23 = vadd.bf16 %v7279_v2, %v4481_v15 }
 0xa37   :  { %v4543_v17 = vadd.bf16 %v7282_v11, %v4482_v10 }
 0xa38   :  { %v4574_v25 = vmax.bf16 %v6330_v32, %v4542_v23 }
 0xa39   :  { %v4372_v48 = vpop.f32.mrb[168].mxu0  ;;  %v4575_v24 = vmax.bf16 %v6330_v32, %v4543_v17 }
 0xa3a   :  { %v4374_v27 = vpop.f32.mrb[169].mxu0 }
 0xa3b   :  { %v4376_v56 = vpop.f32.mrb[170].mxu0  ;;  %4624 = vmatprep.subr.bf16.mxu1 %v4575_v24 }
 0xa3c   :  { %v4483_v28 = vpack.c.bf16 %v4376_v56, %v4372_v48  ;;  %v4378_v31 = vpop.f32.mrb[171].mxu0  ;;  %4625 = vmatpush1.bf16.xpose.msra.mxu1 %v4574_v25 }
 0xa3d   :  { %v4484_v29 = vpack.c.bf16 %v4378_v31, %v4374_v27 }
 0xa3e   :  { %v4544_v34 = vadd.bf16 %v7279_v2, %v4483_v28 }
 0xa3f   :  { %v4545_v38 = vadd.bf16 %v7282_v11, %v4484_v29 }
 0xa40   :  { %v4576_v45 = vmax.bf16 %v6330_v32, %v4544_v34 }
 0xa41   :  { %v4382_v44 = vpop.f32.mrb[172].mxu0  ;;  %v4577_v30 = vmax.bf16 %v6330_v32, %v4545_v38 }
 0xa42   :  { %v4384_v16 = vpop.f32.mrb[173].mxu0 }
 0xa43   :  { %v4386_v57 = vpop.f32.mrb[174].mxu0  ;;  %4626 = vmatprep.subr.bf16.mxu1 %v4577_v30 }
 0xa44   :  { %v4485_v3 = vpack.c.bf16 %v4386_v57, %v4382_v44  ;;  %v4388_v6 = vpop.f32.mrb[175].mxu0  ;;  %4627 = vmatpush1.bf16.xpose.msra.mxu1 %v4576_v45 }
 0xa45   :  { %v4486_v58 = vpack.c.bf16 %v4388_v6, %v4384_v16 }
 0xa46   :  { %v4546_v51 = vadd.bf16 %v7279_v2, %v4485_v3  ;;  %v2507_v2 = vadd.f32 %v7164_v14, %v2467_v12 }
 0xa47   :  { %v4547_v35 = vadd.bf16 %v7282_v11, %v4486_v58  ;;  %v2509_v11 = vadd.f32 %v7166_v50, %v2467_v12 }
 0xa48   :  { %v4578_v13 = vmax.bf16 %v6330_v32, %v4546_v51  ;;  %v2513_v20 = vadd.f32 -1.0, %v2507_v2 }
 0xa49   :  { %v4579_v62 = vmax.bf16 %v6330_v32, %v4547_v35  ;;  %v2514_v33 = vadd.f32 -1.0, %v2509_v11 }
 0xa4a   :  { %v2517_v32 = vand.u32 2147483647, %v2513_v20  ;;  %v2515_v48 = vmax.f32 %v2513_v20, 0.0 }
 0xa4b   :  { %4628 = vmatprep.subr.bf16.mxu1 %v4579_v62  ;;  %v2518_v26 = vand.u32 2147483647, %v2514_v33  ;;  %v2516_v24 = vmax.f32 %v2514_v33, 0.0 }
 0xa4c   :  { %4629 = vmatpush1.bf16.xpose.msra.mxu1 %v4578_v13  ;;  %v2519_v19 = vsub.f32 0.0, %v2517_v32 }
 0xa4d   :  { %v2520_v54 = vsub.f32 0.0, %v2518_v26 }
 0xa4f   :  { %v2523_v40 = vmul.f32 1.442695, %v2520_v54 }
 0xa53   :  { %4631 = vmatmul.mubr.bf16.vlgmr.msra.gmra.mrb[212].mxu1 %v7284_v53  ;;  %v2521_v53 = vmul.f32 1.442695, %v2519_v19 }
 0xa55   :  { %5876 = vpow2.f32 %v2521_v53 }
 0xa56   :  { %5878 = vpow2.f32 %v2523_v40 }
 0xa5f   :  { %v5877_v50 = vpop.eup %5876 }
 0xa60   :  { %v5879_v7 = vpop.eup %5878  ;;  %v2525_v63 = vadd.f32 1.0, %v5877_v50 }
 0xa61   :  { %v2526_v0 = vadd.f32 1.0, %v5879_v7 }
 0xb26   :  { %v4632_v8 = vpop.f32.mrb[212].mxu1 }
 0xb27   :  { %v4633_v21 = vadd.f32 %v4632_v8, %v4585_v49  ;;  %v4634_v22 = vpop.f32.mrb[213].mxu1 }
 0xb28   :  { %v4635_v41 = vadd.f32 %v4634_v22, %v4585_v49  ;;  %v4636_v52 = vpop.f32.mrb[214].mxu1 }
 0xb29   :  { %v4641_v59 = vsub.f32 0.0, %v4633_v21  ;;  %v4637_v14 = vpop.f32.mrb[215].mxu1 }
 0xb2a   :  { %v4642_v36 = vsub.f32 0.0, %v4635_v41 }
 0xb2b   :  { %v4643_v60 = vmul.f32 1.442695, %v4641_v59 }
 0xb2c   :  { %v4645_v61 = vmul.f32 1.442695, %v4642_v36 }
 0xb2d   :  { %5880 = vpow2.f32 %v4643_v60 }
 0xb2e   :  { %5882 = vpow2.f32 %v4645_v61 }
 0xb2f   :  { %5884 = vlog2.f32 %v2525_v63 }
 0xb30   :  { %5886 = vlog2.f32 %v2526_v0 }
 0xb37   :  { %v5881_v47 = vpop.eup %5880 }
 0xb38   :  { %v5883_v5 = vpop.eup %5882  ;;  %v4647_v42 = vadd.f32 1.0, %v5881_v47 }
 0xb39   :  { %v4648_v15 = vadd.f32 1.0, %v5883_v5  ;;  %v5885_v9 = vpop.eup %5884 }
 0xb3a   :  { %5888 = vrcp.f32 %v4647_v42  ;;  %v5887_v10 = vpop.eup %5886  ;;  %v2528_v23 = vmul.f32 0.6931472, %v5885_v9 }
 0xb3b   :  { %5890 = vrcp.f32 %v4648_v15  ;;  %v2530_v17 = vmul.f32 0.6931472, %v5887_v10 }
 0xb3c   :  { %v2531_v25 = vadd.f32 %v2528_v23, %v2515_v48 }
 0xb3d   :  { %v2532_v56 = vadd.f32 %v2530_v17, %v2516_v24 }
 0xb3e   :  { %v4663_v34 = vrot.slane %v2531_v25, %v6679_v39 }
 0xb3f   :  { %v4667_v44 = vrot.slane %v2532_v56, %v6679_v39 }
 0xb44   :  { %v5889_v27 = vpop.eup %5888 }
 0xb45   :  { %v5891_v28 = vpop.eup %5890  ;;  %v4653_v31 = vmul.f32 1.002, %v5889_v27 }
 0xb46   :  { %v4654_v29 = vmul.f32 1.002, %v5891_v28 }
 0xb47   :  { %v4916_v38 = vadd.f32 -0.001, %v4653_v31 }
 0xb48   :  { %v4917_v30 = vadd.f32 -0.001, %v4654_v29 }
 0xb49   :  { %v4668_v45 = vsel %vm4659_vm1, %v4663_v34, %v4916_v38 }
 0xb4a   :  { %v4669_v16 = vsel %vm4659_vm1, %v4667_v44, %v4917_v30 }
 0xb4b   :  { %v4672_v57 = vcombine.low %v4668_v45, %v4669_v16 }
 0xb4d   :  { %4674 = vst [vmem:[#allocation28] sm:$0xff] %v4672_v57 }
 0xb4e   :  { %6279 = shalt.err (!%p6276_p6)
}
 0xb4f   :  { %s6280_s6 = scalar_lea.hbm %s7388_s16, 128 }
 0xb50   :  { %p6281_p7 = scmp.ne.s32.totalorder %s7388_s16, %s6280_s6  ;;  %p6284_p8 = scmp.lt.u32.totalorder %s6280_s6, %s7388_s16 }
 0xb52   :  { %p6286_p9 = pnand %p6284_p8, %p6281_p7 }
 0xb54   :  { %6289 = shalt.err (!%p6286_p9)
}
 0xb55   :  { %4684 = dma.vmem_to_hbm [thread:$0]  %s4682_s26, 128, %s7388_s16, [#allocation4]  }
 0xb56   :  { %6308 = dma.done.wait [#allocation4], 128  }
 0xb57   :  { %6309 = vsyncadd [#allocation4], 4294967168 }
 0xb58   :  { %4688 = vsyncpa [#allocation3], 1 }
 0xb59   :  { %4689 = vsyncpa [#allocation6], 1 }
 0xb5a   :  { %4690 = vsyncpa [#allocation9], 1 }
 0xb5b   :  { %4691 = vsyncpa [#allocation12], 1 }
 0xb5c   :  { %4692 = vsyncpa [#allocation15], 1 }
 0xb5d   :  { %4693 = vsyncpa [#allocation18], 1 }
 0xb5e   :  { %4694 = vsyncpa [#allocation21], 1 }
 0xb5f   :  { %4695 = vsyncpa [#allocation24], 1 }
 0xb60   :  { %4696 = vsyncpa [#allocation27], 1 }
 0xb61   :  { %4697 = vsyncpa [#allocation4], 1 }

</bundles_post_ra>
